<compile_context>
chip_gen: v6e
topology: v6e:2x2x1
jax: 0.10.0
libtpu: 0.0.40
codegen_flags: <defaults>
</compile_context>

<pallas_src>
import functools
import math

import jax
import jax.numpy as jnp
from jax.experimental import pallas as pl
from jax.experimental.pallas import tpu as pltpu


def _softmax_last(x):
    m = jnp.max(x, axis=-1, keepdims=True)
    e = jnp.exp(x - m)
    return e / jnp.sum(e, axis=-1, keepdims=True)


def _sigmoid(x):
    return 1.0 / (1.0 + jnp.exp(-x))


def decoder_kernel(
    # data
    sent_ref, rel_ref, mask_ref,
    # packed weights
    slab_h_ref,      # (H, 8R + 7H): [Wih_f|Wih_b | Wh | W[:H] | Wg | W1 | W2 | W3]
    wr_ref,          # (RD, H)
    wgate_ref,       # (2H, H) = W[H:3H]
    slab_rec_ref,    # (2R, 8R + NL): [block-diag(Whh_f, Whh_b) | tag_w]
    bias_ref,        # (1, 8R + 9H + 1 + NL)
    # outputs
    project_ref, weight_ref,
    # scratch
    hbuf,            # (B, L, 2R) LSTM outputs [fwd | bwd]
    *, B, L, H, R, NL,
):
    sent = sent_ref[...]            # (B, L, H)
    mask = mask_ref[...]            # (B, L) float {0, 1}
    rel_e = rel_ref[...]            # (B, RD)
    maskb = mask > 0.5              # bool validity

    # ---- slab offsets --------------------------------------------------------
    OFF_WIH, OFF_SENT, OFF_GLOB, OFF_ATT = 0, 8 * R, 8 * R + 2 * H, 8 * R + 4 * H
    BB = 8 * R                       # bias base after lstm bias
    lstm_b = bias_ref[:, 0:8 * R]                      # (1, 8R)
    wh_b   = bias_ref[:, BB + 0 * H:BB + 1 * H]
    w_b    = bias_ref[:, BB + 1 * H:BB + 2 * H]
    wg_b   = bias_ref[:, BB + 2 * H:BB + 3 * H]
    w1_b   = bias_ref[:, BB + 3 * H:BB + 4 * H]
    w2_b   = bias_ref[:, BB + 4 * H:BB + 5 * H]
    w3_b   = bias_ref[:, BB + 5 * H:BB + 7 * H]
    wr_b   = bias_ref[:, BB + 7 * H:BB + 8 * H]
    al_row = bias_ref[:, BB + 8 * H:BB + 9 * H]        # alpha_net weight as a row
    al_b   = bias_ref[:, BB + 9 * H:BB + 9 * H + 1]
    tag_b  = bias_ref[:, BB + 9 * H + 1:BB + 9 * H + 1 + NL]

    neg = jnp.float32(-1.0e9)

    # ---- masked_mean -> global_sen (B, H) ------------------------------------
    # softmax over {1, -1e9} == uniform over valid positions == masked mean.
    cnt = jnp.sum(mask, axis=-1, keepdims=True)                      # (B, 1)
    global_sen = jnp.sum(mask[:, :, None] * sent, axis=1) / cnt      # (B, H)

    # ---- AttentionNet --------------------------------------------------------
    relation = jnp.dot(rel_e, wr_ref[...],
                       preferred_element_type=jnp.float32) + wr_b    # (B, H)

    sent2d = sent.reshape(B * L, H)
    # fused [Wh | W_sent] (shared sent operand)
    sent_fused = jnp.dot(sent2d, slab_h_ref[:, OFF_SENT:OFF_SENT + 2 * H],
                         preferred_element_type=jnp.float32)         # (B*L, 2H)
    sent_p2d = sent_fused[:, :H] + wh_b                              # Wh(sent)
    dec_sent2d = sent_fused[:, H:]                                   # W[:H](sent)

    # fused [Wg | W1] (shared global_sen operand)
    glob_fused = jnp.dot(global_sen, slab_h_ref[:, OFF_GLOB:OFF_GLOB + 2 * H],
                         preferred_element_type=jnp.float32)         # (B, 2H)
    global_p = glob_fused[:, :H] + wg_b
    a1 = glob_fused[:, H:] + w1_b

    sent_p = sent_p2d.reshape(B, L, H)
    mix = jnp.tanh(relation[:, None, :] + sent_p + global_p[:, None, :])   # (B,L,H)
    # alpha_net as a lane reduce (avoids a width-1 MXU push)
    logits = jnp.sum(mix * al_row.reshape(1, 1, H), axis=-1) + al_b        # (B, L)
    logits = jnp.where(maskb, logits, neg)
    weight = _softmax_last(logits)                                         # (B, L)
    weight_ref[...] = weight
    att_res = jnp.sum(weight[:, :, None] * sent_p, axis=1)                 # (B, H)

    # ---- gating: fused [W2 | W3] (shared att_res operand) --------------------
    att_fused = jnp.dot(att_res, slab_h_ref[:, OFF_ATT:OFF_ATT + 3 * H],
                        preferred_element_type=jnp.float32)          # (B, 3H)
    a2 = att_fused[:, :H] + w2_b
    w3_out = att_fused[:, H:] + w3_b                                 # (B, 2H)
    alpha = _sigmoid(jnp.concatenate([a1, a2], axis=-1))             # (B, 2H)
    gate = alpha * jnp.tanh(w3_out)                                  # (B, 2H)

    # W projection: decode_in = sent @ W[:H] + gate @ W[H:] + b
    dec_gate = jnp.dot(gate, wgate_ref[...],
                       preferred_element_type=jnp.float32)           # (B, H)
    decode_in = dec_sent2d.reshape(B, L, H) + (dec_gate + w_b)[:, None, :]  # (B,L,H)

    # ---- BiLSTM: input projection hoisted out of the recurrence --------------
    x_pre = (jnp.dot(decode_in.reshape(B * L, H),
                     slab_h_ref[:, OFF_WIH:OFF_WIH + 8 * R],
                     preferred_element_type=jnp.float32) + lstm_b
             ).reshape(B, L, 8 * R)                                  # (B, L, 8R)

    whh_bd = slab_rec_ref[:, 0:8 * R]                                # (2R, 8R)
    tag_w = slab_rec_ref[:, 8 * R:8 * R + NL]                        # (2R, NL)

    h_cat = jnp.zeros((B, 2 * R), jnp.float32)                       # [h_f | h_b]
    c_cat = jnp.zeros((B, 2 * R), jnp.float32)

    # One loop over t drives both directions (packed-sequence semantics: state
    # frozen and output zero for t >= len).
    for t in range(L):
        s_b = L - 1 - t                                              # backward step
        valid_f = maskb[:, t:t + 1]                                  # (B, 1)
        valid_b = maskb[:, s_b:s_b + 1]

        z_hh = jnp.dot(h_cat, whh_bd, preferred_element_type=jnp.float32)  # (B, 8R)
        z_f = x_pre[:, t, 0:4 * R] + z_hh[:, 0:4 * R]
        z_b = x_pre[:, s_b, 4 * R:8 * R] + z_hh[:, 4 * R:8 * R]

        h_f, h_b = h_cat[:, :R], h_cat[:, R:]
        c_f, c_b = c_cat[:, :R], c_cat[:, R:]

        i = _sigmoid(z_f[:, 0:R]); f = _sigmoid(z_f[:, R:2 * R])
        g = jnp.tanh(z_f[:, 2 * R:3 * R]); o = _sigmoid(z_f[:, 3 * R:4 * R])
        cf_new = f * c_f + i * g
        hf_new = o * jnp.tanh(cf_new)

        i = _sigmoid(z_b[:, 0:R]); f = _sigmoid(z_b[:, R:2 * R])
        g = jnp.tanh(z_b[:, 2 * R:3 * R]); o = _sigmoid(z_b[:, 3 * R:4 * R])
        cb_new = f * c_b + i * g
        hb_new = o * jnp.tanh(cb_new)

        h_cat = jnp.concatenate([jnp.where(valid_f, hf_new, h_f),
                                 jnp.where(valid_b, hb_new, h_b)], axis=-1)
        c_cat = jnp.concatenate([jnp.where(valid_f, cf_new, c_f),
                                 jnp.where(valid_b, cb_new, c_b)], axis=-1)

        hbuf[:, t:t + 1, 0:R] = jnp.where(valid_f, hf_new, 0.0)[:, None, :]
        hbuf[:, s_b:s_b + 1, R:2 * R] = jnp.where(valid_b, hb_new, 0.0)[:, None, :]

    # ---- hidden2tag: single batched matmul over all timesteps ----------------
    hidden = hbuf[...].reshape(B * L, 2 * R)
    project = jnp.dot(hidden, tag_w, preferred_element_type=jnp.float32) + tag_b
    project_ref[...] = project.reshape(B, L, NL)


# ---------------------------------------------------------------------------
# parameter construction (deterministic, synthetic)
# ---------------------------------------------------------------------------
def _xavier(key, shape):
    lim = math.sqrt(6.0 / (shape[0] + shape[1]))
    return jax.random.uniform(key, shape, jnp.float32, -lim, lim)


def _unif(key, shape, lim):
    return jax.random.uniform(key, shape, jnp.float32, -lim, lim)


def init_params(key, opt):
    H, RD, R = opt.att_hidden_size, opt.rel_dim, opt.rnn_hidden_size
    NL, RN = opt.label_num, opt.rel_num
    keys = iter(jax.random.split(key, 32))
    p = {"rel_matrix": _xavier(next(keys), (RN, RD))}

    def lin(in_dim, out_dim):
        kw, kb = next(keys), next(keys)
        lim_b = 1.0 / math.sqrt(in_dim)
        return _xavier(kw, (in_dim, out_dim)), _unif(kb, (1, out_dim), lim_b)

    wr_w, wr_b = lin(RD, H)
    wh_w, wh_b = lin(H, H)
    wg_w, wg_b = lin(H, H)
    al_w, al_b = lin(H, 1)
    w1_w, w1_b = lin(H, H)
    w2_w, w2_b = lin(H, H)
    w3_w, w3_b = lin(H, 2 * H)
    w_w, w_b = lin(3 * H, H)

    lim = 1.0 / math.sqrt(R)

    def lstm_dir():
        wih = _unif(next(keys), (H, 4 * R), lim)
        whh = _unif(next(keys), (R, 4 * R), lim)
        b = _unif(next(keys), (1, 4 * R), lim) + _unif(next(keys), (1, 4 * R), lim)
        return wih, whh, b

    lf_wih, lf_whh, lf_b = lstm_dir()
    lb_wih, lb_whh, lb_b = lstm_dir()
    tag_w, tag_b = lin(2 * R, NL)

    p["weights"] = dict(
        wr_w=wr_w, wr_b=wr_b, wh_w=wh_w, wh_b=wh_b, wg_w=wg_w, wg_b=wg_b,
        al_w=al_w, al_b=al_b, w1_w=w1_w, w1_b=w1_b, w2_w=w2_w, w2_b=w2_b,
        w3_w=w3_w, w3_b=w3_b, w_w=w_w, w_b=w_b,
        lf_wih=lf_wih, lf_whh=lf_whh, lf_b=lf_b,
        lb_wih=lb_wih, lb_whh=lb_whh, lb_b=lb_b,
        tag_w=tag_w, tag_b=tag_b)
    return p


def _pack_params(params, opt):
    """Concatenate the many small weights/biases into a few VMEM slabs."""
    H, R = opt.att_hidden_size, opt.rnn_hidden_size
    w = params["weights"]

    wih_cat = jnp.concatenate([w["lf_wih"], w["lb_wih"]], axis=1)       # (H, 8R)
    slab_h = jnp.concatenate(
        [wih_cat, w["wh_w"], w["w_w"][:H, :], w["wg_w"], w["w1_w"],
         w["w2_w"], w["w3_w"]], axis=1)                                 # (H, 8R+7H)

    whh_bd = jnp.zeros((2 * R, 8 * R), jnp.float32)
    whh_bd = whh_bd.at[:R, :4 * R].set(w["lf_whh"]).at[R:, 4 * R:].set(w["lb_whh"])
    slab_rec = jnp.concatenate([whh_bd, w["tag_w"]], axis=1)            # (2R, 8R+NL)

    lstm_b = jnp.concatenate([w["lf_b"], w["lb_b"]], axis=1)            # (1, 8R)
    bias_slab = jnp.concatenate(
        [lstm_b, w["wh_b"], w["w_b"], w["wg_b"], w["w1_b"], w["w2_b"],
         w["w3_b"], w["wr_b"], w["al_w"].T, w["al_b"], w["tag_b"]],
        axis=1)                                                         # (1, 8R+9H+1+NL)

    w_gate = w["w_w"][H:, :]                                            # (2H, H)
    return slab_h, w["wr_w"], w_gate, slab_rec, bias_slab


# ---------------------------------------------------------------------------
# wrapper
# ---------------------------------------------------------------------------
def decoder_forward(params, sent, rel, mask, sen_len, opt):
    del sen_len  # length info is fully encoded in `mask`
    B, L, H = sent.shape
    R, NL = opt.rnn_hidden_size, opt.label_num

    rel_emb = params["rel_matrix"][rel]                 # embedding gather (glue)
    slab_h, wr_w, w_gate, slab_rec, bias_slab = _pack_params(params, opt)

    kernel = functools.partial(decoder_kernel, B=B, L=L, H=H, R=R, NL=NL)
    vmem = pl.BlockSpec(memory_space=pltpu.MemorySpace.VMEM)

    project, weight = pl.pallas_call(
        kernel,
        out_shape=(jax.ShapeDtypeStruct((B, L, NL), jnp.float32),
                   jax.ShapeDtypeStruct((B, L), jnp.float32)),
        in_specs=[vmem] * 8,
        out_specs=(vmem, vmem),
        scratch_shapes=[pltpu.VMEM((B, L, 2 * R), jnp.float32)],
    )(sent, rel_emb, mask, slab_h, wr_w, w_gate, slab_rec, bias_slab)
    return project, weight


if __name__ == "__main__":
    class Opt:
        pass

    opt = Opt()
    opt.att_hidden_size = 32
    opt.rel_dim = 16
    opt.rel_num = 10
    opt.rnn_hidden_size = 16
    opt.label_num = 5
    opt.max_len = 8
    opt.dropout_rate = 0.1   # unused in forward()

    B, L = 2, opt.max_len
    key = jax.random.PRNGKey(0)
    k_sent, k_rel, k_params = jax.random.split(key, 3)

    sent = jax.random.normal(k_sent, (B, L, opt.att_hidden_size), jnp.float32)
    rel = jax.random.randint(k_rel, (B,), 0, opt.rel_num)
    sen_len = jnp.array([L, 5], jnp.int32)
    mask = (jnp.arange(L)[None, :] < sen_len[:, None]).astype(jnp.float32)

    params = init_params(k_params, opt)
    project, weight = decoder_forward(params, sent, rel, mask, sen_len, opt)
    jax.block_until_ready((project, weight))

    assert project.shape == (B, L, opt.label_num)
    assert weight.shape == (B, L)
    assert bool(jnp.all(jnp.isfinite(project))) and bool(jnp.all(jnp.isfinite(weight)))
    print("KERNEL_OK")
</pallas_src>

<mosaic_0001>
module attributes {stable_mosaic.version = 11 : i64} {
  func.func @decoder_kernel(%arg0: memref<2x8x32xf32, #tpu.memory_space<vmem>>, %arg1: memref<2x16xf32, #tpu.memory_space<vmem>>, %arg2: memref<2x8xf32, #tpu.memory_space<vmem>>, %arg3: memref<32x352xf32, #tpu.memory_space<vmem>>, %arg4: memref<16x32xf32, #tpu.memory_space<vmem>>, %arg5: memref<64x32xf32, #tpu.memory_space<vmem>>, %arg6: memref<32x133xf32, #tpu.memory_space<vmem>>, %arg7: memref<1x422xf32, #tpu.memory_space<vmem>>, %arg8: memref<2x8x5xf32, #tpu.memory_space<vmem>>, %arg9: memref<2x8xf32, #tpu.memory_space<vmem>>, %arg10: memref<2x8x32xf32, #tpu.memory_space<vmem>>) attributes {dimension_semantics = [], scalar_prefetch = 0 : i64, scratch_operands = 1 : i64, tpu.core_type = #tpu.core_type<tc>} {
    %c0 = arith.constant 0 : index
    %c0_0 = arith.constant 0 : index
    %c0_1 = arith.constant 0 : index
    %0 = vector.load %arg0[%c0, %c0_0, %c0_1] : memref<2x8x32xf32, #tpu.memory_space<vmem>>, vector<2x8x32xf32>
    %c0_2 = arith.constant 0 : index
    %c0_3 = arith.constant 0 : index
    %1 = vector.load %arg2[%c0_2, %c0_3] : memref<2x8xf32, #tpu.memory_space<vmem>>, vector<2x8xf32>
    %c0_4 = arith.constant 0 : index
    %c0_5 = arith.constant 0 : index
    %2 = vector.load %arg1[%c0_4, %c0_5] : memref<2x16xf32, #tpu.memory_space<vmem>>, vector<2x16xf32>
    %cst = arith.constant 5.000000e-01 : f32
    %3 = vector.broadcast %cst : f32 to vector<2x8xf32>
    %4 = arith.cmpf ogt, %1, %3 : vector<2x8xf32>
    %c0_6 = arith.constant 0 : index
    %c0_7 = arith.constant 0 : index
    %5 = vector.load %arg7[%c0_6, %c0_7] : memref<1x422xf32, #tpu.memory_space<vmem>>, vector<1x128xf32>
    %c0_8 = arith.constant 0 : index
    %c128 = arith.constant 128 : index
    %6 = vector.load %arg7[%c0_8, %c128] : memref<1x422xf32, #tpu.memory_space<vmem>>, vector<1x32xf32>
    %c0_9 = arith.constant 0 : index
    %c160 = arith.constant 160 : index
    %7 = vector.load %arg7[%c0_9, %c160] : memref<1x422xf32, #tpu.memory_space<vmem>>, vector<1x32xf32>
    %c0_10 = arith.constant 0 : index
    %c192 = arith.constant 192 : index
    %8 = vector.load %arg7[%c0_10, %c192] : memref<1x422xf32, #tpu.memory_space<vmem>>, vector<1x32xf32>
    %c0_11 = arith.constant 0 : index
    %c224 = arith.constant 224 : index
    %9 = vector.load %arg7[%c0_11, %c224] : memref<1x422xf32, #tpu.memory_space<vmem>>, vector<1x32xf32>
    %c0_12 = arith.constant 0 : index
    %c256 = arith.constant 256 : index
    %10 = vector.load %arg7[%c0_12, %c256] : memref<1x422xf32, #tpu.memory_space<vmem>>, vector<1x32xf32>
    %c0_13 = arith.constant 0 : index
    %c288 = arith.constant 288 : index
    %11 = vector.load %arg7[%c0_13, %c288] : memref<1x422xf32, #tpu.memory_space<vmem>>, vector<1x64xf32>
    %c0_14 = arith.constant 0 : index
    %c352 = arith.constant 352 : index
    %12 = vector.load %arg7[%c0_14, %c352] : memref<1x422xf32, #tpu.memory_space<vmem>>, vector<1x32xf32>
    %c0_15 = arith.constant 0 : index
    %c384 = arith.constant 384 : index
    %13 = vector.load %arg7[%c0_15, %c384] : memref<1x422xf32, #tpu.memory_space<vmem>>, vector<1x32xf32>
    %c0_16 = arith.constant 0 : index
    %c416 = arith.constant 416 : index
    %14 = vector.load %arg7[%c0_16, %c416] : memref<1x422xf32, #tpu.memory_space<vmem>>, vector<1x1xf32>
    %c0_17 = arith.constant 0 : index
    %c417 = arith.constant 417 : index
    %15 = vector.load %arg7[%c0_17, %c417] : memref<1x422xf32, #tpu.memory_space<vmem>>, vector<1x5xf32>
    %cst_18 = arith.constant dense<0.000000e+00> : vector<2xf32>
    %16 = vector.multi_reduction <add>, %1, %cst_18 [1] : vector<2x8xf32> to vector<2xf32>
    %17 = vector.shape_cast %16 : vector<2xf32> to vector<2x1xf32>
    %18 = vector.shape_cast %1 : vector<2x8xf32> to vector<2x8x1xf32>
    %19 = vector.broadcast %18 : vector<2x8x1xf32> to vector<2x8x32xf32>
    %20 = arith.mulf %19, %0 : vector<2x8x32xf32>
    %cst_19 = arith.constant dense<0.000000e+00> : vector<2x32xf32>
    %21 = vector.multi_reduction <add>, %20, %cst_19 [1] : vector<2x8x32xf32> to vector<2x32xf32>
    %22 = vector.broadcast %17 : vector<2x1xf32> to vector<2x32xf32>
    %23 = arith.divf %21, %22 : vector<2x32xf32>
    %c0_20 = arith.constant 0 : index
    %c0_21 = arith.constant 0 : index
    %24 = vector.load %arg4[%c0_20, %c0_21] : memref<16x32xf32, #tpu.memory_space<vmem>>, vector<16x32xf32>
    %cst_22 = arith.constant dense<0.000000e+00> : vector<2x32xf32>
    %25 = tpu.matmul %2, %24, %cst_22 {dimension_numbers = #tpu.dot_dimension_numbers<[1], [0], [0], [1], [0, 0, 1, 1], [], []>} : vector<2x16xf32>, vector<16x32xf32>, vector<2x32xf32> -> vector<2x32xf32>
    %26 = vector.broadcast %12 : vector<1x32xf32> to vector<2x32xf32>
    %27 = arith.addf %25, %26 : vector<2x32xf32>
    %28 = vector.shape_cast %0 : vector<2x8x32xf32> to vector<16x32xf32>
    %c0_23 = arith.constant 0 : index
    %c128_24 = arith.constant 128 : index
    %29 = vector.load %arg3[%c0_23, %c128_24] : memref<32x352xf32, #tpu.memory_space<vmem>>, vector<32x64xf32>
    %cst_25 = arith.constant dense<0.000000e+00> : vector<16x64xf32>
    %30 = tpu.matmul %28, %29, %cst_25 {dimension_numbers = #tpu.dot_dimension_numbers<[1], [0], [0], [1], [0, 0, 1, 1], [], []>} : vector<16x32xf32>, vector<32x64xf32>, vector<16x64xf32> -> vector<16x64xf32>
    %31 = vector.extract_strided_slice %30 {offsets = [0, 0], sizes = [16, 32], strides = [1, 1]} : vector<16x64xf32> to vector<16x32xf32>
    %32 = vector.broadcast %6 : vector<1x32xf32> to vector<16x32xf32>
    %33 = arith.addf %31, %32 : vector<16x32xf32>
    %34 = vector.extract_strided_slice %30 {offsets = [0, 32], sizes = [16, 32], strides = [1, 1]} : vector<16x64xf32> to vector<16x32xf32>
    %c0_26 = arith.constant 0 : index
    %c192_27 = arith.constant 192 : index
    %35 = vector.load %arg3[%c0_26, %c192_27] : memref<32x352xf32, #tpu.memory_space<vmem>>, vector<32x64xf32>
    %cst_28 = arith.constant dense<0.000000e+00> : vector<2x64xf32>
    %36 = tpu.matmul %23, %35, %cst_28 {dimension_numbers = #tpu.dot_dimension_numbers<[1], [0], [0], [1], [0, 0, 1, 1], [], []>} : vector<2x32xf32>, vector<32x64xf32>, vector<2x64xf32> -> vector<2x64xf32>
    %37 = vector.extract_strided_slice %36 {offsets = [0, 0], sizes = [2, 32], strides = [1, 1]} : vector<2x64xf32> to vector<2x32xf32>
    %38 = vector.broadcast %8 : vector<1x32xf32> to vector<2x32xf32>
    %39 = arith.addf %37, %38 : vector<2x32xf32>
    %40 = vector.extract_strided_slice %36 {offsets = [0, 32], sizes = [2, 32], strides = [1, 1]} : vector<2x64xf32> to vector<2x32xf32>
    %41 = vector.broadcast %9 : vector<1x32xf32> to vector<2x32xf32>
    %42 = arith.addf %40, %41 : vector<2x32xf32>
    %43 = vector.shape_cast %33 : vector<16x32xf32> to vector<2x8x32xf32>
    %44 = vector.shape_cast %27 : vector<2x32xf32> to vector<2x1x32xf32>
    %45 = vector.broadcast %44 : vector<2x1x32xf32> to vector<2x8x32xf32>
    %46 = arith.addf %45, %43 : vector<2x8x32xf32>
    %47 = vector.shape_cast %39 : vector<2x32xf32> to vector<2x1x32xf32>
    %48 = vector.broadcast %47 : vector<2x1x32xf32> to vector<2x8x32xf32>
    %49 = arith.addf %46, %48 : vector<2x8x32xf32>
    %50 = math.tanh %49 : vector<2x8x32xf32>
    %51 = vector.shape_cast %13 : vector<1x32xf32> to vector<1x1x32xf32>
    %52 = vector.broadcast %51 : vector<1x1x32xf32> to vector<2x8x32xf32>
    %53 = arith.mulf %50, %52 : vector<2x8x32xf32>
    %cst_29 = arith.constant dense<0.000000e+00> : vector<2x8xf32>
    %54 = vector.multi_reduction <add>, %53, %cst_29 [2] : vector<2x8x32xf32> to vector<2x8xf32>
    %55 = vector.broadcast %14 : vector<1x1xf32> to vector<2x8xf32>
    %56 = arith.addf %54, %55 : vector<2x8xf32>
    %cst_30 = arith.constant -1.000000e+09 : f32
    %57 = vector.broadcast %cst_30 : f32 to vector<2x8xf32>
    %58 = arith.select %4, %56, %57 : vector<2x8xi1>, vector<2x8xf32>
    %cst_31 = arith.constant dense<0xFF800000> : vector<2xf32>
    %59 = vector.multi_reduction <maximumf>, %58, %cst_31 [1] : vector<2x8xf32> to vector<2xf32>
    %60 = vector.shape_cast %59 : vector<2xf32> to vector<2x1xf32>
    %61 = vector.broadcast %60 : vector<2x1xf32> to vector<2x8xf32>
    %62 = arith.subf %58, %61 : vector<2x8xf32>
    %63 = math.exp %62 : vector<2x8xf32>
    %cst_32 = arith.constant dense<0.000000e+00> : vector<2xf32>
    %64 = vector.multi_reduction <add>, %63, %cst_32 [1] : vector<2x8xf32> to vector<2xf32>
    %65 = vector.shape_cast %64 : vector<2xf32> to vector<2x1xf32>
    %66 = vector.broadcast %65 : vector<2x1xf32> to vector<2x8xf32>
    %67 = arith.divf %63, %66 : vector<2x8xf32>
    %c0_33 = arith.constant 0 : index
    %c0_34 = arith.constant 0 : index
    %68 = vector.load %arg9[%c0_33, %c0_34] : memref<2x8xf32, #tpu.memory_space<vmem>>, vector<2x8xf32>
    tpu.vector_store %arg9[%c0_33, %c0_34], %67 {strides = array<i32>} : memref<2x8xf32, #tpu.memory_space<vmem>>, vector<2x8xf32>,
    %69 = vector.shape_cast %67 : vector<2x8xf32> to vector<2x8x1xf32>
    %70 = vector.broadcast %69 : vector<2x8x1xf32> to vector<2x8x32xf32>
    %71 = arith.mulf %70, %43 : vector<2x8x32xf32>
    %cst_35 = arith.constant dense<0.000000e+00> : vector<2x32xf32>
    %72 = vector.multi_reduction <add>, %71, %cst_35 [1] : vector<2x8x32xf32> to vector<2x32xf32>
    %c0_36 = arith.constant 0 : index
    %c256_37 = arith.constant 256 : index
    %73 = vector.load %arg3[%c0_36, %c256_37] : memref<32x352xf32, #tpu.memory_space<vmem>>, vector<32x96xf32>
    %cst_38 = arith.constant dense<0.000000e+00> : vector<2x96xf32>
    %74 = tpu.matmul %72, %73, %cst_38 {dimension_numbers = #tpu.dot_dimension_numbers<[1], [0], [0], [1], [0, 0, 1, 1], [], []>} : vector<2x32xf32>, vector<32x96xf32>, vector<2x96xf32> -> vector<2x96xf32>
    %75 = vector.extract_strided_slice %74 {offsets = [0, 0], sizes = [2, 32], strides = [1, 1]} : vector<2x96xf32> to vector<2x32xf32>
    %76 = vector.broadcast %10 : vector<1x32xf32> to vector<2x32xf32>
    %77 = arith.addf %75, %76 : vector<2x32xf32>
    %78 = vector.extract_strided_slice %74 {offsets = [0, 32], sizes = [2, 64], strides = [1, 1]} : vector<2x96xf32> to vector<2x64xf32>
    %79 = vector.broadcast %11 : vector<1x64xf32> to vector<2x64xf32>
    %80 = arith.addf %78, %79 : vector<2x64xf32>
    %81 = tpu.concatenate %42, %77 in 1 : vector<2x32xf32>, vector<2x32xf32> -> vector<2x64xf32>
    %cst_39 = arith.constant 0.000000e+00 : f32
    %82 = vector.broadcast %cst_39 : f32 to vector<2x64xf32>
    %83 = arith.subf %82, %81 : vector<2x64xf32>
    %84 = math.exp %83 : vector<2x64xf32>
    %cst_40 = arith.constant 1.000000e+00 : f32
    %85 = vector.broadcast %cst_40 : f32 to vector<2x64xf32>
    %86 = arith.addf %85, %84 : vector<2x64xf32>
    %cst_41 = arith.constant 1.000000e+00 : f32
    %87 = vector.broadcast %cst_41 : f32 to vector<2x64xf32>
    %88 = arith.divf %87, %86 : vector<2x64xf32>
    %89 = math.tanh %80 : vector<2x64xf32>
    %90 = arith.mulf %88, %89 : vector<2x64xf32>
    %c0_42 = arith.constant 0 : index
    %c0_43 = arith.constant 0 : index
    %91 = vector.load %arg5[%c0_42, %c0_43] : memref<64x32xf32, #tpu.memory_space<vmem>>, vector<64x32xf32>
    %cst_44 = arith.constant dense<0.000000e+00> : vector<2x32xf32>
    %92 = tpu.matmul %90, %91, %cst_44 {dimension_numbers = #tpu.dot_dimension_numbers<[1], [0], [0], [1], [0, 0, 1, 1], [], []>} : vector<2x64xf32>, vector<64x32xf32>, vector<2x32xf32> -> vector<2x32xf32>
    %93 = vector.shape_cast %34 : vector<16x32xf32> to vector<2x8x32xf32>
    %94 = vector.broadcast %7 : vector<1x32xf32> to vector<2x32xf32>
    %95 = arith.addf %92, %94 : vector<2x32xf32>
    %96 = vector.shape_cast %95 : vector<2x32xf32> to vector<2x1x32xf32>
    %97 = vector.broadcast %96 : vector<2x1x32xf32> to vector<2x8x32xf32>
    %98 = arith.addf %93, %97 : vector<2x8x32xf32>
    %99 = vector.shape_cast %98 : vector<2x8x32xf32> to vector<16x32xf32>
    %c0_45 = arith.constant 0 : index
    %c0_46 = arith.constant 0 : index
    %100 = vector.load %arg3[%c0_45, %c0_46] : memref<32x352xf32, #tpu.memory_space<vmem>>, vector<32x128xf32>
    %cst_47 = arith.constant dense<0.000000e+00> : vector<16x128xf32>
    %101 = tpu.matmul %99, %100, %cst_47 {dimension_numbers = #tpu.dot_dimension_numbers<[1], [0], [0], [1], [0, 0, 1, 1], [], []>} : vector<16x32xf32>, vector<32x128xf32>, vector<16x128xf32> -> vector<16x128xf32>
    %102 = vector.broadcast %5 : vector<1x128xf32> to vector<16x128xf32>
    %103 = arith.addf %101, %102 : vector<16x128xf32>
    %104 = vector.shape_cast %103 : vector<16x128xf32> to vector<2x8x128xf32>
    %c0_48 = arith.constant 0 : index
    %c0_49 = arith.constant 0 : index
    %105 = vector.load %arg6[%c0_48, %c0_49] : memref<32x133xf32, #tpu.memory_space<vmem>>, vector<32x128xf32>
    %c0_50 = arith.constant 0 : index
    %c128_51 = arith.constant 128 : index
    %106 = vector.load %arg6[%c0_50, %c128_51] : memref<32x133xf32, #tpu.memory_space<vmem>>, vector<32x5xf32>
    %cst_52 = arith.constant 0.000000e+00 : f32
    %107 = vector.broadcast %cst_52 : f32 to vector<2x32xf32>
    %cst_53 = arith.constant 0.000000e+00 : f32
    %108 = vector.broadcast %cst_53 : f32 to vector<2x32xf32>
    %109 = vector.extract_strided_slice %4 {offsets = [0, 0], sizes = [2, 1], strides = [1, 1]} : vector<2x8xi1> to vector<2x1xi1>
    %110 = vector.extract_strided_slice %4 {offsets = [0, 7], sizes = [2, 1], strides = [1, 1]} : vector<2x8xi1> to vector<2x1xi1>
    %cst_54 = arith.constant dense<0.000000e+00> : vector<2x128xf32>
    %111 = tpu.matmul %107, %105, %cst_54 {dimension_numbers = #tpu.dot_dimension_numbers<[1], [0], [0], [1], [0, 0, 1, 1], [], []>} : vector<2x32xf32>, vector<32x128xf32>, vector<2x128xf32> -> vector<2x128xf32>
    %112 = vector.extract_strided_slice %104 {offsets = [0, 0, 0], sizes = [2, 1, 64], strides = [1, 1, 1]} : vector<2x8x128xf32> to vector<2x1x64xf32>
    %113 = vector.shape_cast %112 : vector<2x1x64xf32> to vector<2x64xf32>
    %114 = vector.extract_strided_slice %111 {offsets = [0, 0], sizes = [2, 64], strides = [1, 1]} : vector<2x128xf32> to vector<2x64xf32>
    %115 = arith.addf %113, %114 : vector<2x64xf32>
    %116 = vector.extract_strided_slice %104 {offsets = [0, 7, 64], sizes = [2, 1, 64], strides = [1, 1, 1]} : vector<2x8x128xf32> to vector<2x1x64xf32>
    %117 = vector.shape_cast %116 : vector<2x1x64xf32> to vector<2x64xf32>
    %118 = vector.extract_strided_slice %111 {offsets = [0, 64], sizes = [2, 64], strides = [1, 1]} : vector<2x128xf32> to vector<2x64xf32>
    %119 = arith.addf %117, %118 : vector<2x64xf32>
    %120 = vector.extract_strided_slice %107 {offsets = [0, 0], sizes = [2, 16], strides = [1, 1]} : vector<2x32xf32> to vector<2x16xf32>
    %121 = vector.extract_strided_slice %107 {offsets = [0, 16], sizes = [2, 16], strides = [1, 1]} : vector<2x32xf32> to vector<2x16xf32>
    %122 = vector.extract_strided_slice %108 {offsets = [0, 0], sizes = [2, 16], strides = [1, 1]} : vector<2x32xf32> to vector<2x16xf32>
    %123 = vector.extract_strided_slice %108 {offsets = [0, 16], sizes = [2, 16], strides = [1, 1]} : vector<2x32xf32> to vector<2x16xf32>
    %124 = vector.extract_strided_slice %115 {offsets = [0, 0], sizes = [2, 16], strides = [1, 1]} : vector<2x64xf32> to vector<2x16xf32>
    %cst_55 = arith.constant 0.000000e+00 : f32
    %125 = vector.broadcast %cst_55 : f32 to vector<2x16xf32>
    %126 = arith.subf %125, %124 : vector<2x16xf32>
    %127 = math.exp %126 : vector<2x16xf32>
    %cst_56 = arith.constant 1.000000e+00 : f32
    %128 = vector.broadcast %cst_56 : f32 to vector<2x16xf32>
    %129 = arith.addf %128, %127 : vector<2x16xf32>
    %cst_57 = arith.constant 1.000000e+00 : f32
    %130 = vector.broadcast %cst_57 : f32 to vector<2x16xf32>
    %131 = arith.divf %130, %129 : vector<2x16xf32>
    %132 = vector.extract_strided_slice %115 {offsets = [0, 16], sizes = [2, 16], strides = [1, 1]} : vector<2x64xf32> to vector<2x16xf32>
    %cst_58 = arith.constant 0.000000e+00 : f32
    %133 = vector.broadcast %cst_58 : f32 to vector<2x16xf32>
    %134 = arith.subf %133, %132 : vector<2x16xf32>
    %135 = math.exp %134 : vector<2x16xf32>
    %cst_59 = arith.constant 1.000000e+00 : f32
    %136 = vector.broadcast %cst_59 : f32 to vector<2x16xf32>
    %137 = arith.addf %136, %135 : vector<2x16xf32>
    %cst_60 = arith.constant 1.000000e+00 : f32
    %138 = vector.broadcast %cst_60 : f32 to vector<2x16xf32>
    %139 = arith.divf %138, %137 : vector<2x16xf32>
    %140 = vector.extract_strided_slice %115 {offsets = [0, 32], sizes = [2, 16], strides = [1, 1]} : vector<2x64xf32> to vector<2x16xf32>
    %141 = math.tanh %140 : vector<2x16xf32>
    %142 = vector.extract_strided_slice %115 {offsets = [0, 48], sizes = [2, 16], strides = [1, 1]} : vector<2x64xf32> to vector<2x16xf32>
    %cst_61 = arith.constant 0.000000e+00 : f32
    %143 = vector.broadcast %cst_61 : f32 to vector<2x16xf32>
    %144 = arith.subf %143, %142 : vector<2x16xf32>
    %145 = math.exp %144 : vector<2x16xf32>
    %cst_62 = arith.constant 1.000000e+00 : f32
    %146 = vector.broadcast %cst_62 : f32 to vector<2x16xf32>
    %147 = arith.addf %146, %145 : vector<2x16xf32>
    %cst_63 = arith.constant 1.000000e+00 : f32
    %148 = vector.broadcast %cst_63 : f32 to vector<2x16xf32>
    %149 = arith.divf %148, %147 : vector<2x16xf32>
    %150 = arith.mulf %139, %122 : vector<2x16xf32>
    %151 = arith.mulf %131, %141 : vector<2x16xf32>
    %152 = arith.addf %150, %151 : vector<2x16xf32>
    %153 = math.tanh %152 : vector<2x16xf32>
    %154 = arith.mulf %149, %153 : vector<2x16xf32>
    %155 = vector.extract_strided_slice %119 {offsets = [0, 0], sizes = [2, 16], strides = [1, 1]} : vector<2x64xf32> to vector<2x16xf32>
    %cst_64 = arith.constant 0.000000e+00 : f32
    %156 = vector.broadcast %cst_64 : f32 to vector<2x16xf32>
    %157 = arith.subf %156, %155 : vector<2x16xf32>
    %158 = math.exp %157 : vector<2x16xf32>
    %cst_65 = arith.constant 1.000000e+00 : f32
    %159 = vector.broadcast %cst_65 : f32 to vector<2x16xf32>
    %160 = arith.addf %159, %158 : vector<2x16xf32>
    %cst_66 = arith.constant 1.000000e+00 : f32
    %161 = vector.broadcast %cst_66 : f32 to vector<2x16xf32>
    %162 = arith.divf %161, %160 : vector<2x16xf32>
    %163 = vector.extract_strided_slice %119 {offsets = [0, 16], sizes = [2, 16], strides = [1, 1]} : vector<2x64xf32> to vector<2x16xf32>
    %cst_67 = arith.constant 0.000000e+00 : f32
    %164 = vector.broadcast %cst_67 : f32 to vector<2x16xf32>
    %165 = arith.subf %164, %163 : vector<2x16xf32>
    %166 = math.exp %165 : vector<2x16xf32>
    %cst_68 = arith.constant 1.000000e+00 : f32
    %167 = vector.broadcast %cst_68 : f32 to vector<2x16xf32>
    %168 = arith.addf %167, %166 : vector<2x16xf32>
    %cst_69 = arith.constant 1.000000e+00 : f32
    %169 = vector.broadcast %cst_69 : f32 to vector<2x16xf32>
    %170 = arith.divf %169, %168 : vector<2x16xf32>
    %171 = vector.extract_strided_slice %119 {offsets = [0, 32], sizes = [2, 16], strides = [1, 1]} : vector<2x64xf32> to vector<2x16xf32>
    %172 = math.tanh %171 : vector<2x16xf32>
    %173 = vector.extract_strided_slice %119 {offsets = [0, 48], sizes = [2, 16], strides = [1, 1]} : vector<2x64xf32> to vector<2x16xf32>
    %cst_70 = arith.constant 0.000000e+00 : f32
    %174 = vector.broadcast %cst_70 : f32 to vector<2x16xf32>
    %175 = arith.subf %174, %173 : vector<2x16xf32>
    %176 = math.exp %175 : vector<2x16xf32>
    %cst_71 = arith.constant 1.000000e+00 : f32
    %177 = vector.broadcast %cst_71 : f32 to vector<2x16xf32>
    %178 = arith.addf %177, %176 : vector<2x16xf32>
    %cst_72 = arith.constant 1.000000e+00 : f32
    %179 = vector.broadcast %cst_72 : f32 to vector<2x16xf32>
    %180 = arith.divf %179, %178 : vector<2x16xf32>
    %181 = arith.mulf %170, %123 : vector<2x16xf32>
    %182 = arith.mulf %162, %172 : vector<2x16xf32>
    %183 = arith.addf %181, %182 : vector<2x16xf32>
    %184 = math.tanh %183 : vector<2x16xf32>
    %185 = arith.mulf %180, %184 : vector<2x16xf32>
    %186 = vector.shape_cast %109 : vector<2x1xi1> to vector<2x1xi1>
    %187 = vector.broadcast %186 : vector<2x1xi1> to vector<2x16xi1>
    %188 = arith.select %187, %154, %120 : vector<2x16xi1>, vector<2x16xf32>
    %189 = vector.shape_cast %110 : vector<2x1xi1> to vector<2x1xi1>
    %190 = vector.broadcast %189 : vector<2x1xi1> to vector<2x16xi1>
    %191 = arith.select %190, %185, %121 : vector<2x16xi1>, vector<2x16xf32>
    %192 = tpu.concatenate %188, %191 in 1 : vector<2x16xf32>, vector<2x16xf32> -> vector<2x32xf32>
    %193 = vector.shape_cast %109 : vector<2x1xi1> to vector<2x1xi1>
    %194 = vector.broadcast %193 : vector<2x1xi1> to vector<2x16xi1>
    %195 = arith.select %194, %152, %122 : vector<2x16xi1>, vector<2x16xf32>
    %196 = vector.shape_cast %110 : vector<2x1xi1> to vector<2x1xi1>
    %197 = vector.broadcast %196 : vector<2x1xi1> to vector<2x16xi1>
    %198 = arith.select %197, %183, %123 : vector<2x16xi1>, vector<2x16xf32>
    %199 = tpu.concatenate %195, %198 in 1 : vector<2x16xf32>, vector<2x16xf32> -> vector<2x32xf32>
    %cst_73 = arith.constant 0.000000e+00 : f32
    %200 = vector.shape_cast %109 : vector<2x1xi1> to vector<2x1xi1>
    %201 = vector.broadcast %200 : vector<2x1xi1> to vector<2x16xi1>
    %202 = vector.broadcast %cst_73 : f32 to vector<2x16xf32>
    %203 = arith.select %201, %154, %202 : vector<2x16xi1>, vector<2x16xf32>
    %204 = vector.shape_cast %203 : vector<2x16xf32> to vector<2x1x16xf32>
    %c0_74 = arith.constant 0 : index
    %c0_75 = arith.constant 0 : index
    %c0_76 = arith.constant 0 : index
    %205 = vector.load %arg10[%c0_74, %c0_75, %c0_76] : memref<2x8x32xf32, #tpu.memory_space<vmem>>, vector<2x1x16xf32>
    tpu.vector_store %arg10[%c0_74, %c0_75, %c0_76], %204 {strides = array<i32>} : memref<2x8x32xf32, #tpu.memory_space<vmem>>, vector<2x1x16xf32>,
    %cst_77 = arith.constant 0.000000e+00 : f32
    %206 = vector.shape_cast %110 : vector<2x1xi1> to vector<2x1xi1>
    %207 = vector.broadcast %206 : vector<2x1xi1> to vector<2x16xi1>
    %208 = vector.broadcast %cst_77 : f32 to vector<2x16xf32>
    %209 = arith.select %207, %185, %208 : vector<2x16xi1>, vector<2x16xf32>
    %210 = vector.shape_cast %209 : vector<2x16xf32> to vector<2x1x16xf32>
    %c0_78 = arith.constant 0 : index
    %c7 = arith.constant 7 : index
    %c16 = arith.constant 16 : index
    %211 = vector.load %arg10[%c0_78, %c7, %c16] : memref<2x8x32xf32, #tpu.memory_space<vmem>>, vector<2x1x16xf32>
    tpu.vector_store %arg10[%c0_78, %c7, %c16], %210 {strides = array<i32>} : memref<2x8x32xf32, #tpu.memory_space<vmem>>, vector<2x1x16xf32>,
    %212 = vector.extract_strided_slice %4 {offsets = [0, 1], sizes = [2, 1], strides = [1, 1]} : vector<2x8xi1> to vector<2x1xi1>
    %213 = vector.extract_strided_slice %4 {offsets = [0, 6], sizes = [2, 1], strides = [1, 1]} : vector<2x8xi1> to vector<2x1xi1>
    %cst_79 = arith.constant dense<0.000000e+00> : vector<2x128xf32>
    %214 = tpu.matmul %192, %105, %cst_79 {dimension_numbers = #tpu.dot_dimension_numbers<[1], [0], [0], [1], [0, 0, 1, 1], [], []>} : vector<2x32xf32>, vector<32x128xf32>, vector<2x128xf32> -> vector<2x128xf32>
    %215 = vector.extract_strided_slice %104 {offsets = [0, 1, 0], sizes = [2, 1, 64], strides = [1, 1, 1]} : vector<2x8x128xf32> to vector<2x1x64xf32>
    %216 = vector.shape_cast %215 : vector<2x1x64xf32> to vector<2x64xf32>
    %217 = vector.extract_strided_slice %214 {offsets = [0, 0], sizes = [2, 64], strides = [1, 1]} : vector<2x128xf32> to vector<2x64xf32>
    %218 = arith.addf %216, %217 : vector<2x64xf32>
    %219 = vector.extract_strided_slice %104 {offsets = [0, 6, 64], sizes = [2, 1, 64], strides = [1, 1, 1]} : vector<2x8x128xf32> to vector<2x1x64xf32>
    %220 = vector.shape_cast %219 : vector<2x1x64xf32> to vector<2x64xf32>
    %221 = vector.extract_strided_slice %214 {offsets = [0, 64], sizes = [2, 64], strides = [1, 1]} : vector<2x128xf32> to vector<2x64xf32>
    %222 = arith.addf %220, %221 : vector<2x64xf32>
    %223 = vector.extract_strided_slice %192 {offsets = [0, 0], sizes = [2, 16], strides = [1, 1]} : vector<2x32xf32> to vector<2x16xf32>
    %224 = vector.extract_strided_slice %192 {offsets = [0, 16], sizes = [2, 16], strides = [1, 1]} : vector<2x32xf32> to vector<2x16xf32>
    %225 = vector.extract_strided_slice %199 {offsets = [0, 0], sizes = [2, 16], strides = [1, 1]} : vector<2x32xf32> to vector<2x16xf32>
    %226 = vector.extract_strided_slice %199 {offsets = [0, 16], sizes = [2, 16], strides = [1, 1]} : vector<2x32xf32> to vector<2x16xf32>
    %227 = vector.extract_strided_slice %218 {offsets = [0, 0], sizes = [2, 16], strides = [1, 1]} : vector<2x64xf32> to vector<2x16xf32>
    %cst_80 = arith.constant 0.000000e+00 : f32
    %228 = vector.broadcast %cst_80 : f32 to vector<2x16xf32>
    %229 = arith.subf %228, %227 : vector<2x16xf32>
    %230 = math.exp %229 : vector<2x16xf32>
    %cst_81 = arith.constant 1.000000e+00 : f32
    %231 = vector.broadcast %cst_81 : f32 to vector<2x16xf32>
    %232 = arith.addf %231, %230 : vector<2x16xf32>
    %cst_82 = arith.constant 1.000000e+00 : f32
    %233 = vector.broadcast %cst_82 : f32 to vector<2x16xf32>
    %234 = arith.divf %233, %232 : vector<2x16xf32>
    %235 = vector.extract_strided_slice %218 {offsets = [0, 16], sizes = [2, 16], strides = [1, 1]} : vector<2x64xf32> to vector<2x16xf32>
    %cst_83 = arith.constant 0.000000e+00 : f32
    %236 = vector.broadcast %cst_83 : f32 to vector<2x16xf32>
    %237 = arith.subf %236, %235 : vector<2x16xf32>
    %238 = math.exp %237 : vector<2x16xf32>
    %cst_84 = arith.constant 1.000000e+00 : f32
    %239 = vector.broadcast %cst_84 : f32 to vector<2x16xf32>
    %240 = arith.addf %239, %238 : vector<2x16xf32>
    %cst_85 = arith.constant 1.000000e+00 : f32
    %241 = vector.broadcast %cst_85 : f32 to vector<2x16xf32>
    %242 = arith.divf %241, %240 : vector<2x16xf32>
    %243 = vector.extract_strided_slice %218 {offsets = [0, 32], sizes = [2, 16], strides = [1, 1]} : vector<2x64xf32> to vector<2x16xf32>
    %244 = math.tanh %243 : vector<2x16xf32>
    %245 = vector.extract_strided_slice %218 {offsets = [0, 48], sizes = [2, 16], strides = [1, 1]} : vector<2x64xf32> to vector<2x16xf32>
    %cst_86 = arith.constant 0.000000e+00 : f32
    %246 = vector.broadcast %cst_86 : f32 to vector<2x16xf32>
    %247 = arith.subf %246, %245 : vector<2x16xf32>
    %248 = math.exp %247 : vector<2x16xf32>
    %cst_87 = arith.constant 1.000000e+00 : f32
    %249 = vector.broadcast %cst_87 : f32 to vector<2x16xf32>
    %250 = arith.addf %249, %248 : vector<2x16xf32>
    %cst_88 = arith.constant 1.000000e+00 : f32
    %251 = vector.broadcast %cst_88 : f32 to vector<2x16xf32>
    %252 = arith.divf %251, %250 : vector<2x16xf32>
    %253 = arith.mulf %242, %225 : vector<2x16xf32>
    %254 = arith.mulf %234, %244 : vector<2x16xf32>
    %255 = arith.addf %253, %254 : vector<2x16xf32>
    %256 = math.tanh %255 : vector<2x16xf32>
    %257 = arith.mulf %252, %256 : vector<2x16xf32>
    %258 = vector.extract_strided_slice %222 {offsets = [0, 0], sizes = [2, 16], strides = [1, 1]} : vector<2x64xf32> to vector<2x16xf32>
    %cst_89 = arith.constant 0.000000e+00 : f32
    %259 = vector.broadcast %cst_89 : f32 to vector<2x16xf32>
    %260 = arith.subf %259, %258 : vector<2x16xf32>
    %261 = math.exp %260 : vector<2x16xf32>
    %cst_90 = arith.constant 1.000000e+00 : f32
    %262 = vector.broadcast %cst_90 : f32 to vector<2x16xf32>
    %263 = arith.addf %262, %261 : vector<2x16xf32>
    %cst_91 = arith.constant 1.000000e+00 : f32
    %264 = vector.broadcast %cst_91 : f32 to vector<2x16xf32>
    %265 = arith.divf %264, %263 : vector<2x16xf32>
    %266 = vector.extract_strided_slice %222 {offsets = [0, 16], sizes = [2, 16], strides = [1, 1]} : vector<2x64xf32> to vector<2x16xf32>
    %cst_92 = arith.constant 0.000000e+00 : f32
    %267 = vector.broadcast %cst_92 : f32 to vector<2x16xf32>
    %268 = arith.subf %267, %266 : vector<2x16xf32>
    %269 = math.exp %268 : vector<2x16xf32>
    %cst_93 = arith.constant 1.000000e+00 : f32
    %270 = vector.broadcast %cst_93 : f32 to vector<2x16xf32>
    %271 = arith.addf %270, %269 : vector<2x16xf32>
    %cst_94 = arith.constant 1.000000e+00 : f32
    %272 = vector.broadcast %cst_94 : f32 to vector<2x16xf32>
    %273 = arith.divf %272, %271 : vector<2x16xf32>
    %274 = vector.extract_strided_slice %222 {offsets = [0, 32], sizes = [2, 16], strides = [1, 1]} : vector<2x64xf32> to vector<2x16xf32>
    %275 = math.tanh %274 : vector<2x16xf32>
    %276 = vector.extract_strided_slice %222 {offsets = [0, 48], sizes = [2, 16], strides = [1, 1]} : vector<2x64xf32> to vector<2x16xf32>
    %cst_95 = arith.constant 0.000000e+00 : f32
    %277 = vector.broadcast %cst_95 : f32 to vector<2x16xf32>
    %278 = arith.subf %277, %276 : vector<2x16xf32>
    %279 = math.exp %278 : vector<2x16xf32>
    %cst_96 = arith.constant 1.000000e+00 : f32
    %280 = vector.broadcast %cst_96 : f32 to vector<2x16xf32>
    %281 = arith.addf %280, %279 : vector<2x16xf32>
    %cst_97 = arith.constant 1.000000e+00 : f32
    %282 = vector.broadcast %cst_97 : f32 to vector<2x16xf32>
    %283 = arith.divf %282, %281 : vector<2x16xf32>
    %284 = arith.mulf %273, %226 : vector<2x16xf32>
    %285 = arith.mulf %265, %275 : vector<2x16xf32>
    %286 = arith.addf %284, %285 : vector<2x16xf32>
    %287 = math.tanh %286 : vector<2x16xf32>
    %288 = arith.mulf %283, %287 : vector<2x16xf32>
    %289 = vector.shape_cast %212 : vector<2x1xi1> to vector<2x1xi1>
    %290 = vector.broadcast %289 : vector<2x1xi1> to vector<2x16xi1>
    %291 = arith.select %290, %257, %223 : vector<2x16xi1>, vector<2x16xf32>
    %292 = vector.shape_cast %213 : vector<2x1xi1> to vector<2x1xi1>
    %293 = vector.broadcast %292 : vector<2x1xi1> to vector<2x16xi1>
    %294 = arith.select %293, %288, %224 : vector<2x16xi1>, vector<2x16xf32>
    %295 = tpu.concatenate %291, %294 in 1 : vector<2x16xf32>, vector<2x16xf32> -> vector<2x32xf32>
    %296 = vector.shape_cast %212 : vector<2x1xi1> to vector<2x1xi1>
    %297 = vector.broadcast %296 : vector<2x1xi1> to vector<2x16xi1>
    %298 = arith.select %297, %255, %225 : vector<2x16xi1>, vector<2x16xf32>
    %299 = vector.shape_cast %213 : vector<2x1xi1> to vector<2x1xi1>
    %300 = vector.broadcast %299 : vector<2x1xi1> to vector<2x16xi1>
    %301 = arith.select %300, %286, %226 : vector<2x16xi1>, vector<2x16xf32>
    %302 = tpu.concatenate %298, %301 in 1 : vector<2x16xf32>, vector<2x16xf32> -> vector<2x32xf32>
    %cst_98 = arith.constant 0.000000e+00 : f32
    %303 = vector.shape_cast %212 : vector<2x1xi1> to vector<2x1xi1>
    %304 = vector.broadcast %303 : vector<2x1xi1> to vector<2x16xi1>
    %305 = vector.broadcast %cst_98 : f32 to vector<2x16xf32>
    %306 = arith.select %304, %257, %305 : vector<2x16xi1>, vector<2x16xf32>
    %307 = vector.shape_cast %306 : vector<2x16xf32> to vector<2x1x16xf32>
    %c0_99 = arith.constant 0 : index
    %c1 = arith.constant 1 : index
    %c0_100 = arith.constant 0 : index
    %308 = vector.load %arg10[%c0_99, %c1, %c0_100] : memref<2x8x32xf32, #tpu.memory_space<vmem>>, vector<2x1x16xf32>
    tpu.vector_store %arg10[%c0_99, %c1, %c0_100], %307 {strides = array<i32>} : memref<2x8x32xf32, #tpu.memory_space<vmem>>, vector<2x1x16xf32>,
    %cst_101 = arith.constant 0.000000e+00 : f32
    %309 = vector.shape_cast %213 : vector<2x1xi1> to vector<2x1xi1>
    %310 = vector.broadcast %309 : vector<2x1xi1> to vector<2x16xi1>
    %311 = vector.broadcast %cst_101 : f32 to vector<2x16xf32>
    %312 = arith.select %310, %288, %311 : vector<2x16xi1>, vector<2x16xf32>
    %313 = vector.shape_cast %312 : vector<2x16xf32> to vector<2x1x16xf32>
    %c0_102 = arith.constant 0 : index
    %c6 = arith.constant 6 : index
    %c16_103 = arith.constant 16 : index
    %314 = vector.load %arg10[%c0_102, %c6, %c16_103] : memref<2x8x32xf32, #tpu.memory_space<vmem>>, vector<2x1x16xf32>
    tpu.vector_store %arg10[%c0_102, %c6, %c16_103], %313 {strides = array<i32>} : memref<2x8x32xf32, #tpu.memory_space<vmem>>, vector<2x1x16xf32>,
    %315 = vector.extract_strided_slice %4 {offsets = [0, 2], sizes = [2, 1], strides = [1, 1]} : vector<2x8xi1> to vector<2x1xi1>
    %316 = vector.extract_strided_slice %4 {offsets = [0, 5], sizes = [2, 1], strides = [1, 1]} : vector<2x8xi1> to vector<2x1xi1>
    %cst_104 = arith.constant dense<0.000000e+00> : vector<2x128xf32>
    %317 = tpu.matmul %295, %105, %cst_104 {dimension_numbers = #tpu.dot_dimension_numbers<[1], [0], [0], [1], [0, 0, 1, 1], [], []>} : vector<2x32xf32>, vector<32x128xf32>, vector<2x128xf32> -> vector<2x128xf32>
    %318 = vector.extract_strided_slice %104 {offsets = [0, 2, 0], sizes = [2, 1, 64], strides = [1, 1, 1]} : vector<2x8x128xf32> to vector<2x1x64xf32>
    %319 = vector.shape_cast %318 : vector<2x1x64xf32> to vector<2x64xf32>
    %320 = vector.extract_strided_slice %317 {offsets = [0, 0], sizes = [2, 64], strides = [1, 1]} : vector<2x128xf32> to vector<2x64xf32>
    %321 = arith.addf %319, %320 : vector<2x64xf32>
    %322 = vector.extract_strided_slice %104 {offsets = [0, 5, 64], sizes = [2, 1, 64], strides = [1, 1, 1]} : vector<2x8x128xf32> to vector<2x1x64xf32>
    %323 = vector.shape_cast %322 : vector<2x1x64xf32> to vector<2x64xf32>
    %324 = vector.extract_strided_slice %317 {offsets = [0, 64], sizes = [2, 64], strides = [1, 1]} : vector<2x128xf32> to vector<2x64xf32>
    %325 = arith.addf %323, %324 : vector<2x64xf32>
    %326 = vector.extract_strided_slice %295 {offsets = [0, 0], sizes = [2, 16], strides = [1, 1]} : vector<2x32xf32> to vector<2x16xf32>
    %327 = vector.extract_strided_slice %295 {offsets = [0, 16], sizes = [2, 16], strides = [1, 1]} : vector<2x32xf32> to vector<2x16xf32>
    %328 = vector.extract_strided_slice %302 {offsets = [0, 0], sizes = [2, 16], strides = [1, 1]} : vector<2x32xf32> to vector<2x16xf32>
    %329 = vector.extract_strided_slice %302 {offsets = [0, 16], sizes = [2, 16], strides = [1, 1]} : vector<2x32xf32> to vector<2x16xf32>
    %330 = vector.extract_strided_slice %321 {offsets = [0, 0], sizes = [2, 16], strides = [1, 1]} : vector<2x64xf32> to vector<2x16xf32>
    %cst_105 = arith.constant 0.000000e+00 : f32
    %331 = vector.broadcast %cst_105 : f32 to vector<2x16xf32>
    %332 = arith.subf %331, %330 : vector<2x16xf32>
    %333 = math.exp %332 : vector<2x16xf32>
    %cst_106 = arith.constant 1.000000e+00 : f32
    %334 = vector.broadcast %cst_106 : f32 to vector<2x16xf32>
    %335 = arith.addf %334, %333 : vector<2x16xf32>
    %cst_107 = arith.constant 1.000000e+00 : f32
    %336 = vector.broadcast %cst_107 : f32 to vector<2x16xf32>
    %337 = arith.divf %336, %335 : vector<2x16xf32>
    %338 = vector.extract_strided_slice %321 {offsets = [0, 16], sizes = [2, 16], strides = [1, 1]} : vector<2x64xf32> to vector<2x16xf32>
    %cst_108 = arith.constant 0.000000e+00 : f32
    %339 = vector.broadcast %cst_108 : f32 to vector<2x16xf32>
    %340 = arith.subf %339, %338 : vector<2x16xf32>
    %341 = math.exp %340 : vector<2x16xf32>
    %cst_109 = arith.constant 1.000000e+00 : f32
    %342 = vector.broadcast %cst_109 : f32 to vector<2x16xf32>
    %343 = arith.addf %342, %341 : vector<2x16xf32>
    %cst_110 = arith.constant 1.000000e+00 : f32
    %344 = vector.broadcast %cst_110 : f32 to vector<2x16xf32>
    %345 = arith.divf %344, %343 : vector<2x16xf32>
    %346 = vector.extract_strided_slice %321 {offsets = [0, 32], sizes = [2, 16], strides = [1, 1]} : vector<2x64xf32> to vector<2x16xf32>
    %347 = math.tanh %346 : vector<2x16xf32>
    %348 = vector.extract_strided_slice %321 {offsets = [0, 48], sizes = [2, 16], strides = [1, 1]} : vector<2x64xf32> to vector<2x16xf32>
    %cst_111 = arith.constant 0.000000e+00 : f32
    %349 = vector.broadcast %cst_111 : f32 to vector<2x16xf32>
    %350 = arith.subf %349, %348 : vector<2x16xf32>
    %351 = math.exp %350 : vector<2x16xf32>
    %cst_112 = arith.constant 1.000000e+00 : f32
    %352 = vector.broadcast %cst_112 : f32 to vector<2x16xf32>
    %353 = arith.addf %352, %351 : vector<2x16xf32>
    %cst_113 = arith.constant 1.000000e+00 : f32
    %354 = vector.broadcast %cst_113 : f32 to vector<2x16xf32>
    %355 = arith.divf %354, %353 : vector<2x16xf32>
    %356 = arith.mulf %345, %328 : vector<2x16xf32>
    %357 = arith.mulf %337, %347 : vector<2x16xf32>
    %358 = arith.addf %356, %357 : vector<2x16xf32>
    %359 = math.tanh %358 : vector<2x16xf32>
    %360 = arith.mulf %355, %359 : vector<2x16xf32>
    %361 = vector.extract_strided_slice %325 {offsets = [0, 0], sizes = [2, 16], strides = [1, 1]} : vector<2x64xf32> to vector<2x16xf32>
    %cst_114 = arith.constant 0.000000e+00 : f32
    %362 = vector.broadcast %cst_114 : f32 to vector<2x16xf32>
    %363 = arith.subf %362, %361 : vector<2x16xf32>
    %364 = math.exp %363 : vector<2x16xf32>
    %cst_115 = arith.constant 1.000000e+00 : f32
    %365 = vector.broadcast %cst_115 : f32 to vector<2x16xf32>
    %366 = arith.addf %365, %364 : vector<2x16xf32>
    %cst_116 = arith.constant 1.000000e+00 : f32
    %367 = vector.broadcast %cst_116 : f32 to vector<2x16xf32>
    %368 = arith.divf %367, %366 : vector<2x16xf32>
    %369 = vector.extract_strided_slice %325 {offsets = [0, 16], sizes = [2, 16], strides = [1, 1]} : vector<2x64xf32> to vector<2x16xf32>
    %cst_117 = arith.constant 0.000000e+00 : f32
    %370 = vector.broadcast %cst_117 : f32 to vector<2x16xf32>
    %371 = arith.subf %370, %369 : vector<2x16xf32>
    %372 = math.exp %371 : vector<2x16xf32>
    %cst_118 = arith.constant 1.000000e+00 : f32
    %373 = vector.broadcast %cst_118 : f32 to vector<2x16xf32>
    %374 = arith.addf %373, %372 : vector<2x16xf32>
    %cst_119 = arith.constant 1.000000e+00 : f32
    %375 = vector.broadcast %cst_119 : f32 to vector<2x16xf32>
    %376 = arith.divf %375, %374 : vector<2x16xf32>
    %377 = vector.extract_strided_slice %325 {offsets = [0, 32], sizes = [2, 16], strides = [1, 1]} : vector<2x64xf32> to vector<2x16xf32>
    %378 = math.tanh %377 : vector<2x16xf32>
    %379 = vector.extract_strided_slice %325 {offsets = [0, 48], sizes = [2, 16], strides = [1, 1]} : vector<2x64xf32> to vector<2x16xf32>
    %cst_120 = arith.constant 0.000000e+00 : f32
    %380 = vector.broadcast %cst_120 : f32 to vector<2x16xf32>
    %381 = arith.subf %380, %379 : vector<2x16xf32>
    %382 = math.exp %381 : vector<2x16xf32>
    %cst_121 = arith.constant 1.000000e+00 : f32
    %383 = vector.broadcast %cst_121 : f32 to vector<2x16xf32>
    %384 = arith.addf %383, %382 : vector<2x16xf32>
    %cst_122 = arith.constant 1.000000e+00 : f32
    %385 = vector.broadcast %cst_122 : f32 to vector<2x16xf32>
    %386 = arith.divf %385, %384 : vector<2x16xf32>
    %387 = arith.mulf %376, %329 : vector<2x16xf32>
    %388 = arith.mulf %368, %378 : vector<2x16xf32>
    %389 = arith.addf %387, %388 : vector<2x16xf32>
    %390 = math.tanh %389 : vector<2x16xf32>
    %391 = arith.mulf %386, %390 : vector<2x16xf32>
    %392 = vector.shape_cast %315 : vector<2x1xi1> to vector<2x1xi1>
    %393 = vector.broadcast %392 : vector<2x1xi1> to vector<2x16xi1>
    %394 = arith.select %393, %360, %326 : vector<2x16xi1>, vector<2x16xf32>
    %395 = vector.shape_cast %316 : vector<2x1xi1> to vector<2x1xi1>
    %396 = vector.broadcast %395 : vector<2x1xi1> to vector<2x16xi1>
    %397 = arith.select %396, %391, %327 : vector<2x16xi1>, vector<2x16xf32>
    %398 = tpu.concatenate %394, %397 in 1 : vector<2x16xf32>, vector<2x16xf32> -> vector<2x32xf32>
    %399 = vector.shape_cast %315 : vector<2x1xi1> to vector<2x1xi1>
    %400 = vector.broadcast %399 : vector<2x1xi1> to vector<2x16xi1>
    %401 = arith.select %400, %358, %328 : vector<2x16xi1>, vector<2x16xf32>
    %402 = vector.shape_cast %316 : vector<2x1xi1> to vector<2x1xi1>
    %403 = vector.broadcast %402 : vector<2x1xi1> to vector<2x16xi1>
    %404 = arith.select %403, %389, %329 : vector<2x16xi1>, vector<2x16xf32>
    %405 = tpu.concatenate %401, %404 in 1 : vector<2x16xf32>, vector<2x16xf32> -> vector<2x32xf32>
    %cst_123 = arith.constant 0.000000e+00 : f32
    %406 = vector.shape_cast %315 : vector<2x1xi1> to vector<2x1xi1>
    %407 = vector.broadcast %406 : vector<2x1xi1> to vector<2x16xi1>
    %408 = vector.broadcast %cst_123 : f32 to vector<2x16xf32>
    %409 = arith.select %407, %360, %408 : vector<2x16xi1>, vector<2x16xf32>
    %410 = vector.shape_cast %409 : vector<2x16xf32> to vector<2x1x16xf32>
    %c0_124 = arith.constant 0 : index
    %c2 = arith.constant 2 : index
    %c0_125 = arith.constant 0 : index
    %411 = vector.load %arg10[%c0_124, %c2, %c0_125] : memref<2x8x32xf32, #tpu.memory_space<vmem>>, vector<2x1x16xf32>
    tpu.vector_store %arg10[%c0_124, %c2, %c0_125], %410 {strides = array<i32>} : memref<2x8x32xf32, #tpu.memory_space<vmem>>, vector<2x1x16xf32>,
    %cst_126 = arith.constant 0.000000e+00 : f32
    %412 = vector.shape_cast %316 : vector<2x1xi1> to vector<2x1xi1>
    %413 = vector.broadcast %412 : vector<2x1xi1> to vector<2x16xi1>
    %414 = vector.broadcast %cst_126 : f32 to vector<2x16xf32>
    %415 = arith.select %413, %391, %414 : vector<2x16xi1>, vector<2x16xf32>
    %416 = vector.shape_cast %415 : vector<2x16xf32> to vector<2x1x16xf32>
    %c0_127 = arith.constant 0 : index
    %c5 = arith.constant 5 : index
    %c16_128 = arith.constant 16 : index
    %417 = vector.load %arg10[%c0_127, %c5, %c16_128] : memref<2x8x32xf32, #tpu.memory_space<vmem>>, vector<2x1x16xf32>
    tpu.vector_store %arg10[%c0_127, %c5, %c16_128], %416 {strides = array<i32>} : memref<2x8x32xf32, #tpu.memory_space<vmem>>, vector<2x1x16xf32>,
    %418 = vector.extract_strided_slice %4 {offsets = [0, 3], sizes = [2, 1], strides = [1, 1]} : vector<2x8xi1> to vector<2x1xi1>
    %419 = vector.extract_strided_slice %4 {offsets = [0, 4], sizes = [2, 1], strides = [1, 1]} : vector<2x8xi1> to vector<2x1xi1>
    %cst_129 = arith.constant dense<0.000000e+00> : vector<2x128xf32>
    %420 = tpu.matmul %398, %105, %cst_129 {dimension_numbers = #tpu.dot_dimension_numbers<[1], [0], [0], [1], [0, 0, 1, 1], [], []>} : vector<2x32xf32>, vector<32x128xf32>, vector<2x128xf32> -> vector<2x128xf32>
    %421 = vector.extract_strided_slice %104 {offsets = [0, 3, 0], sizes = [2, 1, 64], strides = [1, 1, 1]} : vector<2x8x128xf32> to vector<2x1x64xf32>
    %422 = vector.shape_cast %421 : vector<2x1x64xf32> to vector<2x64xf32>
    %423 = vector.extract_strided_slice %420 {offsets = [0, 0], sizes = [2, 64], strides = [1, 1]} : vector<2x128xf32> to vector<2x64xf32>
    %424 = arith.addf %422, %423 : vector<2x64xf32>
    %425 = vector.extract_strided_slice %104 {offsets = [0, 4, 64], sizes = [2, 1, 64], strides = [1, 1, 1]} : vector<2x8x128xf32> to vector<2x1x64xf32>
    %426 = vector.shape_cast %425 : vector<2x1x64xf32> to vector<2x64xf32>
    %427 = vector.extract_strided_slice %420 {offsets = [0, 64], sizes = [2, 64], strides = [1, 1]} : vector<2x128xf32> to vector<2x64xf32>
    %428 = arith.addf %426, %427 : vector<2x64xf32>
    %429 = vector.extract_strided_slice %398 {offsets = [0, 0], sizes = [2, 16], strides = [1, 1]} : vector<2x32xf32> to vector<2x16xf32>
    %430 = vector.extract_strided_slice %398 {offsets = [0, 16], sizes = [2, 16], strides = [1, 1]} : vector<2x32xf32> to vector<2x16xf32>
    %431 = vector.extract_strided_slice %405 {offsets = [0, 0], sizes = [2, 16], strides = [1, 1]} : vector<2x32xf32> to vector<2x16xf32>
    %432 = vector.extract_strided_slice %405 {offsets = [0, 16], sizes = [2, 16], strides = [1, 1]} : vector<2x32xf32> to vector<2x16xf32>
    %433 = vector.extract_strided_slice %424 {offsets = [0, 0], sizes = [2, 16], strides = [1, 1]} : vector<2x64xf32> to vector<2x16xf32>
    %cst_130 = arith.constant 0.000000e+00 : f32
    %434 = vector.broadcast %cst_130 : f32 to vector<2x16xf32>
    %435 = arith.subf %434, %433 : vector<2x16xf32>
    %436 = math.exp %435 : vector<2x16xf32>
    %cst_131 = arith.constant 1.000000e+00 : f32
    %437 = vector.broadcast %cst_131 : f32 to vector<2x16xf32>
    %438 = arith.addf %437, %436 : vector<2x16xf32>
    %cst_132 = arith.constant 1.000000e+00 : f32
    %439 = vector.broadcast %cst_132 : f32 to vector<2x16xf32>
    %440 = arith.divf %439, %438 : vector<2x16xf32>
    %441 = vector.extract_strided_slice %424 {offsets = [0, 16], sizes = [2, 16], strides = [1, 1]} : vector<2x64xf32> to vector<2x16xf32>
    %cst_133 = arith.constant 0.000000e+00 : f32
    %442 = vector.broadcast %cst_133 : f32 to vector<2x16xf32>
    %443 = arith.subf %442, %441 : vector<2x16xf32>
    %444 = math.exp %443 : vector<2x16xf32>
    %cst_134 = arith.constant 1.000000e+00 : f32
    %445 = vector.broadcast %cst_134 : f32 to vector<2x16xf32>
    %446 = arith.addf %445, %444 : vector<2x16xf32>
    %cst_135 = arith.constant 1.000000e+00 : f32
    %447 = vector.broadcast %cst_135 : f32 to vector<2x16xf32>
    %448 = arith.divf %447, %446 : vector<2x16xf32>
    %449 = vector.extract_strided_slice %424 {offsets = [0, 32], sizes = [2, 16], strides = [1, 1]} : vector<2x64xf32> to vector<2x16xf32>
    %450 = math.tanh %449 : vector<2x16xf32>
    %451 = vector.extract_strided_slice %424 {offsets = [0, 48], sizes = [2, 16], strides = [1, 1]} : vector<2x64xf32> to vector<2x16xf32>
    %cst_136 = arith.constant 0.000000e+00 : f32
    %452 = vector.broadcast %cst_136 : f32 to vector<2x16xf32>
    %453 = arith.subf %452, %451 : vector<2x16xf32>
    %454 = math.exp %453 : vector<2x16xf32>
    %cst_137 = arith.constant 1.000000e+00 : f32
    %455 = vector.broadcast %cst_137 : f32 to vector<2x16xf32>
    %456 = arith.addf %455, %454 : vector<2x16xf32>
    %cst_138 = arith.constant 1.000000e+00 : f32
    %457 = vector.broadcast %cst_138 : f32 to vector<2x16xf32>
    %458 = arith.divf %457, %456 : vector<2x16xf32>
    %459 = arith.mulf %448, %431 : vector<2x16xf32>
    %460 = arith.mulf %440, %450 : vector<2x16xf32>
    %461 = arith.addf %459, %460 : vector<2x16xf32>
    %462 = math.tanh %461 : vector<2x16xf32>
    %463 = arith.mulf %458, %462 : vector<2x16xf32>
    %464 = vector.extract_strided_slice %428 {offsets = [0, 0], sizes = [2, 16], strides = [1, 1]} : vector<2x64xf32> to vector<2x16xf32>
    %cst_139 = arith.constant 0.000000e+00 : f32
    %465 = vector.broadcast %cst_139 : f32 to vector<2x16xf32>
    %466 = arith.subf %465, %464 : vector<2x16xf32>
    %467 = math.exp %466 : vector<2x16xf32>
    %cst_140 = arith.constant 1.000000e+00 : f32
    %468 = vector.broadcast %cst_140 : f32 to vector<2x16xf32>
    %469 = arith.addf %468, %467 : vector<2x16xf32>
    %cst_141 = arith.constant 1.000000e+00 : f32
    %470 = vector.broadcast %cst_141 : f32 to vector<2x16xf32>
    %471 = arith.divf %470, %469 : vector<2x16xf32>
    %472 = vector.extract_strided_slice %428 {offsets = [0, 16], sizes = [2, 16], strides = [1, 1]} : vector<2x64xf32> to vector<2x16xf32>
    %cst_142 = arith.constant 0.000000e+00 : f32
    %473 = vector.broadcast %cst_142 : f32 to vector<2x16xf32>
    %474 = arith.subf %473, %472 : vector<2x16xf32>
    %475 = math.exp %474 : vector<2x16xf32>
    %cst_143 = arith.constant 1.000000e+00 : f32
    %476 = vector.broadcast %cst_143 : f32 to vector<2x16xf32>
    %477 = arith.addf %476, %475 : vector<2x16xf32>
    %cst_144 = arith.constant 1.000000e+00 : f32
    %478 = vector.broadcast %cst_144 : f32 to vector<2x16xf32>
    %479 = arith.divf %478, %477 : vector<2x16xf32>
    %480 = vector.extract_strided_slice %428 {offsets = [0, 32], sizes = [2, 16], strides = [1, 1]} : vector<2x64xf32> to vector<2x16xf32>
    %481 = math.tanh %480 : vector<2x16xf32>
    %482 = vector.extract_strided_slice %428 {offsets = [0, 48], sizes = [2, 16], strides = [1, 1]} : vector<2x64xf32> to vector<2x16xf32>
    %cst_145 = arith.constant 0.000000e+00 : f32
    %483 = vector.broadcast %cst_145 : f32 to vector<2x16xf32>
    %484 = arith.subf %483, %482 : vector<2x16xf32>
    %485 = math.exp %484 : vector<2x16xf32>
    %cst_146 = arith.constant 1.000000e+00 : f32
    %486 = vector.broadcast %cst_146 : f32 to vector<2x16xf32>
    %487 = arith.addf %486, %485 : vector<2x16xf32>
    %cst_147 = arith.constant 1.000000e+00 : f32
    %488 = vector.broadcast %cst_147 : f32 to vector<2x16xf32>
    %489 = arith.divf %488, %487 : vector<2x16xf32>
    %490 = arith.mulf %479, %432 : vector<2x16xf32>
    %491 = arith.mulf %471, %481 : vector<2x16xf32>
    %492 = arith.addf %490, %491 : vector<2x16xf32>
    %493 = math.tanh %492 : vector<2x16xf32>
    %494 = arith.mulf %489, %493 : vector<2x16xf32>
    %495 = vector.shape_cast %418 : vector<2x1xi1> to vector<2x1xi1>
    %496 = vector.broadcast %495 : vector<2x1xi1> to vector<2x16xi1>
    %497 = arith.select %496, %463, %429 : vector<2x16xi1>, vector<2x16xf32>
    %498 = vector.shape_cast %419 : vector<2x1xi1> to vector<2x1xi1>
    %499 = vector.broadcast %498 : vector<2x1xi1> to vector<2x16xi1>
    %500 = arith.select %499, %494, %430 : vector<2x16xi1>, vector<2x16xf32>
    %501 = tpu.concatenate %497, %500 in 1 : vector<2x16xf32>, vector<2x16xf32> -> vector<2x32xf32>
    %502 = vector.shape_cast %418 : vector<2x1xi1> to vector<2x1xi1>
    %503 = vector.broadcast %502 : vector<2x1xi1> to vector<2x16xi1>
    %504 = arith.select %503, %461, %431 : vector<2x16xi1>, vector<2x16xf32>
    %505 = vector.shape_cast %419 : vector<2x1xi1> to vector<2x1xi1>
    %506 = vector.broadcast %505 : vector<2x1xi1> to vector<2x16xi1>
    %507 = arith.select %506, %492, %432 : vector<2x16xi1>, vector<2x16xf32>
    %508 = tpu.concatenate %504, %507 in 1 : vector<2x16xf32>, vector<2x16xf32> -> vector<2x32xf32>
    %cst_148 = arith.constant 0.000000e+00 : f32
    %509 = vector.shape_cast %418 : vector<2x1xi1> to vector<2x1xi1>
    %510 = vector.broadcast %509 : vector<2x1xi1> to vector<2x16xi1>
    %511 = vector.broadcast %cst_148 : f32 to vector<2x16xf32>
    %512 = arith.select %510, %463, %511 : vector<2x16xi1>, vector<2x16xf32>
    %513 = vector.shape_cast %512 : vector<2x16xf32> to vector<2x1x16xf32>
    %c0_149 = arith.constant 0 : index
    %c3 = arith.constant 3 : index
    %c0_150 = arith.constant 0 : index
    %514 = vector.load %arg10[%c0_149, %c3, %c0_150] : memref<2x8x32xf32, #tpu.memory_space<vmem>>, vector<2x1x16xf32>
    tpu.vector_store %arg10[%c0_149, %c3, %c0_150], %513 {strides = array<i32>} : memref<2x8x32xf32, #tpu.memory_space<vmem>>, vector<2x1x16xf32>,
    %cst_151 = arith.constant 0.000000e+00 : f32
    %515 = vector.shape_cast %419 : vector<2x1xi1> to vector<2x1xi1>
    %516 = vector.broadcast %515 : vector<2x1xi1> to vector<2x16xi1>
    %517 = vector.broadcast %cst_151 : f32 to vector<2x16xf32>
    %518 = arith.select %516, %494, %517 : vector<2x16xi1>, vector<2x16xf32>
    %519 = vector.shape_cast %518 : vector<2x16xf32> to vector<2x1x16xf32>
    %c0_152 = arith.constant 0 : index
    %c4 = arith.constant 4 : index
    %c16_153 = arith.constant 16 : index
    %520 = vector.load %arg10[%c0_152, %c4, %c16_153] : memref<2x8x32xf32, #tpu.memory_space<vmem>>, vector<2x1x16xf32>
    tpu.vector_store %arg10[%c0_152, %c4, %c16_153], %519 {strides = array<i32>} : memref<2x8x32xf32, #tpu.memory_space<vmem>>, vector<2x1x16xf32>,
    %521 = vector.extract_strided_slice %4 {offsets = [0, 4], sizes = [2, 1], strides = [1, 1]} : vector<2x8xi1> to vector<2x1xi1>
    %522 = vector.extract_strided_slice %4 {offsets = [0, 3], sizes = [2, 1], strides = [1, 1]} : vector<2x8xi1> to vector<2x1xi1>
    %cst_154 = arith.constant dense<0.000000e+00> : vector<2x128xf32>
    %523 = tpu.matmul %501, %105, %cst_154 {dimension_numbers = #tpu.dot_dimension_numbers<[1], [0], [0], [1], [0, 0, 1, 1], [], []>} : vector<2x32xf32>, vector<32x128xf32>, vector<2x128xf32> -> vector<2x128xf32>
    %524 = vector.extract_strided_slice %104 {offsets = [0, 4, 0], sizes = [2, 1, 64], strides = [1, 1, 1]} : vector<2x8x128xf32> to vector<2x1x64xf32>
    %525 = vector.shape_cast %524 : vector<2x1x64xf32> to vector<2x64xf32>
    %526 = vector.extract_strided_slice %523 {offsets = [0, 0], sizes = [2, 64], strides = [1, 1]} : vector<2x128xf32> to vector<2x64xf32>
    %527 = arith.addf %525, %526 : vector<2x64xf32>
    %528 = vector.extract_strided_slice %104 {offsets = [0, 3, 64], sizes = [2, 1, 64], strides = [1, 1, 1]} : vector<2x8x128xf32> to vector<2x1x64xf32>
    %529 = vector.shape_cast %528 : vector<2x1x64xf32> to vector<2x64xf32>
    %530 = vector.extract_strided_slice %523 {offsets = [0, 64], sizes = [2, 64], strides = [1, 1]} : vector<2x128xf32> to vector<2x64xf32>
    %531 = arith.addf %529, %530 : vector<2x64xf32>
    %532 = vector.extract_strided_slice %501 {offsets = [0, 0], sizes = [2, 16], strides = [1, 1]} : vector<2x32xf32> to vector<2x16xf32>
    %533 = vector.extract_strided_slice %501 {offsets = [0, 16], sizes = [2, 16], strides = [1, 1]} : vector<2x32xf32> to vector<2x16xf32>
    %534 = vector.extract_strided_slice %508 {offsets = [0, 0], sizes = [2, 16], strides = [1, 1]} : vector<2x32xf32> to vector<2x16xf32>
    %535 = vector.extract_strided_slice %508 {offsets = [0, 16], sizes = [2, 16], strides = [1, 1]} : vector<2x32xf32> to vector<2x16xf32>
    %536 = vector.extract_strided_slice %527 {offsets = [0, 0], sizes = [2, 16], strides = [1, 1]} : vector<2x64xf32> to vector<2x16xf32>
    %cst_155 = arith.constant 0.000000e+00 : f32
    %537 = vector.broadcast %cst_155 : f32 to vector<2x16xf32>
    %538 = arith.subf %537, %536 : vector<2x16xf32>
    %539 = math.exp %538 : vector<2x16xf32>
    %cst_156 = arith.constant 1.000000e+00 : f32
    %540 = vector.broadcast %cst_156 : f32 to vector<2x16xf32>
    %541 = arith.addf %540, %539 : vector<2x16xf32>
    %cst_157 = arith.constant 1.000000e+00 : f32
    %542 = vector.broadcast %cst_157 : f32 to vector<2x16xf32>
    %543 = arith.divf %542, %541 : vector<2x16xf32>
    %544 = vector.extract_strided_slice %527 {offsets = [0, 16], sizes = [2, 16], strides = [1, 1]} : vector<2x64xf32> to vector<2x16xf32>
    %cst_158 = arith.constant 0.000000e+00 : f32
    %545 = vector.broadcast %cst_158 : f32 to vector<2x16xf32>
    %546 = arith.subf %545, %544 : vector<2x16xf32>
    %547 = math.exp %546 : vector<2x16xf32>
    %cst_159 = arith.constant 1.000000e+00 : f32
    %548 = vector.broadcast %cst_159 : f32 to vector<2x16xf32>
    %549 = arith.addf %548, %547 : vector<2x16xf32>
    %cst_160 = arith.constant 1.000000e+00 : f32
    %550 = vector.broadcast %cst_160 : f32 to vector<2x16xf32>
    %551 = arith.divf %550, %549 : vector<2x16xf32>
    %552 = vector.extract_strided_slice %527 {offsets = [0, 32], sizes = [2, 16], strides = [1, 1]} : vector<2x64xf32> to vector<2x16xf32>
    %553 = math.tanh %552 : vector<2x16xf32>
    %554 = vector.extract_strided_slice %527 {offsets = [0, 48], sizes = [2, 16], strides = [1, 1]} : vector<2x64xf32> to vector<2x16xf32>
    %cst_161 = arith.constant 0.000000e+00 : f32
    %555 = vector.broadcast %cst_161 : f32 to vector<2x16xf32>
    %556 = arith.subf %555, %554 : vector<2x16xf32>
    %557 = math.exp %556 : vector<2x16xf32>
    %cst_162 = arith.constant 1.000000e+00 : f32
    %558 = vector.broadcast %cst_162 : f32 to vector<2x16xf32>
    %559 = arith.addf %558, %557 : vector<2x16xf32>
    %cst_163 = arith.constant 1.000000e+00 : f32
    %560 = vector.broadcast %cst_163 : f32 to vector<2x16xf32>
    %561 = arith.divf %560, %559 : vector<2x16xf32>
    %562 = arith.mulf %551, %534 : vector<2x16xf32>
    %563 = arith.mulf %543, %553 : vector<2x16xf32>
    %564 = arith.addf %562, %563 : vector<2x16xf32>
    %565 = math.tanh %564 : vector<2x16xf32>
    %566 = arith.mulf %561, %565 : vector<2x16xf32>
    %567 = vector.extract_strided_slice %531 {offsets = [0, 0], sizes = [2, 16], strides = [1, 1]} : vector<2x64xf32> to vector<2x16xf32>
    %cst_164 = arith.constant 0.000000e+00 : f32
    %568 = vector.broadcast %cst_164 : f32 to vector<2x16xf32>
    %569 = arith.subf %568, %567 : vector<2x16xf32>
    %570 = math.exp %569 : vector<2x16xf32>
    %cst_165 = arith.constant 1.000000e+00 : f32
    %571 = vector.broadcast %cst_165 : f32 to vector<2x16xf32>
    %572 = arith.addf %571, %570 : vector<2x16xf32>
    %cst_166 = arith.constant 1.000000e+00 : f32
    %573 = vector.broadcast %cst_166 : f32 to vector<2x16xf32>
    %574 = arith.divf %573, %572 : vector<2x16xf32>
    %575 = vector.extract_strided_slice %531 {offsets = [0, 16], sizes = [2, 16], strides = [1, 1]} : vector<2x64xf32> to vector<2x16xf32>
    %cst_167 = arith.constant 0.000000e+00 : f32
    %576 = vector.broadcast %cst_167 : f32 to vector<2x16xf32>
    %577 = arith.subf %576, %575 : vector<2x16xf32>
    %578 = math.exp %577 : vector<2x16xf32>
    %cst_168 = arith.constant 1.000000e+00 : f32
    %579 = vector.broadcast %cst_168 : f32 to vector<2x16xf32>
    %580 = arith.addf %579, %578 : vector<2x16xf32>
    %cst_169 = arith.constant 1.000000e+00 : f32
    %581 = vector.broadcast %cst_169 : f32 to vector<2x16xf32>
    %582 = arith.divf %581, %580 : vector<2x16xf32>
    %583 = vector.extract_strided_slice %531 {offsets = [0, 32], sizes = [2, 16], strides = [1, 1]} : vector<2x64xf32> to vector<2x16xf32>
    %584 = math.tanh %583 : vector<2x16xf32>
    %585 = vector.extract_strided_slice %531 {offsets = [0, 48], sizes = [2, 16], strides = [1, 1]} : vector<2x64xf32> to vector<2x16xf32>
    %cst_170 = arith.constant 0.000000e+00 : f32
    %586 = vector.broadcast %cst_170 : f32 to vector<2x16xf32>
    %587 = arith.subf %586, %585 : vector<2x16xf32>
    %588 = math.exp %587 : vector<2x16xf32>
    %cst_171 = arith.constant 1.000000e+00 : f32
    %589 = vector.broadcast %cst_171 : f32 to vector<2x16xf32>
    %590 = arith.addf %589, %588 : vector<2x16xf32>
    %cst_172 = arith.constant 1.000000e+00 : f32
    %591 = vector.broadcast %cst_172 : f32 to vector<2x16xf32>
    %592 = arith.divf %591, %590 : vector<2x16xf32>
    %593 = arith.mulf %582, %535 : vector<2x16xf32>
    %594 = arith.mulf %574, %584 : vector<2x16xf32>
    %595 = arith.addf %593, %594 : vector<2x16xf32>
    %596 = math.tanh %595 : vector<2x16xf32>
    %597 = arith.mulf %592, %596 : vector<2x16xf32>
    %598 = vector.shape_cast %521 : vector<2x1xi1> to vector<2x1xi1>
    %599 = vector.broadcast %598 : vector<2x1xi1> to vector<2x16xi1>
    %600 = arith.select %599, %566, %532 : vector<2x16xi1>, vector<2x16xf32>
    %601 = vector.shape_cast %522 : vector<2x1xi1> to vector<2x1xi1>
    %602 = vector.broadcast %601 : vector<2x1xi1> to vector<2x16xi1>
    %603 = arith.select %602, %597, %533 : vector<2x16xi1>, vector<2x16xf32>
    %604 = tpu.concatenate %600, %603 in 1 : vector<2x16xf32>, vector<2x16xf32> -> vector<2x32xf32>
    %605 = vector.shape_cast %521 : vector<2x1xi1> to vector<2x1xi1>
    %606 = vector.broadcast %605 : vector<2x1xi1> to vector<2x16xi1>
    %607 = arith.select %606, %564, %534 : vector<2x16xi1>, vector<2x16xf32>
    %608 = vector.shape_cast %522 : vector<2x1xi1> to vector<2x1xi1>
    %609 = vector.broadcast %608 : vector<2x1xi1> to vector<2x16xi1>
    %610 = arith.select %609, %595, %535 : vector<2x16xi1>, vector<2x16xf32>
    %611 = tpu.concatenate %607, %610 in 1 : vector<2x16xf32>, vector<2x16xf32> -> vector<2x32xf32>
    %cst_173 = arith.constant 0.000000e+00 : f32
    %612 = vector.shape_cast %521 : vector<2x1xi1> to vector<2x1xi1>
    %613 = vector.broadcast %612 : vector<2x1xi1> to vector<2x16xi1>
    %614 = vector.broadcast %cst_173 : f32 to vector<2x16xf32>
    %615 = arith.select %613, %566, %614 : vector<2x16xi1>, vector<2x16xf32>
    %616 = vector.shape_cast %615 : vector<2x16xf32> to vector<2x1x16xf32>
    %c0_174 = arith.constant 0 : index
    %c4_175 = arith.constant 4 : index
    %c0_176 = arith.constant 0 : index
    %617 = vector.load %arg10[%c0_174, %c4_175, %c0_176] : memref<2x8x32xf32, #tpu.memory_space<vmem>>, vector<2x1x16xf32>
    tpu.vector_store %arg10[%c0_174, %c4_175, %c0_176], %616 {strides = array<i32>} : memref<2x8x32xf32, #tpu.memory_space<vmem>>, vector<2x1x16xf32>,
    %cst_177 = arith.constant 0.000000e+00 : f32
    %618 = vector.shape_cast %522 : vector<2x1xi1> to vector<2x1xi1>
    %619 = vector.broadcast %618 : vector<2x1xi1> to vector<2x16xi1>
    %620 = vector.broadcast %cst_177 : f32 to vector<2x16xf32>
    %621 = arith.select %619, %597, %620 : vector<2x16xi1>, vector<2x16xf32>
    %622 = vector.shape_cast %621 : vector<2x16xf32> to vector<2x1x16xf32>
    %c0_178 = arith.constant 0 : index
    %c3_179 = arith.constant 3 : index
    %c16_180 = arith.constant 16 : index
    %623 = vector.load %arg10[%c0_178, %c3_179, %c16_180] : memref<2x8x32xf32, #tpu.memory_space<vmem>>, vector<2x1x16xf32>
    tpu.vector_store %arg10[%c0_178, %c3_179, %c16_180], %622 {strides = array<i32>} : memref<2x8x32xf32, #tpu.memory_space<vmem>>, vector<2x1x16xf32>,
    %624 = vector.extract_strided_slice %4 {offsets = [0, 5], sizes = [2, 1], strides = [1, 1]} : vector<2x8xi1> to vector<2x1xi1>
    %625 = vector.extract_strided_slice %4 {offsets = [0, 2], sizes = [2, 1], strides = [1, 1]} : vector<2x8xi1> to vector<2x1xi1>
    %cst_181 = arith.constant dense<0.000000e+00> : vector<2x128xf32>
    %626 = tpu.matmul %604, %105, %cst_181 {dimension_numbers = #tpu.dot_dimension_numbers<[1], [0], [0], [1], [0, 0, 1, 1], [], []>} : vector<2x32xf32>, vector<32x128xf32>, vector<2x128xf32> -> vector<2x128xf32>
    %627 = vector.extract_strided_slice %104 {offsets = [0, 5, 0], sizes = [2, 1, 64], strides = [1, 1, 1]} : vector<2x8x128xf32> to vector<2x1x64xf32>
    %628 = vector.shape_cast %627 : vector<2x1x64xf32> to vector<2x64xf32>
    %629 = vector.extract_strided_slice %626 {offsets = [0, 0], sizes = [2, 64], strides = [1, 1]} : vector<2x128xf32> to vector<2x64xf32>
    %630 = arith.addf %628, %629 : vector<2x64xf32>
    %631 = vector.extract_strided_slice %104 {offsets = [0, 2, 64], sizes = [2, 1, 64], strides = [1, 1, 1]} : vector<2x8x128xf32> to vector<2x1x64xf32>
    %632 = vector.shape_cast %631 : vector<2x1x64xf32> to vector<2x64xf32>
    %633 = vector.extract_strided_slice %626 {offsets = [0, 64], sizes = [2, 64], strides = [1, 1]} : vector<2x128xf32> to vector<2x64xf32>
    %634 = arith.addf %632, %633 : vector<2x64xf32>
    %635 = vector.extract_strided_slice %604 {offsets = [0, 0], sizes = [2, 16], strides = [1, 1]} : vector<2x32xf32> to vector<2x16xf32>
    %636 = vector.extract_strided_slice %604 {offsets = [0, 16], sizes = [2, 16], strides = [1, 1]} : vector<2x32xf32> to vector<2x16xf32>
    %637 = vector.extract_strided_slice %611 {offsets = [0, 0], sizes = [2, 16], strides = [1, 1]} : vector<2x32xf32> to vector<2x16xf32>
    %638 = vector.extract_strided_slice %611 {offsets = [0, 16], sizes = [2, 16], strides = [1, 1]} : vector<2x32xf32> to vector<2x16xf32>
    %639 = vector.extract_strided_slice %630 {offsets = [0, 0], sizes = [2, 16], strides = [1, 1]} : vector<2x64xf32> to vector<2x16xf32>
    %cst_182 = arith.constant 0.000000e+00 : f32
    %640 = vector.broadcast %cst_182 : f32 to vector<2x16xf32>
    %641 = arith.subf %640, %639 : vector<2x16xf32>
    %642 = math.exp %641 : vector<2x16xf32>
    %cst_183 = arith.constant 1.000000e+00 : f32
    %643 = vector.broadcast %cst_183 : f32 to vector<2x16xf32>
    %644 = arith.addf %643, %642 : vector<2x16xf32>
    %cst_184 = arith.constant 1.000000e+00 : f32
    %645 = vector.broadcast %cst_184 : f32 to vector<2x16xf32>
    %646 = arith.divf %645, %644 : vector<2x16xf32>
    %647 = vector.extract_strided_slice %630 {offsets = [0, 16], sizes = [2, 16], strides = [1, 1]} : vector<2x64xf32> to vector<2x16xf32>
    %cst_185 = arith.constant 0.000000e+00 : f32
    %648 = vector.broadcast %cst_185 : f32 to vector<2x16xf32>
    %649 = arith.subf %648, %647 : vector<2x16xf32>
    %650 = math.exp %649 : vector<2x16xf32>
    %cst_186 = arith.constant 1.000000e+00 : f32
    %651 = vector.broadcast %cst_186 : f32 to vector<2x16xf32>
    %652 = arith.addf %651, %650 : vector<2x16xf32>
    %cst_187 = arith.constant 1.000000e+00 : f32
    %653 = vector.broadcast %cst_187 : f32 to vector<2x16xf32>
    %654 = arith.divf %653, %652 : vector<2x16xf32>
    %655 = vector.extract_strided_slice %630 {offsets = [0, 32], sizes = [2, 16], strides = [1, 1]} : vector<2x64xf32> to vector<2x16xf32>
    %656 = math.tanh %655 : vector<2x16xf32>
    %657 = vector.extract_strided_slice %630 {offsets = [0, 48], sizes = [2, 16], strides = [1, 1]} : vector<2x64xf32> to vector<2x16xf32>
    %cst_188 = arith.constant 0.000000e+00 : f32
    %658 = vector.broadcast %cst_188 : f32 to vector<2x16xf32>
    %659 = arith.subf %658, %657 : vector<2x16xf32>
    %660 = math.exp %659 : vector<2x16xf32>
    %cst_189 = arith.constant 1.000000e+00 : f32
    %661 = vector.broadcast %cst_189 : f32 to vector<2x16xf32>
    %662 = arith.addf %661, %660 : vector<2x16xf32>
    %cst_190 = arith.constant 1.000000e+00 : f32
    %663 = vector.broadcast %cst_190 : f32 to vector<2x16xf32>
    %664 = arith.divf %663, %662 : vector<2x16xf32>
    %665 = arith.mulf %654, %637 : vector<2x16xf32>
    %666 = arith.mulf %646, %656 : vector<2x16xf32>
    %667 = arith.addf %665, %666 : vector<2x16xf32>
    %668 = math.tanh %667 : vector<2x16xf32>
    %669 = arith.mulf %664, %668 : vector<2x16xf32>
    %670 = vector.extract_strided_slice %634 {offsets = [0, 0], sizes = [2, 16], strides = [1, 1]} : vector<2x64xf32> to vector<2x16xf32>
    %cst_191 = arith.constant 0.000000e+00 : f32
    %671 = vector.broadcast %cst_191 : f32 to vector<2x16xf32>
    %672 = arith.subf %671, %670 : vector<2x16xf32>
    %673 = math.exp %672 : vector<2x16xf32>
    %cst_192 = arith.constant 1.000000e+00 : f32
    %674 = vector.broadcast %cst_192 : f32 to vector<2x16xf32>
    %675 = arith.addf %674, %673 : vector<2x16xf32>
    %cst_193 = arith.constant 1.000000e+00 : f32
    %676 = vector.broadcast %cst_193 : f32 to vector<2x16xf32>
    %677 = arith.divf %676, %675 : vector<2x16xf32>
    %678 = vector.extract_strided_slice %634 {offsets = [0, 16], sizes = [2, 16], strides = [1, 1]} : vector<2x64xf32> to vector<2x16xf32>
    %cst_194 = arith.constant 0.000000e+00 : f32
    %679 = vector.broadcast %cst_194 : f32 to vector<2x16xf32>
    %680 = arith.subf %679, %678 : vector<2x16xf32>
    %681 = math.exp %680 : vector<2x16xf32>
    %cst_195 = arith.constant 1.000000e+00 : f32
    %682 = vector.broadcast %cst_195 : f32 to vector<2x16xf32>
    %683 = arith.addf %682, %681 : vector<2x16xf32>
    %cst_196 = arith.constant 1.000000e+00 : f32
    %684 = vector.broadcast %cst_196 : f32 to vector<2x16xf32>
    %685 = arith.divf %684, %683 : vector<2x16xf32>
    %686 = vector.extract_strided_slice %634 {offsets = [0, 32], sizes = [2, 16], strides = [1, 1]} : vector<2x64xf32> to vector<2x16xf32>
    %687 = math.tanh %686 : vector<2x16xf32>
    %688 = vector.extract_strided_slice %634 {offsets = [0, 48], sizes = [2, 16], strides = [1, 1]} : vector<2x64xf32> to vector<2x16xf32>
    %cst_197 = arith.constant 0.000000e+00 : f32
    %689 = vector.broadcast %cst_197 : f32 to vector<2x16xf32>
    %690 = arith.subf %689, %688 : vector<2x16xf32>
    %691 = math.exp %690 : vector<2x16xf32>
    %cst_198 = arith.constant 1.000000e+00 : f32
    %692 = vector.broadcast %cst_198 : f32 to vector<2x16xf32>
    %693 = arith.addf %692, %691 : vector<2x16xf32>
    %cst_199 = arith.constant 1.000000e+00 : f32
    %694 = vector.broadcast %cst_199 : f32 to vector<2x16xf32>
    %695 = arith.divf %694, %693 : vector<2x16xf32>
    %696 = arith.mulf %685, %638 : vector<2x16xf32>
    %697 = arith.mulf %677, %687 : vector<2x16xf32>
    %698 = arith.addf %696, %697 : vector<2x16xf32>
    %699 = math.tanh %698 : vector<2x16xf32>
    %700 = arith.mulf %695, %699 : vector<2x16xf32>
    %701 = vector.shape_cast %624 : vector<2x1xi1> to vector<2x1xi1>
    %702 = vector.broadcast %701 : vector<2x1xi1> to vector<2x16xi1>
    %703 = arith.select %702, %669, %635 : vector<2x16xi1>, vector<2x16xf32>
    %704 = vector.shape_cast %625 : vector<2x1xi1> to vector<2x1xi1>
    %705 = vector.broadcast %704 : vector<2x1xi1> to vector<2x16xi1>
    %706 = arith.select %705, %700, %636 : vector<2x16xi1>, vector<2x16xf32>
    %707 = tpu.concatenate %703, %706 in 1 : vector<2x16xf32>, vector<2x16xf32> -> vector<2x32xf32>
    %708 = vector.shape_cast %624 : vector<2x1xi1> to vector<2x1xi1>
    %709 = vector.broadcast %708 : vector<2x1xi1> to vector<2x16xi1>
    %710 = arith.select %709, %667, %637 : vector<2x16xi1>, vector<2x16xf32>
    %711 = vector.shape_cast %625 : vector<2x1xi1> to vector<2x1xi1>
    %712 = vector.broadcast %711 : vector<2x1xi1> to vector<2x16xi1>
    %713 = arith.select %712, %698, %638 : vector<2x16xi1>, vector<2x16xf32>
    %714 = tpu.concatenate %710, %713 in 1 : vector<2x16xf32>, vector<2x16xf32> -> vector<2x32xf32>
    %cst_200 = arith.constant 0.000000e+00 : f32
    %715 = vector.shape_cast %624 : vector<2x1xi1> to vector<2x1xi1>
    %716 = vector.broadcast %715 : vector<2x1xi1> to vector<2x16xi1>
    %717 = vector.broadcast %cst_200 : f32 to vector<2x16xf32>
    %718 = arith.select %716, %669, %717 : vector<2x16xi1>, vector<2x16xf32>
    %719 = vector.shape_cast %718 : vector<2x16xf32> to vector<2x1x16xf32>
    %c0_201 = arith.constant 0 : index
    %c5_202 = arith.constant 5 : index
    %c0_203 = arith.constant 0 : index
    %720 = vector.load %arg10[%c0_201, %c5_202, %c0_203] : memref<2x8x32xf32, #tpu.memory_space<vmem>>, vector<2x1x16xf32>
    tpu.vector_store %arg10[%c0_201, %c5_202, %c0_203], %719 {strides = array<i32>} : memref<2x8x32xf32, #tpu.memory_space<vmem>>, vector<2x1x16xf32>,
    %cst_204 = arith.constant 0.000000e+00 : f32
    %721 = vector.shape_cast %625 : vector<2x1xi1> to vector<2x1xi1>
    %722 = vector.broadcast %721 : vector<2x1xi1> to vector<2x16xi1>
    %723 = vector.broadcast %cst_204 : f32 to vector<2x16xf32>
    %724 = arith.select %722, %700, %723 : vector<2x16xi1>, vector<2x16xf32>
    %725 = vector.shape_cast %724 : vector<2x16xf32> to vector<2x1x16xf32>
    %c0_205 = arith.constant 0 : index
    %c2_206 = arith.constant 2 : index
    %c16_207 = arith.constant 16 : index
    %726 = vector.load %arg10[%c0_205, %c2_206, %c16_207] : memref<2x8x32xf32, #tpu.memory_space<vmem>>, vector<2x1x16xf32>
    tpu.vector_store %arg10[%c0_205, %c2_206, %c16_207], %725 {strides = array<i32>} : memref<2x8x32xf32, #tpu.memory_space<vmem>>, vector<2x1x16xf32>,
    %727 = vector.extract_strided_slice %4 {offsets = [0, 6], sizes = [2, 1], strides = [1, 1]} : vector<2x8xi1> to vector<2x1xi1>
    %728 = vector.extract_strided_slice %4 {offsets = [0, 1], sizes = [2, 1], strides = [1, 1]} : vector<2x8xi1> to vector<2x1xi1>
    %cst_208 = arith.constant dense<0.000000e+00> : vector<2x128xf32>
    %729 = tpu.matmul %707, %105, %cst_208 {dimension_numbers = #tpu.dot_dimension_numbers<[1], [0], [0], [1], [0, 0, 1, 1], [], []>} : vector<2x32xf32>, vector<32x128xf32>, vector<2x128xf32> -> vector<2x128xf32>
    %730 = vector.extract_strided_slice %104 {offsets = [0, 6, 0], sizes = [2, 1, 64], strides = [1, 1, 1]} : vector<2x8x128xf32> to vector<2x1x64xf32>
    %731 = vector.shape_cast %730 : vector<2x1x64xf32> to vector<2x64xf32>
    %732 = vector.extract_strided_slice %729 {offsets = [0, 0], sizes = [2, 64], strides = [1, 1]} : vector<2x128xf32> to vector<2x64xf32>
    %733 = arith.addf %731, %732 : vector<2x64xf32>
    %734 = vector.extract_strided_slice %104 {offsets = [0, 1, 64], sizes = [2, 1, 64], strides = [1, 1, 1]} : vector<2x8x128xf32> to vector<2x1x64xf32>
    %735 = vector.shape_cast %734 : vector<2x1x64xf32> to vector<2x64xf32>
    %736 = vector.extract_strided_slice %729 {offsets = [0, 64], sizes = [2, 64], strides = [1, 1]} : vector<2x128xf32> to vector<2x64xf32>
    %737 = arith.addf %735, %736 : vector<2x64xf32>
    %738 = vector.extract_strided_slice %707 {offsets = [0, 0], sizes = [2, 16], strides = [1, 1]} : vector<2x32xf32> to vector<2x16xf32>
    %739 = vector.extract_strided_slice %707 {offsets = [0, 16], sizes = [2, 16], strides = [1, 1]} : vector<2x32xf32> to vector<2x16xf32>
    %740 = vector.extract_strided_slice %714 {offsets = [0, 0], sizes = [2, 16], strides = [1, 1]} : vector<2x32xf32> to vector<2x16xf32>
    %741 = vector.extract_strided_slice %714 {offsets = [0, 16], sizes = [2, 16], strides = [1, 1]} : vector<2x32xf32> to vector<2x16xf32>
    %742 = vector.extract_strided_slice %733 {offsets = [0, 0], sizes = [2, 16], strides = [1, 1]} : vector<2x64xf32> to vector<2x16xf32>
    %cst_209 = arith.constant 0.000000e+00 : f32
    %743 = vector.broadcast %cst_209 : f32 to vector<2x16xf32>
    %744 = arith.subf %743, %742 : vector<2x16xf32>
    %745 = math.exp %744 : vector<2x16xf32>
    %cst_210 = arith.constant 1.000000e+00 : f32
    %746 = vector.broadcast %cst_210 : f32 to vector<2x16xf32>
    %747 = arith.addf %746, %745 : vector<2x16xf32>
    %cst_211 = arith.constant 1.000000e+00 : f32
    %748 = vector.broadcast %cst_211 : f32 to vector<2x16xf32>
    %749 = arith.divf %748, %747 : vector<2x16xf32>
    %750 = vector.extract_strided_slice %733 {offsets = [0, 16], sizes = [2, 16], strides = [1, 1]} : vector<2x64xf32> to vector<2x16xf32>
    %cst_212 = arith.constant 0.000000e+00 : f32
    %751 = vector.broadcast %cst_212 : f32 to vector<2x16xf32>
    %752 = arith.subf %751, %750 : vector<2x16xf32>
    %753 = math.exp %752 : vector<2x16xf32>
    %cst_213 = arith.constant 1.000000e+00 : f32
    %754 = vector.broadcast %cst_213 : f32 to vector<2x16xf32>
    %755 = arith.addf %754, %753 : vector<2x16xf32>
    %cst_214 = arith.constant 1.000000e+00 : f32
    %756 = vector.broadcast %cst_214 : f32 to vector<2x16xf32>
    %757 = arith.divf %756, %755 : vector<2x16xf32>
    %758 = vector.extract_strided_slice %733 {offsets = [0, 32], sizes = [2, 16], strides = [1, 1]} : vector<2x64xf32> to vector<2x16xf32>
    %759 = math.tanh %758 : vector<2x16xf32>
    %760 = vector.extract_strided_slice %733 {offsets = [0, 48], sizes = [2, 16], strides = [1, 1]} : vector<2x64xf32> to vector<2x16xf32>
    %cst_215 = arith.constant 0.000000e+00 : f32
    %761 = vector.broadcast %cst_215 : f32 to vector<2x16xf32>
    %762 = arith.subf %761, %760 : vector<2x16xf32>
    %763 = math.exp %762 : vector<2x16xf32>
    %cst_216 = arith.constant 1.000000e+00 : f32
    %764 = vector.broadcast %cst_216 : f32 to vector<2x16xf32>
    %765 = arith.addf %764, %763 : vector<2x16xf32>
    %cst_217 = arith.constant 1.000000e+00 : f32
    %766 = vector.broadcast %cst_217 : f32 to vector<2x16xf32>
    %767 = arith.divf %766, %765 : vector<2x16xf32>
    %768 = arith.mulf %757, %740 : vector<2x16xf32>
    %769 = arith.mulf %749, %759 : vector<2x16xf32>
    %770 = arith.addf %768, %769 : vector<2x16xf32>
    %771 = math.tanh %770 : vector<2x16xf32>
    %772 = arith.mulf %767, %771 : vector<2x16xf32>
    %773 = vector.extract_strided_slice %737 {offsets = [0, 0], sizes = [2, 16], strides = [1, 1]} : vector<2x64xf32> to vector<2x16xf32>
    %cst_218 = arith.constant 0.000000e+00 : f32
    %774 = vector.broadcast %cst_218 : f32 to vector<2x16xf32>
    %775 = arith.subf %774, %773 : vector<2x16xf32>
    %776 = math.exp %775 : vector<2x16xf32>
    %cst_219 = arith.constant 1.000000e+00 : f32
    %777 = vector.broadcast %cst_219 : f32 to vector<2x16xf32>
    %778 = arith.addf %777, %776 : vector<2x16xf32>
    %cst_220 = arith.constant 1.000000e+00 : f32
    %779 = vector.broadcast %cst_220 : f32 to vector<2x16xf32>
    %780 = arith.divf %779, %778 : vector<2x16xf32>
    %781 = vector.extract_strided_slice %737 {offsets = [0, 16], sizes = [2, 16], strides = [1, 1]} : vector<2x64xf32> to vector<2x16xf32>
    %cst_221 = arith.constant 0.000000e+00 : f32
    %782 = vector.broadcast %cst_221 : f32 to vector<2x16xf32>
    %783 = arith.subf %782, %781 : vector<2x16xf32>
    %784 = math.exp %783 : vector<2x16xf32>
    %cst_222 = arith.constant 1.000000e+00 : f32
    %785 = vector.broadcast %cst_222 : f32 to vector<2x16xf32>
    %786 = arith.addf %785, %784 : vector<2x16xf32>
    %cst_223 = arith.constant 1.000000e+00 : f32
    %787 = vector.broadcast %cst_223 : f32 to vector<2x16xf32>
    %788 = arith.divf %787, %786 : vector<2x16xf32>
    %789 = vector.extract_strided_slice %737 {offsets = [0, 32], sizes = [2, 16], strides = [1, 1]} : vector<2x64xf32> to vector<2x16xf32>
    %790 = math.tanh %789 : vector<2x16xf32>
    %791 = vector.extract_strided_slice %737 {offsets = [0, 48], sizes = [2, 16], strides = [1, 1]} : vector<2x64xf32> to vector<2x16xf32>
    %cst_224 = arith.constant 0.000000e+00 : f32
    %792 = vector.broadcast %cst_224 : f32 to vector<2x16xf32>
    %793 = arith.subf %792, %791 : vector<2x16xf32>
    %794 = math.exp %793 : vector<2x16xf32>
    %cst_225 = arith.constant 1.000000e+00 : f32
    %795 = vector.broadcast %cst_225 : f32 to vector<2x16xf32>
    %796 = arith.addf %795, %794 : vector<2x16xf32>
    %cst_226 = arith.constant 1.000000e+00 : f32
    %797 = vector.broadcast %cst_226 : f32 to vector<2x16xf32>
    %798 = arith.divf %797, %796 : vector<2x16xf32>
    %799 = arith.mulf %788, %741 : vector<2x16xf32>
    %800 = arith.mulf %780, %790 : vector<2x16xf32>
    %801 = arith.addf %799, %800 : vector<2x16xf32>
    %802 = math.tanh %801 : vector<2x16xf32>
    %803 = arith.mulf %798, %802 : vector<2x16xf32>
    %804 = vector.shape_cast %727 : vector<2x1xi1> to vector<2x1xi1>
    %805 = vector.broadcast %804 : vector<2x1xi1> to vector<2x16xi1>
    %806 = arith.select %805, %772, %738 : vector<2x16xi1>, vector<2x16xf32>
    %807 = vector.shape_cast %728 : vector<2x1xi1> to vector<2x1xi1>
    %808 = vector.broadcast %807 : vector<2x1xi1> to vector<2x16xi1>
    %809 = arith.select %808, %803, %739 : vector<2x16xi1>, vector<2x16xf32>
    %810 = tpu.concatenate %806, %809 in 1 : vector<2x16xf32>, vector<2x16xf32> -> vector<2x32xf32>
    %811 = vector.shape_cast %727 : vector<2x1xi1> to vector<2x1xi1>
    %812 = vector.broadcast %811 : vector<2x1xi1> to vector<2x16xi1>
    %813 = arith.select %812, %770, %740 : vector<2x16xi1>, vector<2x16xf32>
    %814 = vector.shape_cast %728 : vector<2x1xi1> to vector<2x1xi1>
    %815 = vector.broadcast %814 : vector<2x1xi1> to vector<2x16xi1>
    %816 = arith.select %815, %801, %741 : vector<2x16xi1>, vector<2x16xf32>
    %817 = tpu.concatenate %813, %816 in 1 : vector<2x16xf32>, vector<2x16xf32> -> vector<2x32xf32>
    %cst_227 = arith.constant 0.000000e+00 : f32
    %818 = vector.shape_cast %727 : vector<2x1xi1> to vector<2x1xi1>
    %819 = vector.broadcast %818 : vector<2x1xi1> to vector<2x16xi1>
    %820 = vector.broadcast %cst_227 : f32 to vector<2x16xf32>
    %821 = arith.select %819, %772, %820 : vector<2x16xi1>, vector<2x16xf32>
    %822 = vector.shape_cast %821 : vector<2x16xf32> to vector<2x1x16xf32>
    %c0_228 = arith.constant 0 : index
    %c6_229 = arith.constant 6 : index
    %c0_230 = arith.constant 0 : index
    %823 = vector.load %arg10[%c0_228, %c6_229, %c0_230] : memref<2x8x32xf32, #tpu.memory_space<vmem>>, vector<2x1x16xf32>
    tpu.vector_store %arg10[%c0_228, %c6_229, %c0_230], %822 {strides = array<i32>} : memref<2x8x32xf32, #tpu.memory_space<vmem>>, vector<2x1x16xf32>,
    %cst_231 = arith.constant 0.000000e+00 : f32
    %824 = vector.shape_cast %728 : vector<2x1xi1> to vector<2x1xi1>
    %825 = vector.broadcast %824 : vector<2x1xi1> to vector<2x16xi1>
    %826 = vector.broadcast %cst_231 : f32 to vector<2x16xf32>
    %827 = arith.select %825, %803, %826 : vector<2x16xi1>, vector<2x16xf32>
    %828 = vector.shape_cast %827 : vector<2x16xf32> to vector<2x1x16xf32>
    %c0_232 = arith.constant 0 : index
    %c1_233 = arith.constant 1 : index
    %c16_234 = arith.constant 16 : index
    %829 = vector.load %arg10[%c0_232, %c1_233, %c16_234] : memref<2x8x32xf32, #tpu.memory_space<vmem>>, vector<2x1x16xf32>
    tpu.vector_store %arg10[%c0_232, %c1_233, %c16_234], %828 {strides = array<i32>} : memref<2x8x32xf32, #tpu.memory_space<vmem>>, vector<2x1x16xf32>,
    %830 = vector.extract_strided_slice %4 {offsets = [0, 7], sizes = [2, 1], strides = [1, 1]} : vector<2x8xi1> to vector<2x1xi1>
    %831 = vector.extract_strided_slice %4 {offsets = [0, 0], sizes = [2, 1], strides = [1, 1]} : vector<2x8xi1> to vector<2x1xi1>
    %cst_235 = arith.constant dense<0.000000e+00> : vector<2x128xf32>
    %832 = tpu.matmul %810, %105, %cst_235 {dimension_numbers = #tpu.dot_dimension_numbers<[1], [0], [0], [1], [0, 0, 1, 1], [], []>} : vector<2x32xf32>, vector<32x128xf32>, vector<2x128xf32> -> vector<2x128xf32>
    %833 = vector.extract_strided_slice %104 {offsets = [0, 7, 0], sizes = [2, 1, 64], strides = [1, 1, 1]} : vector<2x8x128xf32> to vector<2x1x64xf32>
    %834 = vector.shape_cast %833 : vector<2x1x64xf32> to vector<2x64xf32>
    %835 = vector.extract_strided_slice %832 {offsets = [0, 0], sizes = [2, 64], strides = [1, 1]} : vector<2x128xf32> to vector<2x64xf32>
    %836 = arith.addf %834, %835 : vector<2x64xf32>
    %837 = vector.extract_strided_slice %104 {offsets = [0, 0, 64], sizes = [2, 1, 64], strides = [1, 1, 1]} : vector<2x8x128xf32> to vector<2x1x64xf32>
    %838 = vector.shape_cast %837 : vector<2x1x64xf32> to vector<2x64xf32>
    %839 = vector.extract_strided_slice %832 {offsets = [0, 64], sizes = [2, 64], strides = [1, 1]} : vector<2x128xf32> to vector<2x64xf32>
    %840 = arith.addf %838, %839 : vector<2x64xf32>
    %841 = vector.extract_strided_slice %817 {offsets = [0, 0], sizes = [2, 16], strides = [1, 1]} : vector<2x32xf32> to vector<2x16xf32>
    %842 = vector.extract_strided_slice %817 {offsets = [0, 16], sizes = [2, 16], strides = [1, 1]} : vector<2x32xf32> to vector<2x16xf32>
    %843 = vector.extract_strided_slice %836 {offsets = [0, 0], sizes = [2, 16], strides = [1, 1]} : vector<2x64xf32> to vector<2x16xf32>
    %cst_236 = arith.constant 0.000000e+00 : f32
    %844 = vector.broadcast %cst_236 : f32 to vector<2x16xf32>
    %845 = arith.subf %844, %843 : vector<2x16xf32>
    %846 = math.exp %845 : vector<2x16xf32>
    %cst_237 = arith.constant 1.000000e+00 : f32
    %847 = vector.broadcast %cst_237 : f32 to vector<2x16xf32>
    %848 = arith.addf %847, %846 : vector<2x16xf32>
    %cst_238 = arith.constant 1.000000e+00 : f32
    %849 = vector.broadcast %cst_238 : f32 to vector<2x16xf32>
    %850 = arith.divf %849, %848 : vector<2x16xf32>
    %851 = vector.extract_strided_slice %836 {offsets = [0, 16], sizes = [2, 16], strides = [1, 1]} : vector<2x64xf32> to vector<2x16xf32>
    %cst_239 = arith.constant 0.000000e+00 : f32
    %852 = vector.broadcast %cst_239 : f32 to vector<2x16xf32>
    %853 = arith.subf %852, %851 : vector<2x16xf32>
    %854 = math.exp %853 : vector<2x16xf32>
    %cst_240 = arith.constant 1.000000e+00 : f32
    %855 = vector.broadcast %cst_240 : f32 to vector<2x16xf32>
    %856 = arith.addf %855, %854 : vector<2x16xf32>
    %cst_241 = arith.constant 1.000000e+00 : f32
    %857 = vector.broadcast %cst_241 : f32 to vector<2x16xf32>
    %858 = arith.divf %857, %856 : vector<2x16xf32>
    %859 = vector.extract_strided_slice %836 {offsets = [0, 32], sizes = [2, 16], strides = [1, 1]} : vector<2x64xf32> to vector<2x16xf32>
    %860 = math.tanh %859 : vector<2x16xf32>
    %861 = vector.extract_strided_slice %836 {offsets = [0, 48], sizes = [2, 16], strides = [1, 1]} : vector<2x64xf32> to vector<2x16xf32>
    %cst_242 = arith.constant 0.000000e+00 : f32
    %862 = vector.broadcast %cst_242 : f32 to vector<2x16xf32>
    %863 = arith.subf %862, %861 : vector<2x16xf32>
    %864 = math.exp %863 : vector<2x16xf32>
    %cst_243 = arith.constant 1.000000e+00 : f32
    %865 = vector.broadcast %cst_243 : f32 to vector<2x16xf32>
    %866 = arith.addf %865, %864 : vector<2x16xf32>
    %cst_244 = arith.constant 1.000000e+00 : f32
    %867 = vector.broadcast %cst_244 : f32 to vector<2x16xf32>
    %868 = arith.divf %867, %866 : vector<2x16xf32>
    %869 = arith.mulf %858, %841 : vector<2x16xf32>
    %870 = arith.mulf %850, %860 : vector<2x16xf32>
    %871 = arith.addf %869, %870 : vector<2x16xf32>
    %872 = math.tanh %871 : vector<2x16xf32>
    %873 = arith.mulf %868, %872 : vector<2x16xf32>
    %874 = vector.extract_strided_slice %840 {offsets = [0, 0], sizes = [2, 16], strides = [1, 1]} : vector<2x64xf32> to vector<2x16xf32>
    %cst_245 = arith.constant 0.000000e+00 : f32
    %875 = vector.broadcast %cst_245 : f32 to vector<2x16xf32>
    %876 = arith.subf %875, %874 : vector<2x16xf32>
    %877 = math.exp %876 : vector<2x16xf32>
    %cst_246 = arith.constant 1.000000e+00 : f32
    %878 = vector.broadcast %cst_246 : f32 to vector<2x16xf32>
    %879 = arith.addf %878, %877 : vector<2x16xf32>
    %cst_247 = arith.constant 1.000000e+00 : f32
    %880 = vector.broadcast %cst_247 : f32 to vector<2x16xf32>
    %881 = arith.divf %880, %879 : vector<2x16xf32>
    %882 = vector.extract_strided_slice %840 {offsets = [0, 16], sizes = [2, 16], strides = [1, 1]} : vector<2x64xf32> to vector<2x16xf32>
    %cst_248 = arith.constant 0.000000e+00 : f32
    %883 = vector.broadcast %cst_248 : f32 to vector<2x16xf32>
    %884 = arith.subf %883, %882 : vector<2x16xf32>
    %885 = math.exp %884 : vector<2x16xf32>
    %cst_249 = arith.constant 1.000000e+00 : f32
    %886 = vector.broadcast %cst_249 : f32 to vector<2x16xf32>
    %887 = arith.addf %886, %885 : vector<2x16xf32>
    %cst_250 = arith.constant 1.000000e+00 : f32
    %888 = vector.broadcast %cst_250 : f32 to vector<2x16xf32>
    %889 = arith.divf %888, %887 : vector<2x16xf32>
    %890 = vector.extract_strided_slice %840 {offsets = [0, 32], sizes = [2, 16], strides = [1, 1]} : vector<2x64xf32> to vector<2x16xf32>
    %891 = math.tanh %890 : vector<2x16xf32>
    %892 = vector.extract_strided_slice %840 {offsets = [0, 48], sizes = [2, 16], strides = [1, 1]} : vector<2x64xf32> to vector<2x16xf32>
    %cst_251 = arith.constant 0.000000e+00 : f32
    %893 = vector.broadcast %cst_251 : f32 to vector<2x16xf32>
    %894 = arith.subf %893, %892 : vector<2x16xf32>
    %895 = math.exp %894 : vector<2x16xf32>
    %cst_252 = arith.constant 1.000000e+00 : f32
    %896 = vector.broadcast %cst_252 : f32 to vector<2x16xf32>
    %897 = arith.addf %896, %895 : vector<2x16xf32>
    %cst_253 = arith.constant 1.000000e+00 : f32
    %898 = vector.broadcast %cst_253 : f32 to vector<2x16xf32>
    %899 = arith.divf %898, %897 : vector<2x16xf32>
    %900 = arith.mulf %889, %842 : vector<2x16xf32>
    %901 = arith.mulf %881, %891 : vector<2x16xf32>
    %902 = arith.addf %900, %901 : vector<2x16xf32>
    %903 = math.tanh %902 : vector<2x16xf32>
    %904 = arith.mulf %899, %903 : vector<2x16xf32>
    %cst_254 = arith.constant 0.000000e+00 : f32
    %905 = vector.shape_cast %830 : vector<2x1xi1> to vector<2x1xi1>
    %906 = vector.broadcast %905 : vector<2x1xi1> to vector<2x16xi1>
    %907 = vector.broadcast %cst_254 : f32 to vector<2x16xf32>
    %908 = arith.select %906, %873, %907 : vector<2x16xi1>, vector<2x16xf32>
    %909 = vector.shape_cast %908 : vector<2x16xf32> to vector<2x1x16xf32>
    %c0_255 = arith.constant 0 : index
    %c7_256 = arith.constant 7 : index
    %c0_257 = arith.constant 0 : index
    %910 = vector.load %arg10[%c0_255, %c7_256, %c0_257] : memref<2x8x32xf32, #tpu.memory_space<vmem>>, vector<2x1x16xf32>
    tpu.vector_store %arg10[%c0_255, %c7_256, %c0_257], %909 {strides = array<i32>} : memref<2x8x32xf32, #tpu.memory_space<vmem>>, vector<2x1x16xf32>,
    %cst_258 = arith.constant 0.000000e+00 : f32
    %911 = vector.shape_cast %831 : vector<2x1xi1> to vector<2x1xi1>
    %912 = vector.broadcast %911 : vector<2x1xi1> to vector<2x16xi1>
    %913 = vector.broadcast %cst_258 : f32 to vector<2x16xf32>
    %914 = arith.select %912, %904, %913 : vector<2x16xi1>, vector<2x16xf32>
    %915 = vector.shape_cast %914 : vector<2x16xf32> to vector<2x1x16xf32>
    %c0_259 = arith.constant 0 : index
    %c0_260 = arith.constant 0 : index
    %c16_261 = arith.constant 16 : index
    %916 = vector.load %arg10[%c0_259, %c0_260, %c16_261] : memref<2x8x32xf32, #tpu.memory_space<vmem>>, vector<2x1x16xf32>
    tpu.vector_store %arg10[%c0_259, %c0_260, %c16_261], %915 {strides = array<i32>} : memref<2x8x32xf32, #tpu.memory_space<vmem>>, vector<2x1x16xf32>,
    %c0_262 = arith.constant 0 : index
    %c0_263 = arith.constant 0 : index
    %c0_264 = arith.constant 0 : index
    %917 = vector.load %arg10[%c0_262, %c0_263, %c0_264] : memref<2x8x32xf32, #tpu.memory_space<vmem>>, vector<2x8x32xf32>
    %918 = vector.shape_cast %917 : vector<2x8x32xf32> to vector<16x32xf32>
    %cst_265 = arith.constant dense<0.000000e+00> : vector<16x5xf32>
    %919 = tpu.matmul %918, %106, %cst_265 {dimension_numbers = #tpu.dot_dimension_numbers<[1], [0], [0], [1], [0, 0, 1, 1], [], []>} : vector<16x32xf32>, vector<32x5xf32>, vector<16x5xf32> -> vector<16x5xf32>
    %920 = vector.broadcast %15 : vector<1x5xf32> to vector<16x5xf32>
    %921 = arith.addf %919, %920 : vector<16x5xf32>
    %922 = vector.shape_cast %921 : vector<16x5xf32> to vector<2x8x5xf32>
    %c0_266 = arith.constant 0 : index
    %c0_267 = arith.constant 0 : index
    %c0_268 = arith.constant 0 : index
    %923 = vector.load %arg8[%c0_266, %c0_267, %c0_268] : memref<2x8x5xf32, #tpu.memory_space<vmem>>, vector<2x8x5xf32>
    tpu.vector_store %arg8[%c0_266, %c0_267, %c0_268], %922 {strides = array<i32>} : memref<2x8x5xf32, #tpu.memory_space<vmem>>, vector<2x8x5xf32>,
    return
  }
}

</mosaic_0001>

<bundles_post_ra>
// kernel: tpu_custom_call.1
= control target key start
LH: loop header
LB: loop body
LE: loop exit
PB: predicated region body
PF: predicated region fallthrough
CT: control target
= control target key end

     0   :  { %15 = vsyncpa [#allocation4], 0  ;;  %s5272_s0 = inlined_call_operand.hbm [shape: f32[2,8,32], index: 0, kind: input, shape index: {}]   ;;  %s5273_s1 = inlined_call_operand.hbm [shape: f32[2,16], index: 1, kind: input, shape index: {}]   ;;  %s5274_s2 = inlined_call_operand.hbm [shape: f32[2,8], index: 2, kind: input, shape index: {}]   ;;  %s5275_s3 = inlined_call_operand.vmem [shape: f32[32,352], index: 3, kind: input, shape index: {}]   ;;  %s5276_s4 = inlined_call_operand.hbm [shape: f32[16,32], index: 4, kind: input, shape index: {}]   ;;  %s5277_s5 = inlined_call_operand.vmem [shape: f32[64,32], index: 5, kind: input, shape index: {}]   ;;  %s5278_s6 = inlined_call_operand.hbm [shape: f32[32,133], index: 6, kind: input, shape index: {}]   ;;  %s5279_s7 = inlined_call_operand.vmem [shape: f32[1,422], index: 7, kind: input, shape index: {}]   ;;  %s5280_s8 = inlined_call_operand.vmem [shape: f32[2,8,5], index: 8, kind: output, shape index: {0}]   ;;  %s5281_s9 = inlined_call_operand.hbm [shape: f32[2,8], index: 9, kind: output, shape index: {1}]  }
   0x1   :  { %16 = vsyncpa [#allocation7], 0 }
   0x2   :  { %17 = vsyncpa [#allocation10], 0 }
   0x3   :  { %18 = vsyncpa [#allocation5], 0  ;;  %s4225_s30 = smov [#allocation6]  }
   0x4   :  { %s37_s10 = sshll.u32 %s4225_s30, 4  ;;  %s38_s10 = int_to_ptr.vmem [resolvable:$true] %s37_s10 }
   0x5   :  { %s4105_s11 = scalar_lea.vmem %s38_s10, 32  ;;  %p4110_p1 = scmp.lt.s32.totalorder %s38_s10, %s38_s10 }
   0x6   :  { %p4106_p0 = scmp.ne.s32.totalorder %s38_s10, %s4105_s11  ;;  %p4111_p2 = scmp.lt.s32.totalorder %s4105_s11, %s4105_s11 }
   0x8   :  { %p4112_p3 = por %p4111_p2, %p4110_p1 }
   0xa   :  { %p4113_p4 = pnand %p4112_p3, %p4106_p0 }
   0xc   :  { %4116 = shalt.err (!%p4113_p4)
}
   0xd   :  { %40 = dma.hbm_to_vmem [thread:$0]  %s5273_s1, 32, %s38_s10, [#allocation7]  }
   0xe   :  { %s4226_s14 = smov [#allocation9]   ;;  %s4227_s16 = smov [#allocation3]  }
   0xf   :  { %s58_s15 = sshll.u32 %s4226_s14, 4  ;;  %s24_s17 = sshll.u32 %s4227_s16, 4  ;;  %s59_s15 = int_to_ptr.vmem [resolvable:$true] %s58_s15  ;;  %s25_s17 = int_to_ptr.vmem [resolvable:$true] %s24_s17 }
  0x10   :  { %s4125_s18 = scalar_lea.vmem %s59_s15, 256  ;;  %p4130_p6 = scmp.lt.s32.totalorder %s59_s15, %s59_s15 }
  0x11   :  { %p4126_p5 = scmp.ne.s32.totalorder %s59_s15, %s4125_s18  ;;  %p4131_p7 = scmp.lt.s32.totalorder %s4125_s18, %s4125_s18 }
  0x13   :  { %p4132_p8 = por %p4131_p7, %p4130_p6 }
  0x15   :  { %p4133_p9 = pnand %p4132_p8, %p4126_p5 }
  0x17   :  { %4136 = shalt.err (!%p4133_p9)
}
  0x18   :  { %s4228_s19 = smov 128   ;;  %s4229_s20 = smov 8  }
  0x19   :  { %64 = dma.hbm_to_vmem [thread:$0]  %s5276_s4, 256, %s59_s15, [#allocation10], %s4228_s19, %s4228_s19, %s4229_s20  }
  0x1a   :  { %s4145_s1 = scalar_lea.vmem %s25_s17, 256  ;;  %p4150_p11 = scmp.lt.s32.totalorder %s25_s17, %s25_s17 }
  0x1b   :  { %p4146_p10 = scmp.ne.s32.totalorder %s25_s17, %s4145_s1  ;;  %p4151_p12 = scmp.lt.s32.totalorder %s4145_s1, %s4145_s1 }
  0x1d   :  { %p4152_p13 = por %p4151_p12, %p4150_p11 }
  0x1f   :  { %p4153_p0 = pnand %p4152_p13, %p4146_p10 }
  0x21   :  { %4156 = shalt.err (!%p4153_p0)
}
  0x22   :  { %30 = dma.hbm_to_vmem [thread:$0]  %s5272_s0, 256, %s25_s17, [#allocation4], %s4228_s19, %s4228_s19, %s4229_s20  }
  0x23   :  { %s4230_s25 = smov [#allocation8]   ;;  %s4231_s27 = smov [#allocation11]  }
  0x24   :  { %s47_s26 = sshll.u32 %s4230_s25, 4  ;;  %s72_s28 = sshll.u32 %s4231_s27, 4  ;;  %s48_s26 = int_to_ptr.vmem [resolvable:$true] %s47_s26  ;;  %s73_s28 = int_to_ptr.vmem [resolvable:$true] %s72_s28 }
  0x25   :  { %s4165_s29 = scalar_lea.vmem %s48_s26, 32  ;;  %p4170_p2 = scmp.lt.s32.totalorder %s48_s26, %s48_s26 }
  0x26   :  { %p4166_p1 = scmp.ne.s32.totalorder %s48_s26, %s4165_s29  ;;  %p4171_p3 = scmp.lt.s32.totalorder %s4165_s29, %s4165_s29 }
  0x28   :  { %p4172_p4 = por %p4171_p3, %p4170_p2 }
  0x2a   :  { %p4173_p5 = pnand %p4172_p4, %p4166_p1 }
  0x2c   :  { %4176 = shalt.err (!%p4173_p5)
}
  0x2d   :  { %50 = dma.hbm_to_vmem [thread:$0]  %s5274_s2, 32, %s48_s26, [#allocation7]  }
  0x2e   :  { %s4185_s10 = scalar_lea.vmem %s73_s28, 1024  ;;  %p4190_p7 = scmp.lt.s32.totalorder %s73_s28, %s73_s28 }
  0x2f   :  { %p4186_p6 = scmp.ne.s32.totalorder %s73_s28, %s4185_s10  ;;  %p4191_p8 = scmp.lt.s32.totalorder %s4185_s10, %s4185_s10 }
  0x31   :  { %p4192_p9 = por %p4191_p8, %p4190_p7 }
  0x33   :  { %p4193_p10 = pnand %p4192_p9, %p4186_p6 }
  0x35   :  { %4196 = shalt.err (!%p4193_p10)
}
  0x36   :  { %s4232_s0 = smov 256   ;;  %s4233_s11 = smov 16  }
  0x37   :  { %78 = dma.hbm_to_vmem [thread:$0]  %s5278_s6, 1024, %s73_s28, [#allocation10], %s4232_s0, %s4232_s0, %s4233_s11  }
  0x38   :  { %4217 = dma.done.wait [#allocation4], 256  }
  0x39   :  { %4218 = vsyncadd [#allocation4], 4294967040 }
  0x3a   :  { %4219 = dma.done.wait [#allocation7], 64  }
  0x3b   :  { %4220 = vsyncadd [#allocation7], 4294967232 }
  0x3c   :  { %4221 = dma.done.wait [#allocation10], 1280  }
  0x3d   :  { %4222 = vsyncadd [#allocation10], 4294966016  ;;  %v109_v0 = vlaneseq  ;;  %vm105_vm0 = vcmask 58368   ;;  %v4326_v3 = vld [vmem:[#allocation8] sm:$0x3]  ;;  %v235_v4 = vld [vmem:[%s5275_s3 + $0x50] sm:$0xff] }
  0x3e   :  { %v106_v5 = vsel %vm105_vm0, %v4326_v3, 0.0  ;;  %3617 = vmatprep.subr.mxu1 %v235_v4  ;;  %v234_v7 = vld [vmem:[%s5275_s3 + $0x38] sm:$0xff]  ;;  %v233_v8 = vld [vmem:[%s5275_s3 + $0x20] sm:$0xff]  ;;  %v232_v9 = vld [vmem:[%s5275_s3 + $0x8] sm:$0xff]  ;;  %s4234_s20 = smov 64   ;;  %vm125_vm1 = vcmask 261120  }
  0x3f   :  { %v4321_v1 = vshrl.u32 %v109_v0, 7  ;;  %107 = vadd.xlane.f32.xlu0 %v106_v5  ;;  %3618 = vmatpush3.msra.mxu1 %v235_v4  ;;  %v96_v10 = vld [vmem:[#allocation3] sm:$0xff]  ;;  %v97_v11 = vld [vmem:[#allocation3 + $0x8] sm:$0xff]  ;;  %v4235_v13 = vmov 0.0   ;;  %v148_v16 = vld [vmem:[#allocation9] sm:$0xff]  ;;  %vm4236_vm2 = vmmov 0  }
  0x40   :  { %3619 = vmatprep.subr.mxu1 %v234_v7  ;;  %3625 = vmatprep.mubr.msk.f32.mxu1 %vm125_vm1, %v96_v10  ;;  %v149_v14 = vld [vmem:[#allocation9 + $0x8] sm:$0xff]  ;;  %v99_v17 = vld [vmem:[#allocation6] sm:$0x3]  ;;  %vm158_vm3 = vcmask 130048   ;;  %v4368_v18 = vld [vmem:[%s5279_s7 + $0x2] ss:$0 sm:$0xff] }
  0x41   :  { %v4324_v2 = vsub.s32 0, %v4321_v1  ;;  %3620 = vmatpush3.msra.mxu1 %v234_v7  ;;  %v118_v12 = vsub.s32 1, %v4321_v1  ;;  %3610 = vmatprep.subr.mxu0 %v4235_v13  ;;  %s4237_s1 = smov 32   ;;  %v4375_v19 = vld [vmem:[%s5279_s7 + $0x1] ss:$0 sm:$0xff]  ;;  %vm328_vm4 = vcmask 1041409  }
  0x42   :  { %3621 = vmatprep.subr.mxu1 %v233_v8  ;;  %3611 = vmatpush3.msra.mxu0 %v149_v14  ;;  %v4238_v52 = vmov 32   ;;  %v4239_v53 = vmov 1966171168   ;;  %vm100_vm5 = vcmp.gt.f32.partialorder %v4326_v3, 0.5  ;;  %s4241_s13 = smov 96   ;;  %vm683_vm6 = vcmask 523264  }
  0x43   :  { %v112_v6 = vrot.slane %v4326_v3, %v4324_v2  ;;  %3622 = vmatpush3.msra.mxu1 %v233_v8  ;;  %v119_v15 = vrot.slane %v4326_v3, %v118_v12  ;;  %3612 = vmatprep.subr.mxu0 %v4235_v13  ;;  %v424_v54 = vunpack.c.l.s4 %v4239_v53  ;;  %s4243_s6 = smov 80   ;;  %s4244_s15 = smov 48   ;;  %vm1156_vm9 = vcmask 122880  }
  0x44   :  { %3623 = vmatprep.subr.mxu1 %v232_v9  ;;  %3613 = vmatpush3.msra.mxu0 %v148_v16  ;;  %s4245_s16 = smov 112  }
  0x45   :  { %114 = vbcast.lane.b32.xlu1 %v112_v6, 256  ;;  %3624 = vmatpush3.msra.mxu1 %v232_v9  ;;  %v425_v55 = vunpack.c.0.s8 %v424_v54 }
  0x46   :  { %3626 = vmatmul.mubr.msk.f32.vlgmr.msra.gmra.mxu1 %vm125_vm1, %v97_v11  ;;  %3639 = vmatprep.subr.mxu1 %v4235_v13 }
  0x47   :  { %3614 = vmatprep.mubr.msk.f32.mxu0 %vm4236_vm2, %v4235_v13  ;;  %3628 = vmatprep.subr.mxu0 %v4235_v13  ;;  %v4390_v57 = vsub.s32 %v425_v55, %v4321_v1  ;;  %v574_v55 = vld [vmem:[%s5275_s3 + $0x58] sm:$0xff] }
  0x48   :  { %3615 = vmatmul.mubr.msk.f32.vlgmr.msra.gmra.mxu0 %vm158_vm3, %v99_v17  ;;  %3647 = vmatprep.mubr.msk.f32.mxu1 %vm4236_vm2, %v4235_v13 }
  0x49   :  { %340 = vrot.lane.b32.xlu1 %v235_v4, %s4234_s20  ;;  %3636 = vmatprep.mubr.msk.f32.mxu0 %vm4236_vm2, %v4235_v13 }
  0x4a   :  { %3808 = vset.pattern.permute.xlu0 %v4238_v52  ;;  %3640 = vmatpush3.msra.mxu1 %v574_v55 }
  0x4b   :  { %3641 = vmatprep.subr.mxu1 %v4235_v13 }
  0x4d   :  { %338 = vrot.lane.b32.xlu1 %v234_v7, %s4234_s20 }
  0x51   :  { %336 = vrot.lane.b32.xlu1 %v233_v8, %s4234_s20 }
  0x55   :  { %334 = vrot.lane.b32.xlu1 %v232_v9, %s4234_s20  ;;  %121 = vbcast.lane.b32.xlu0 %v119_v15, 256 }
  0x59   :  { %155 = vrot.lane.b32.xlu1 %v4368_v18, %s4237_s1 }
  0x5d   :  { %418 = vrot.lane.b32.xlu1 %v4375_v19, %s4234_s20 }
  0xb7   :  { %v115_v20 = vpop.permute.xlu1 %114 }
  0xb8   :  { %v123_v24 = vmul.f32 %v115_v20, %v96_v10 }
  0xba   :  { %v126_v26 = vsel %vm125_vm1, %v123_v24, 0.0 }
  0xbb   :  { %v341_v21 = vpop.permute.xlu1 %340  ;;  %v127_v27 = vrot.slane %v126_v26, 4 }
  0xbc   :  { %3629 = vmatpush3.msra.mxu0 %v341_v21 }
  0xbd   :  { %3630 = vmatprep.subr.mxu0 %v4235_v13  ;;  %v128_v30 = vadd.f32 %v127_v27, %v126_v26  ;;  %v3515_v27 = vld [vmem:[%s5279_s7 + $0x3] ss:$0 sm:$0xff] }
  0xbf   :  { %v339_v22 = vpop.permute.xlu1 %338  ;;  %v129_v33 = vrot.slane %v128_v30, 2 }
  0xc0   :  { %3631 = vmatpush3.msra.mxu0 %v339_v22 }
  0xc1   :  { %3632 = vmatprep.subr.mxu0 %v4235_v13  ;;  %v130_v37 = vadd.f32 %v129_v33, %v128_v30 }
  0xc3   :  { %v337_v23 = vpop.permute.xlu1 %336  ;;  %v131_v40 = vrot.slane %v130_v37, 1 }
  0xc4   :  { %3633 = vmatpush3.msra.mxu0 %v337_v23 }
  0xc5   :  { %3634 = vmatprep.subr.mxu0 %v4235_v13  ;;  %v132_v44 = vadd.f32 %v131_v40, %v130_v37 }
  0xc7   :  { %v335_v25 = vpop.permute.xlu1 %334 }
  0xc8   :  { %3635 = vmatpush3.msra.mxu0 %v335_v25  ;;  %v108_v28 = vpop.xlane.xlu0 %107 }
  0xc9   :  { %3650 = vmatprep.subr.mxu0 %v4235_v13  ;;  %v141_v29 = vrot.slane %v108_v28, 1  ;;  %3818 = vrcp.f32 %v108_v28 }
  0xcb   :  { %3820 = vrcp.f32 %v141_v29  ;;  %v156_v56 = vpop.permute.xlu1 %155 }
  0xcc   :  { %v122_v31 = vpop.permute.xlu0 %121 }
  0xcd   :  { %v124_v32 = vmul.f32 %v122_v31, %v97_v11 }
  0xcf   :  { %v133_v34 = vsel %vm125_vm1, %v124_v32, 0.0  ;;  %v419_v62 = vpop.permute.xlu1 %418 }
  0xd0   :  { %v134_v35 = vrot.slane %v133_v34, 4 }
  0xd2   :  { %v135_v36 = vadd.f32 %v134_v35, %v133_v34  ;;  %v4240_v34 = vmov 0   ;;  %v517_v35 = vand.u32 127, %v109_v0 }
  0xd3   :  { %3810 = vset.pattern.permute.xlu1 %v4240_v34 }
  0xd4   :  { %v136_v38 = vrot.slane %v135_v36, 2  ;;  %v520_v37 = vsub.s32 %v517_v35, %v4321_v1 }
  0xd6   :  { %v137_v39 = vadd.f32 %v136_v38, %v135_v36  ;;  %v3819_v42 = vpop.eup %3818 }
  0xd7   :  { %v145_v47 = vmul.f32 %v3819_v42, %v132_v44 }
  0xd8   :  { %v138_v41 = vrot.slane %v137_v39, 1  ;;  %v3821_v45 = vpop.eup %3820 }
  0xda   :  { %v139_v43 = vadd.f32 %v138_v41, %v137_v39 }
  0xdc   :  { %v147_v46 = vmul.f32 %v3821_v45, %v139_v43 }
  0xde   :  { %v327_v48 = vrot.slane %v147_v46, 7 }
  0xe0   :  { %v329_v49 = vsel %vm328_vm4, %v327_v48, %v145_v47 }
  0xe1   :  { %3637 = vmatmul.mubr.msk.f32.vlgmr.msra.gmra.mxu0 %vm125_vm1, %v329_v49 }
  0xe2   :  { %3666 = vmatprep.mubr.msk.f32.mxu0 %vm4236_vm2, %v4235_v13 }
 0x106   :  { %v4393_v60 = vpop.f32.mrf.mxu1 }
 0x107   :  { %v4410_v14 = vadd.f32 %v4393_v60, %v4375_v19 }
 0x108   :  { %v228_v50 = vpop.f32.mrf.mxu0  ;;  %v4396_v4 = vpop.f32.mrf.mxu1 }
 0x109   :  { %v229_v58 = vadd.f32 %v228_v50, %v156_v56  ;;  %v4403_v9 = vadd.f32 %v4375_v19, %v4396_v4  ;;  %v573_v56 = vld [vmem:[%s5275_s3 + $0x40] sm:$0xff] }
 0x10a   :  { %v3616_v51 = vpop.f32.mrf.mxu0  ;;  %3642 = vmatpush3.msra.mxu1 %v573_v56 }
 0x10b   :  { %v429_v59 = vrot.slane %v229_v58, %v4390_v57  ;;  %3643 = vmatprep.subr.mxu1 %v4235_v13 }
 0x10d   :  { %v430_v61 = vcombine.high %v429_v59, %v429_v59  ;;  %v437_v63 = vrot.slane %v429_v59, %v4390_v57  ;;  %v572_v59 = vld [vmem:[%s5275_s3 + $0x28] sm:$0xff] }
 0x10e   :  { %3644 = vmatpush3.msra.mxu1 %v572_v59  ;;  %v4520_v59 = vld [vmem:[#allocation11 + $0x30] sm:$0xff] }
 0x10f   :  { %v444_v6 = vrot.slane %v430_v61, %v4390_v57  ;;  %v448_v10 = vrot.slane %v437_v63, %v4324_v2  ;;  %v571_v61 = vld [vmem:[%s5275_s3 + $0x10] sm:$0xff]  ;;  %3645 = vmatprep.subr.mxu1 %v4235_v13 }
 0x110   :  { %3646 = vmatpush3.msra.mxu1 %v571_v61  ;;  %v4524_v61 = vld [vmem:[#allocation11 + $0x20] sm:$0xff] }
 0x111   :  { %v452_v15 = vrot.slane %v444_v6, %v4324_v2  ;;  %v455_v20 = vadd.f32 %v448_v10, %v4403_v9 }
 0x113   :  { %v456_v23 = vadd.f32 %v452_v15, %v4410_v14 }
 0x1a1   :  { %v414_v5 = vpop.f32.mrf.mxu0 }
 0x1a2   :  { %v4399_v7 = vadd.f32 %v419_v62, %v414_v5 }
 0x1a3   :  { %v3638_v8 = vpop.f32.mrf.mxu0 }
 0x1a4   :  { %v464_v11 = vrot.slane %v4399_v7, %v4390_v57 }
 0x1a6   :  { %v465_v16 = vcombine.high %v464_v11, %v464_v11  ;;  %v472_v17 = vrot.slane %v464_v11, %v4390_v57 }
 0x1a8   :  { %v479_v21 = vrot.slane %v465_v16, %v4390_v57  ;;  %v483_v22 = vrot.slane %v472_v17, %v4324_v2 }
 0x1aa   :  { %v487_v24 = vrot.slane %v479_v21, %v4324_v2  ;;  %v490_v25 = vadd.f32 %v483_v22, %v455_v20 }
 0x1ac   :  { %v491_v26 = vadd.f32 %v487_v24, %v456_v23  ;;  %3822 = vtanh.f32 %v490_v25 }
 0x1ae   :  { %3824 = vtanh.f32 %v491_v26 }
 0x1b9   :  { %v3823_v28 = vpop.eup %3822 }
 0x1ba   :  { %v500_v29 = vmul.f32 %v3823_v28, %v3515_v27  ;;  %v678_v28 = vld [vmem:[%s5277_s5 + $0x30] sm:$0xff] }
 0x1bb   :  { %v3825_v30 = vpop.eup %3824 }
 0x1bc   :  { %v502_v31 = vsel %vm125_vm1, %v500_v29, 0.0  ;;  %v501_v32 = vmul.f32 %v3825_v30, %v3515_v27  ;;  %v675_v30 = vld [vmem:[%s5277_s5 + $0x18] sm:$0xff] }
 0x1bd   :  { %503 = vadd.xlane.f32.xlu0 %v502_v31  ;;  %v674_v31 = vld [vmem:[%s5277_s5 + $0x10] sm:$0xff] }
 0x1be   :  { %v505_v33 = vsel %vm125_vm1, %v501_v32, 0.0  ;;  %v673_v32 = vld [vmem:[%s5277_s5 + $0x8] sm:$0xff] }
 0x1bf   :  { %506 = vadd.xlane.f32.xlu1 %v505_v33  ;;  %v672_v33 = vld [vmem:[%s5277_s5] sm:$0xff] }
 0x1d3   :  { %509 = vperm.xlu0 %3808, %v3515_v27   ;;  %v679_v27 = vld [vmem:[%s5277_s5 + $0x38] sm:$0xff] }
 0x1d4   :  { %3651 = vmatpush3.msra.mxu0 %v679_v27 }
 0x1d5   :  { %3652 = vmatprep.subr.mxu0 %v4235_v13 }
 0x1d6   :  { %3653 = vmatpush3.msra.mxu0 %v678_v28 }
 0x1d7   :  { %3654 = vmatprep.subr.mxu0 %v4235_v13 }
 0x246   :  { %v504_v36 = vpop.xlane.xlu0 %503 }
 0x248   :  { %v507_v38 = vpop.xlane.xlu1 %506 }
 0x24e   :  { %v510_v39 = vpop.permute.xlu0 %509 }
 0x24f   :  { %v512_v40 = vadd.f32 %v510_v39, %v504_v36  ;;  %v513_v41 = vadd.f32 %v510_v39, %v507_v38 }
 0x251   :  { %v521_v42 = vrot.slane %v512_v40, %v520_v37  ;;  %v525_v43 = vrot.slane %v513_v41, %v520_v37 }
 0x253   :  { %v526_v44 = vsel %vm328_vm4, %v525_v43, %v521_v42 }
 0x254   :  { %v528_v45 = vsel %vm100_vm5, %v526_v44, -1e+09 }
 0x255   :  { %v529_v46 = vsel %vm105_vm0, %v528_v45, -inf }
 0x256   :  { %530 = vmax.xlane.f32.xlu1 %v529_v46 }
 0x2df   :  { %v531_v0 = vpop.xlane.xlu1 %530 }
 0x2e0   :  { %v532_v47 = vsub.f32 %v528_v45, %v531_v0  ;;  %v799_v0 = vld [vmem:[%s5275_s3 + $0x48] sm:$0xff] }
 0x2e1   :  { %3669 = vmatprep.subr.mxu1 %v799_v0 }
 0x2e2   :  { %v533_v48 = vmul.f32 1.442695, %v532_v47  ;;  %v798_v47 = vld [vmem:[%s5275_s3 + $0x30] sm:$0xff] }
 0x2e4   :  { %3826 = vpow2.f32 %v533_v48 }
 0x2f1   :  { %v3827_v49 = vpop.eup %3826 }
 0x2f2   :  { %v535_v50 = vsel %vm105_vm0, %v3827_v49, 0.0 }
 0x2f3   :  { %536 = vadd.xlane.f32.xlu1 %v535_v50  ;;  %v797_v50 = vld [vmem:[%s5275_s3 + $0x18] sm:$0xff] }
 0x37c   :  { %v537_v51 = vpop.xlane.xlu1 %536 }
 0x37d   :  { %3828 = vrcp.f32 %v537_v51 }
 0x38a   :  { %v3829_v52 = vpop.eup %3828 }
 0x38b   :  { %v539_v53 = vmul.f32 %v3829_v52, %v3827_v49  ;;  %v796_v52 = vld [vmem:[%s5275_s3] sm:$0xff] }
 0x38d   :  { %v544_v54 = vrot.slane %v539_v53, %v4324_v2  ;;  %540 = vst.msk [vmem:[#allocation12] sm:$0x3] %vm105_vm0, %v539_v53  ;;  %v551_v58 = vrot.slane %v539_v53, %v118_v12  ;;  %vm1195_vm0 = vcmask 254080  }
 0x38f   :  { %546 = vbcast.lane.b32.xlu1 %v544_v54, 256 }
 0x393   :  { %553 = vbcast.lane.b32.xlu1 %v551_v58, 256 }
 0x397   :  { %652 = vrot.lane.b32.xlu1 %v4399_v7, %s4241_s13 }
 0x401   :  { %v547_v1 = vpop.permute.xlu1 %546 }
 0x402   :  { %v555_v12 = vmul.f32 %v547_v1, %v4403_v9  ;;  %v4527_v1 = vld [vmem:[#allocation11 + $0x10] sm:$0xff] }
 0x404   :  { %v557_v62 = vsel %vm125_vm1, %v555_v12, 0.0  ;;  %v4531_v12 = vld [vmem:[#allocation11] sm:$0xff] }
 0x405   :  { %v558_v63 = vrot.slane %v557_v62, 4  ;;  %v554_v5 = vpop.permute.xlu1 %553 }
 0x406   :  { %v556_v6 = vmul.f32 %v554_v5, %v4410_v14 }
 0x407   :  { %v559_v8 = vadd.f32 %v558_v63, %v557_v62 }
 0x408   :  { %v564_v10 = vsel %vm125_vm1, %v556_v6, 0.0 }
 0x409   :  { %v560_v11 = vrot.slane %v559_v8, 2  ;;  %v565_v15 = vrot.slane %v564_v10, 4  ;;  %v653_v35 = vpop.permute.xlu1 %652 }
 0x40b   :  { %v561_v16 = vadd.f32 %v560_v11, %v559_v8  ;;  %v566_v17 = vadd.f32 %v565_v15, %v564_v10  ;;  %v3518_v11 = vld [vmem:[%s5279_s7] ss:$0 sm:$0xff] }
 0x40d   :  { %v567_v20 = vrot.slane %v566_v17, 2  ;;  %v562_v21 = vrot.slane %v561_v16, 1 }
 0x40f   :  { %v568_v22 = vadd.f32 %v567_v20, %v566_v17  ;;  %v563_v23 = vadd.f32 %v562_v21, %v561_v16 }
 0x411   :  { %v569_v7 = vrot.slane %v568_v22, 1 }
 0x413   :  { %v570_v24 = vadd.f32 %v569_v7, %v568_v22 }
 0x415   :  { %v577_v9 = vsel %vm328_vm4, %v570_v24, %v563_v23 }
 0x416   :  { %3648 = vmatmul.mubr.msk.f32.vlgmr.msra.gmra.mxu1 %vm125_vm1, %v577_v9 }
 0x417   :  { %3670 = vmatpush3.msra.mxu1 %v799_v0 }
 0x418   :  { %3671 = vmatprep.subr.mxu1 %v798_v47 }
 0x419   :  { %3672 = vmatpush3.msra.mxu1 %v798_v47 }
 0x41a   :  { %3673 = vmatprep.subr.mxu1 %v797_v50 }
 0x41b   :  { %3674 = vmatpush3.msra.mxu1 %v797_v50 }
 0x41c   :  { %3675 = vmatprep.subr.mxu1 %v796_v52 }
 0x41d   :  { %3676 = vmatpush3.msra.mxu1 %v796_v52 }
 0x41e   :  { %3680 = vmatprep.subr.mxu1 %v4235_v13 }
 0x4d6   :  { %v646_v25 = vpop.f32.mrf.mxu1 }
 0x4d7   :  { %v651_v14 = vadd.f32 %v4368_v18, %v646_v25  ;;  %v677_v18 = vld [vmem:[%s5277_s5 + $0x28] sm:$0xff] }
 0x4d8   :  { %v3649_v26 = vpop.f32.mrf.mxu1  ;;  %3655 = vmatpush3.msra.mxu0 %v677_v18 }
 0x4d9   :  { %3830 = vtanh.f32 %v651_v14  ;;  %656 = vrot.lane.b32.xlu1 %v651_v14, %s4237_s1  ;;  %3656 = vmatprep.subr.mxu0 %v4235_v13 }
 0x4dd   :  { %680 = vrot.lane.b32.xlu1 %v4375_v19, %s4241_s13  ;;  %v676_v19 = vld [vmem:[%s5277_s5 + $0x20] sm:$0xff] }
 0x4de   :  { %3657 = vmatpush3.msra.mxu0 %v676_v19 }
 0x4df   :  { %3658 = vmatprep.subr.mxu0 %v4235_v13 }
 0x4e0   :  { %3659 = vmatpush3.msra.mxu0 %v675_v30 }
 0x4e1   :  { %3660 = vmatprep.subr.mxu0 %v4235_v13 }
 0x4e2   :  { %3661 = vmatpush3.msra.mxu0 %v674_v31 }
 0x4e3   :  { %3662 = vmatprep.subr.mxu0 %v4235_v13 }
 0x4e4   :  { %3663 = vmatpush3.msra.mxu0 %v673_v32 }
 0x4e5   :  { %3664 = vmatprep.subr.mxu0 %v4235_v13 }
 0x4e6   :  { %v3831_v29 = vpop.eup %3830  ;;  %3665 = vmatpush3.msra.mxu0 %v672_v33 }
 0x4e7   :  { %668 = vrot.lane.b32.xlu0 %v3831_v29, %s4241_s13  ;;  %3691 = vmatprep.subr.mxu0 %v4235_v13 }
 0x54b   :  { %v657_v36 = vpop.permute.xlu1 %656 }
 0x54c   :  { %v659_v37 = vsel %vm125_vm1, %v653_v35, %v657_v36 }
 0x54d   :  { %v660_v38 = vsub.f32 0.0, %v659_v37 }
 0x54f   :  { %v661_v39 = vmul.f32 1.442695, %v660_v38  ;;  %v681_v45 = vpop.permute.xlu1 %680 }
 0x551   :  { %3832 = vpow2.f32 %v661_v39 }
 0x559   :  { %v669_v43 = vpop.permute.xlu0 %668 }
 0x55e   :  { %v3833_v40 = vpop.eup %3832 }
 0x55f   :  { %v663_v41 = vadd.f32 1.0, %v3833_v40 }
 0x561   :  { %3834 = vrcp.f32 %v663_v41 }
 0x56e   :  { %v3835_v42 = vpop.eup %3834 }
 0x56f   :  { %v671_v44 = vmul.f32 %v3835_v42, %v669_v43 }
 0x571   :  { %3667 = vmatmul.mubr.msk.f32.vlgmr.msra.gmra.mxu0 %vm683_vm6, %v671_v44 }
 0x572   :  { %3699 = vmatprep.mubr.msk.f32.mxu0 %vm4236_vm2, %v4235_v13  ;;  %3692 = vmatpush3.msra.mxu0 %v4520_v59 }
 0x573   :  { %3693 = vmatprep.subr.mxu0 %v4235_v13 }
 0x574   :  { %3694 = vmatpush3.msra.mxu0 %v4524_v61 }
 0x575   :  { %3695 = vmatprep.subr.mxu0 %v4235_v13 }
 0x576   :  { %3696 = vmatpush3.msra.mxu0 %v4527_v1 }
 0x577   :  { %3697 = vmatprep.subr.mxu0 %v4235_v13 }
 0x578   :  { %3698 = vmatpush3.msra.mxu0 %v4531_v12 }
 0x579   :  { %3713 = vmatprep.subr.mxu0 %v4235_v13 }
 0x631   :  { %v753_v46 = vpop.f32.mrf.mxu0 }
 0x632   :  { %v754_v48 = vadd.f32 %v753_v46, %v681_v45 }
 0x633   :  { %v3668_v49 = vpop.f32.mrf.mxu0 }
 0x634   :  { %v764_v51 = vrot.slane %v754_v48, %v4390_v57 }
 0x636   :  { %v765_v53 = vcombine.high %v764_v51, %v764_v51  ;;  %v772_v54 = vrot.slane %v764_v51, %v4390_v57 }
 0x638   :  { %v783_v55 = vrot.slane %v772_v54, %v4324_v2  ;;  %v779_v56 = vrot.slane %v765_v53, %v4390_v57  ;;  %v4242_v54 = vmov 7  }
 0x639   :  { %3809 = vset.pattern.permute.xlu0 %v4242_v54 }
 0x63a   :  { %788 = vrot.lane.b32.xlu0 %v783_v55, %s4237_s1  ;;  %v787_v58 = vrot.slane %v779_v56, %v4324_v2 }
 0x63c   :  { %790 = vrot.lane.b32.xlu1 %v787_v58, %s4237_s1 }
 0x6ac   :  { %v789_v62 = vpop.permute.xlu0 %788 }
 0x6ad   :  { %v794_v63 = vadd.f32 %v789_v62, %v4396_v4 }
 0x6ae   :  { %v791_v5 = vpop.permute.xlu1 %790 }
 0x6af   :  { %v795_v6 = vadd.f32 %v4393_v60, %v791_v5  ;;  %808 = vrot.lane.b32.xlu0 %v794_v63, %s4241_s13 }
 0x6b1   :  { %810 = vrot.lane.b32.xlu1 %v795_v6, %s4241_s13 }
 0x721   :  { %v809_v8 = vpop.permute.xlu0 %808 }
 0x722   :  { %3677 = vmatprep.mubr.msk.f32.mxu1 %vm125_vm1, %v809_v8 }
 0x723   :  { %v811_v10 = vpop.permute.xlu1 %810 }
 0x724   :  { %3678 = vmatmul.mubr.msk.f32.vlgmr.msra.gmra.mxu1 %vm125_vm1, %v811_v10 }
 0x725   :  { %3681 = vmatpush3.msra.mxu1 %v4520_v59  ;;  %3688 = vmatprep.mubr.msk.f32.mxu1 %vm4236_vm2, %v4235_v13 }
 0x726   :  { %3682 = vmatprep.subr.mxu1 %v4235_v13 }
 0x727   :  { %3683 = vmatpush3.msra.mxu1 %v4524_v61 }
 0x728   :  { %3684 = vmatprep.subr.mxu1 %v4235_v13 }
 0x729   :  { %3685 = vmatpush3.msra.mxu1 %v4527_v1 }
 0x72a   :  { %3686 = vmatprep.subr.mxu1 %v4235_v13 }
 0x72b   :  { %3687 = vmatpush3.msra.mxu1 %v4531_v12 }
 0x72c   :  { %3689 = vmatmul.mubr.f32.vlgmr.msra.gmra.mxu1 %v4235_v13  ;;  %3702 = vmatprep.subr.mxu1 %v4235_v13 }
 0x72d   :  { %3703 = vmatpush3.msra.mxu1 %v4520_v59  ;;  %3710 = vmatprep.mubr.msk.f32.mxu1 %vm4236_vm2, %v4235_v13 }
 0x72e   :  { %3704 = vmatprep.subr.mxu1 %v4235_v13 }
 0x72f   :  { %3705 = vmatpush3.msra.mxu1 %v4524_v61 }
 0x730   :  { %3706 = vmatprep.subr.mxu1 %v4235_v13 }
 0x731   :  { %3707 = vmatpush3.msra.mxu1 %v4527_v1 }
 0x732   :  { %3708 = vmatprep.subr.mxu1 %v4235_v13 }
 0x733   :  { %3709 = vmatpush3.msra.mxu1 %v4531_v12 }
 0x734   :  { %3724 = vmatprep.subr.mxu1 %v4235_v13 }
 0x7e4   :  { %v3679_v60 = vpop.f32.mrf.mxu1 }
 0x7e5   :  { %v4568_v21 = vadd.f32 %v3679_v60, %v3518_v11 }
 0x7e6   :  { %v882_v4 = vpop.f32.mrf.mxu1 }
 0x7e7   :  { %v4566_v16 = vadd.f32 %v3518_v11, %v882_v4 }
 0x7ec   :  { %v968_v15 = vpop.f32.mrf.mxu1 }
 0x7ed   :  { %v973_v17 = vrot.slane %v968_v15, 1  ;;  %v978_v20 = vrot.slane %v968_v15, 2  ;;  %v976_v9 = vadd.f32 %v968_v15, %v4566_v16 }
 0x7ee   :  { %v3690_v22 = vpop.f32.mrf.mxu1 }
 0x7ef   :  { %v980_v7 = vadd.f32 %v973_v17, %v4566_v16  ;;  %v981_v23 = vadd.f32 %v978_v20, %v4568_v21  ;;  %v977_v24 = vadd.f32 %v973_v17, %v4568_v21  ;;  %v982_v30 = vsub.f32 0.0, %v976_v9 }
 0x7f1   :  { %3836 = vtanh.f32 %v980_v7  ;;  %v1030_v28 = vsub.f32 0.0, %v980_v7  ;;  %v1031_v18 = vsub.f32 0.0, %v981_v23  ;;  %v983_v29 = vsub.f32 0.0, %v977_v24 }
 0x7f2   :  { %3838 = vtanh.f32 %v981_v23  ;;  %v984_v33 = vmul.f32 1.442695, %v982_v30 }
 0x7f3   :  { %3840 = vtanh.f32 %v977_v24  ;;  %v1032_v19 = vmul.f32 1.442695, %v1030_v28  ;;  %v1034_v31 = vmul.f32 1.442695, %v1031_v18  ;;  %v986_v32 = vmul.f32 1.442695, %v983_v29 }
 0x7f4   :  { %3842 = vtanh.f32 %v976_v9  ;;  %v4588_v9 = vsel %vm100_vm5, 1, %v4240_v34 }
 0x7f5   :  { %3844 = vpow2.f32 %v1032_v19 }
 0x7f6   :  { %3846 = vpow2.f32 %v1034_v31 }
 0x7f7   :  { %3848 = vpow2.f32 %v986_v32 }
 0x7f8   :  { %3850 = vpow2.f32 %v984_v33 }
 0x7fe   :  { %v3837_v25 = vpop.eup %3836 }
 0x7ff   :  { %1048 = vrot.lane.b32.xlu0 %v3837_v25, %s4241_s13  ;;  %v3839_v14 = vpop.eup %3838 }
 0x800   :  { %1050 = vrot.lane.b32.xlu1 %v3839_v14, %s4241_s13  ;;  %v3841_v26 = vpop.eup %3840 }
 0x801   :  { %v3843_v27 = vpop.eup %3842 }
 0x802   :  { %v3845_v35 = vpop.eup %3844 }
 0x803   :  { %1002 = vrot.lane.b32.xlu0 %v3841_v26, %s4241_s13  ;;  %v3847_v36 = vpop.eup %3846  ;;  %v1036_v37 = vadd.f32 1.0, %v3845_v35 }
 0x804   :  { %1000 = vrot.lane.b32.xlu1 %v3843_v27, %s4241_s13  ;;  %v3849_v38 = vpop.eup %3848  ;;  %v1037_v39 = vadd.f32 1.0, %v3847_v36 }
 0x805   :  { %v3851_v40 = vpop.eup %3850  ;;  %v989_v41 = vadd.f32 1.0, %v3849_v38  ;;  %3852 = vrcp.f32 %v1036_v37 }
 0x806   :  { %v988_v42 = vadd.f32 1.0, %v3851_v40  ;;  %3854 = vrcp.f32 %v1037_v39 }
 0x807   :  { %3856 = vrcp.f32 %v989_v41 }
 0x808   :  { %3858 = vrcp.f32 %v988_v42 }
 0x812   :  { %v3853_v43 = vpop.eup %3852 }
 0x813   :  { %v3855_v46 = vpop.eup %3854  ;;  %v1044_v55 = vmul.f32 0.0, %v3853_v43 }
 0x814   :  { %v3857_v48 = vpop.eup %3856  ;;  %v1045_v62 = vmul.f32 0.0, %v3855_v46 }
 0x815   :  { %v3859_v51 = vpop.eup %3858  ;;  %v997_v8 = vmul.f32 0.0, %v3857_v48 }
 0x816   :  { %v996_v11 = vmul.f32 0.0, %v3859_v51 }
 0x871   :  { %v1049_v44 = vpop.permute.xlu0 %1048 }
 0x872   :  { %v1054_v45 = vmul.f32 %v3853_v43, %v1049_v44  ;;  %v1051_v0 = vpop.permute.xlu1 %1050 }
 0x873   :  { %v1055_v47 = vmul.f32 %v3855_v46, %v1051_v0 }
 0x874   :  { %1058 = vrot.lane.b32.xlu0 %v1054_v45, %s4233_s11 }
 0x875   :  { %v1003_v49 = vpop.permute.xlu0 %1002  ;;  %1060 = vrot.lane.b32.xlu1 %v1055_v47, %s4233_s11 }
 0x876   :  { %v1007_v50 = vmul.f32 %v3857_v48, %v1003_v49  ;;  %v1001_v52 = vpop.permute.xlu1 %1000 }
 0x877   :  { %v1006_v53 = vmul.f32 %v3859_v51, %v1001_v52 }
 0x878   :  { %1012 = vrot.lane.b32.xlu0 %v1007_v50, %s4233_s11 }
 0x879   :  { %1010 = vrot.lane.b32.xlu1 %v1006_v53, %s4233_s11 }
 0x8e6   :  { %v1059_v56 = vpop.permute.xlu0 %1058 }
 0x8e7   :  { %v1064_v58 = vadd.f32 %v1059_v56, %v1044_v55  ;;  %v1061_v63 = vpop.permute.xlu1 %1060 }
 0x8e8   :  { %v1065_v6 = vadd.f32 %v1061_v63, %v1045_v62 }
 0x8e9   :  { %3860 = vtanh.f32 %v1064_v58  ;;  %v1119_v5 = vrot.slane %v1064_v58, 7 }
 0x8ea   :  { %v1013_v10 = vpop.permute.xlu0 %1012  ;;  %3862 = vtanh.f32 %v1065_v6  ;;  %v1120_v60 = vrot.slane %v1065_v6, 6 }
 0x8eb   :  { %v1017_v4 = vadd.f32 %v1013_v10, %v997_v8  ;;  %v1011_v15 = vpop.permute.xlu1 %1010 }
 0x8ec   :  { %v1016_v20 = vadd.f32 %v1011_v15, %v996_v11  ;;  %v1121_v22 = vsel %vm328_vm4, %v1120_v60, %v1119_v5 }
 0x8ed   :  { %3864 = vtanh.f32 %v1017_v4  ;;  %v1111_v17 = vrot.slane %v1017_v4, 7 }
 0x8ee   :  { %3866 = vtanh.f32 %v1016_v20 }
 0x8ef   :  { %v1112_v7 = vsel %vm328_vm4, %v1111_v17, %v1016_v20 }
 0x8f6   :  { %v3861_v23 = vpop.eup %3860 }
 0x8f7   :  { %1070 = vrot.lane.b32.xlu0 %v3861_v23, %s4237_s1  ;;  %v3863_v24 = vpop.eup %3862 }
 0x8f8   :  { %1072 = vrot.lane.b32.xlu1 %v3863_v24, %s4237_s1 }
 0x8fa   :  { %v3865_v25 = vpop.eup %3864 }
 0x8fb   :  { %1092 = vperm.xlu0 %3809, %v4588_v9   ;;  %v3867_v14 = vpop.eup %3866 }
 0x8fc   :  { %1024 = vrot.lane.b32.xlu1 %v3865_v25, %s4237_s1 }
 0x900   :  { %1022 = vrot.lane.b32.xlu1 %v3867_v14, %s4237_s1 }
 0x904   :  { %1080 = vperm.xlu1 %3810, %v4588_v9  }
 0x969   :  { %v1071_v26 = vpop.permute.xlu0 %1070 }
 0x96a   :  { %v1076_v27 = vmul.f32 %v3853_v43, %v1071_v26  ;;  %v1073_v28 = vpop.permute.xlu1 %1072 }
 0x96b   :  { %v1077_v29 = vmul.f32 %v3855_v46, %v1073_v28 }
 0x96c   :  { %v1097_v18 = vrot.slane %v1076_v27, 7 }
 0x96d   :  { %v1098_v3 = vrot.slane %v1077_v29, 6 }
 0x96e   :  { %v1025_v34 = vpop.permute.xlu1 %1024 }
 0x96f   :  { %v1029_v19 = vmul.f32 %v3857_v48, %v1025_v34  ;;  %v1099_v30 = vsel %vm328_vm4, %v1098_v3, %v1097_v18 }
 0x970   :  { %1100 = vrot.lane.b32.xlu0 %v1099_v30, %s4233_s11 }
 0x971   :  { %v1085_v32 = vrot.slane %v1029_v19, 7 }
 0x972   :  { %v1023_v31 = vpop.permute.xlu1 %1022 }
 0x973   :  { %v1028_v33 = vmul.f32 %v3859_v51, %v1023_v31 }
 0x975   :  { %v1086_v35 = vsel %vm328_vm4, %v1085_v32, %v1028_v33 }
 0x976   :  { %1087 = vrot.lane.b32.xlu0 %v1086_v35, %s4243_s6  ;;  %v4600_v36 = vpop.permute.xlu0 %1092 }
 0x977   :  { %vm1094_vm7 = vcmp.eq.s32.totalorder %v4600_v36, 1 }
 0x97a   :  { %1122 = vrot.lane.b32.xlu0 %v1121_v22, %s4244_s15 }
 0x97f   :  { %v4607_v39 = vpop.permute.xlu1 %1080 }
 0x980   :  { %vm1082_vm8 = vcmp.eq.s32.totalorder %v4607_v39, 1 }
 0x9e2   :  { %v1101_v37 = vpop.permute.xlu0 %1100 }
 0x9e3   :  { %v4605_v38 = vsel %vm1094_vm7, %v1101_v37, 0.0 }
 0x9e4   :  { %1105 = vrot.lane.b32.xlu1 %v4605_v38, %s4233_s11 }
 0x9e8   :  { %1113 = vrot.lane.b32.xlu1 %v1112_v7, %s4245_s16  ;;  %v1088_v40 = vpop.permute.xlu0 %1087 }
 0x9e9   :  { %v1090_v41 = vsel %vm1082_vm8, %v1088_v40, 0.0 }
 0x9ea   :  { %v1138_v42 = vrot.slane %v1090_v41, %v4390_v57 }
 0x9ec   :  { %v1139_v43 = vcombine.high %v1138_v42, %v1138_v42  ;;  %v1146_v44 = vrot.slane %v1138_v42, %v4390_v57  ;;  %v1123_v45 = vpop.permute.xlu0 %1122 }
 0x9ed   :  { %v1125_v46 = vsel %vm1094_vm7, %v1123_v45, 0.0 }
 0x9ee   :  { %v1153_v0 = vrot.slane %v1139_v43, %v4390_v57  ;;  %1127 = vrot.lane.b32.xlu0 %v1125_v46, %s4233_s11  ;;  %1157 = vst.msk [vmem:[#allocation2] sm:$0x1] %vm1156_vm9, %v1146_v44  ;;  %v4246_v46 = vmov 6  }
 0x9ef   :  { %3811 = vset.pattern.permute.xlu1 %v4246_v46 }
 0x9f0   :  { %1158 = vst.msk [vmem:[#allocation2 + $0x8] sm:$0x1] %vm1156_vm9, %v1153_v0 }
 0xa56   :  { %v1106_v47 = vpop.permute.xlu1 %1105 }
 0xa57   :  { %v4624_v48 = vsel %vm158_vm3, %v1090_v41, %v1106_v47 }
 0xa58   :  { %3700 = vmatmul.mubr.msk.f32.vlgmr.msra.gmra.mxu0 %vm125_vm1, %v4624_v48 }
 0xa59   :  { %3714 = vmatpush3.msra.mxu0 %v4520_v59  ;;  %3721 = vmatprep.mubr.msk.f32.mxu0 %vm4236_vm2, %v4235_v13 }
 0xa5a   :  { %3715 = vmatprep.subr.mxu0 %v4235_v13  ;;  %v1114_v62 = vpop.permute.xlu1 %1113 }
 0xa5b   :  { %3716 = vmatpush3.msra.mxu0 %v4524_v61  ;;  %v1116_v5 = vsel %vm1082_vm8, %v1114_v62, 0.0 }
 0xa5c   :  { %3717 = vmatprep.subr.mxu0 %v4235_v13 }
 0xa5d   :  { %3718 = vmatpush3.msra.mxu0 %v4527_v1 }
 0xa5e   :  { %3719 = vmatprep.subr.mxu0 %v4235_v13 }
 0xa5f   :  { %3720 = vmatpush3.msra.mxu0 %v4531_v12 }
 0xa60   :  { %3735 = vmatprep.subr.mxu0 %v4235_v13  ;;  %v1128_v63 = vpop.permute.xlu0 %1127 }
 0xa61   :  { %v4645_v8 = vsel %vm158_vm3, %v1116_v5, %v1128_v63 }
 0xa62   :  { %v1354_v60 = vrot.slane %v4645_v8, 3  ;;  %v1353_v4 = vrot.slane %v4645_v8, 2  ;;  %v1298_v41 = vrot.slane %v4645_v8, 7 }
 0xb18   :  { %v1267_v49 = vpop.f32.mrf.mxu0 }
 0xb19   :  { %v1277_v50 = vrot.slane %v1267_v49, 2  ;;  %v1278_v51 = vrot.slane %v1267_v49, 3  ;;  %v1272_v55 = vrot.slane %v1267_v49, 7  ;;  %v1276_v58 = vadd.f32 %v1267_v49, %v4568_v21 }
 0xb1a   :  { %v3701_v52 = vpop.f32.mrf.mxu0 }
 0xb1b   :  { %v1281_v53 = vadd.f32 %v1277_v50, %v4566_v16  ;;  %v1282_v54 = vadd.f32 %v1278_v51, %v4568_v21  ;;  %v1275_v56 = vadd.f32 %v1272_v55, %v4566_v16  ;;  %v1284_v24 = vsub.f32 0.0, %v1276_v58 }
 0xb1d   :  { %3868 = vtanh.f32 %v1281_v53  ;;  %v1339_v17 = vsub.f32 0.0, %v1281_v53  ;;  %v1340_v20 = vsub.f32 0.0, %v1282_v54  ;;  %v1283_v23 = vsub.f32 0.0, %v1275_v56 }
 0xb1e   :  { %3870 = vtanh.f32 %v1282_v54  ;;  %v1287_v14 = vmul.f32 1.442695, %v1284_v24 }
 0xb1f   :  { %3872 = vtanh.f32 %v1275_v56  ;;  %v1341_v22 = vmul.f32 1.442695, %v1339_v17  ;;  %v1343_v7 = vmul.f32 1.442695, %v1340_v20  ;;  %v1285_v25 = vmul.f32 1.442695, %v1283_v23 }
 0xb20   :  { %3874 = vtanh.f32 %v1276_v58 }
 0xb21   :  { %3876 = vpow2.f32 %v1341_v22  ;;  %v4247_v22 = vmov 1  }
 0xb22   :  { %3878 = vpow2.f32 %v1343_v7  ;;  %3812 = vset.pattern.permute.xlu0 %v4247_v22 }
 0xb23   :  { %3880 = vpow2.f32 %v1285_v25 }
 0xb24   :  { %3882 = vpow2.f32 %v1287_v14 }
 0xb2a   :  { %v3869_v6 = vpop.eup %3868 }
 0xb2b   :  { %1365 = vrot.lane.b32.xlu1 %v3869_v6, %s4241_s13  ;;  %v3871_v10 = vpop.eup %3870 }
 0xb2c   :  { %1367 = vrot.lane.b32.xlu0 %v3871_v10, %s4241_s13  ;;  %v3873_v11 = vpop.eup %3872 }
 0xb2d   :  { %v3875_v15 = vpop.eup %3874 }
 0xb2e   :  { %v3877_v26 = vpop.eup %3876 }
 0xb2f   :  { %1357 = vrot.lane.b32.xlu1 %v1354_v60, %s4234_s20  ;;  %v3879_v27 = vpop.eup %3878  ;;  %v1345_v28 = vadd.f32 1.0, %v3877_v26 }
 0xb30   :  { %1355 = vrot.lane.b32.xlu0 %v1353_v4, %s4234_s20  ;;  %v1346_v18 = vadd.f32 1.0, %v3879_v27  ;;  %v3881_v29 = vpop.eup %3880 }
 0xb31   :  { %3884 = vrcp.f32 %v1345_v28  ;;  %v3883_v3 = vpop.eup %3882  ;;  %v1289_v34 = vadd.f32 1.0, %v3881_v29 }
 0xb32   :  { %3886 = vrcp.f32 %v1346_v18  ;;  %v1290_v19 = vadd.f32 1.0, %v3883_v3 }
 0xb33   :  { %1309 = vrot.lane.b32.xlu1 %v3873_v11, %s4241_s13  ;;  %3888 = vrcp.f32 %v1289_v34 }
 0xb34   :  { %1311 = vrot.lane.b32.xlu0 %v3875_v15, %s4241_s13  ;;  %3890 = vrcp.f32 %v1290_v19 }
 0xb3e   :  { %v3885_v30 = vpop.eup %3884 }
 0xb3f   :  { %v3887_v33 = vpop.eup %3886 }
 0xb40   :  { %v3889_v43 = vpop.eup %3888 }
 0xb41   :  { %v3891_v0 = vpop.eup %3890 }
 0xb9d   :  { %v1366_v31 = vpop.permute.xlu1 %1365 }
 0xb9e   :  { %v1371_v32 = vmul.f32 %v3885_v30, %v1366_v31  ;;  %v1368_v35 = vpop.permute.xlu0 %1367 }
 0xb9f   :  { %v1372_v37 = vmul.f32 %v3887_v33, %v1368_v35 }
 0xba0   :  { %1375 = vrot.lane.b32.xlu1 %v1371_v32, %s4233_s11 }
 0xba1   :  { %v1358_v40 = vpop.permute.xlu1 %1357  ;;  %1377 = vrot.lane.b32.xlu0 %v1372_v37, %s4233_s11 }
 0xba2   :  { %v1356_v42 = vpop.permute.xlu0 %1355  ;;  %v1362_v52 = vmul.f32 %v3887_v33, %v1358_v40 }
 0xba3   :  { %v1361_v50 = vmul.f32 %v3885_v30, %v1356_v42 }
 0xba4   :  { %1299 = vrot.lane.b32.xlu1 %v1298_v41, %s4233_s11 }
 0xba5   :  { %v1310_v44 = vpop.permute.xlu1 %1309  ;;  %1301 = vrot.lane.b32.xlu0 %v4645_v8, %s4233_s11 }
 0xba6   :  { %v1315_v45 = vmul.f32 %v3889_v43, %v1310_v44  ;;  %v1312_v47 = vpop.permute.xlu0 %1311 }
 0xba7   :  { %v1316_v49 = vmul.f32 %v3891_v0, %v1312_v47 }
 0xba8   :  { %1319 = vrot.lane.b32.xlu1 %v1315_v45, %s4233_s11 }
 0xba9   :  { %1321 = vrot.lane.b32.xlu0 %v1316_v49, %s4233_s11 }
 0xc12   :  { %v1376_v51 = vpop.permute.xlu1 %1375 }
 0xc13   :  { %v1381_v53 = vadd.f32 %v1376_v51, %v1361_v50  ;;  %v1378_v54 = vpop.permute.xlu0 %1377 }
 0xc14   :  { %v1382_v55 = vadd.f32 %v1378_v54, %v1362_v52 }
 0xc15   :  { %3892 = vtanh.f32 %v1381_v53  ;;  %v1438_v56 = vrot.slane %v1381_v53, 6 }
 0xc16   :  { %v1300_v58 = vpop.permute.xlu1 %1299  ;;  %3894 = vtanh.f32 %v1382_v55  ;;  %v1439_v62 = vrot.slane %v1382_v55, 5 }
 0xc17   :  { %v1302_v63 = vpop.permute.xlu0 %1301  ;;  %v1305_v5 = vmul.f32 %v3889_v43, %v1300_v58 }
 0xc18   :  { %v1440_v6 = vsel %vm328_vm4, %v1439_v62, %v1438_v56  ;;  %v1306_v60 = vmul.f32 %v3891_v0, %v1302_v63 }
 0xc1a   :  { %v1320_v10 = vpop.permute.xlu1 %1319 }
 0xc1b   :  { %v1325_v4 = vadd.f32 %v1320_v10, %v1305_v5  ;;  %v1322_v11 = vpop.permute.xlu0 %1321 }
 0xc1c   :  { %v1326_v15 = vadd.f32 %v1322_v11, %v1306_v60 }
 0xc1d   :  { %3896 = vtanh.f32 %v1325_v4  ;;  %v1430_v17 = vrot.slane %v1325_v4, 1 }
 0xc1e   :  { %3898 = vtanh.f32 %v1326_v15 }
 0xc1f   :  { %v1431_v20 = vsel %vm328_vm4, %v1326_v15, %v1430_v17 }
 0xc22   :  { %v3893_v7 = vpop.eup %3892 }
 0xc23   :  { %1387 = vrot.lane.b32.xlu1 %v3893_v7, %s4237_s1  ;;  %v3895_v23 = vpop.eup %3894 }
 0xc24   :  { %1389 = vrot.lane.b32.xlu0 %v3895_v23, %s4237_s1 }
 0xc27   :  { %1408 = vperm.xlu1 %3811, %v4588_v9  }
 0xc2a   :  { %v3897_v24 = vpop.eup %3896 }
 0xc2b   :  { %1331 = vrot.lane.b32.xlu0 %v3897_v24, %s4237_s1  ;;  %v3899_v25 = vpop.eup %3898 }
 0xc2c   :  { %1333 = vrot.lane.b32.xlu1 %v3899_v25, %s4237_s1 }
 0xc30   :  { %1419 = vrot.lane.b32.xlu1 %v4624_v48, %s4245_s16 }
 0xc95   :  { %v1388_v14 = vpop.permute.xlu1 %1387 }
 0xc96   :  { %v1393_v26 = vmul.f32 %v3885_v30, %v1388_v14  ;;  %v1390_v27 = vpop.permute.xlu0 %1389 }
 0xc97   :  { %v1394_v28 = vmul.f32 %v3887_v33, %v1390_v27 }
 0xc98   :  { %v1413_v18 = vrot.slane %v1393_v26, 6 }
 0xc99   :  { %v1414_v29 = vrot.slane %v1394_v28, 5 }
 0xc9b   :  { %v1415_v3 = vsel %vm328_vm4, %v1414_v29, %v1413_v18 }
 0xc9c   :  { %1416 = vrot.lane.b32.xlu0 %v1415_v3, %s4233_s11 }
 0xc9d   :  { %v1332_v34 = vpop.permute.xlu0 %1331 }
 0xc9e   :  { %v1337_v31 = vmul.f32 %v3889_v43, %v1332_v34 }
 0xca0   :  { %1396 = vperm.xlu0 %3812, %v4588_v9   ;;  %v1401_v35 = vrot.slane %v1337_v31, 1 }
 0xca2   :  { %v4675_v19 = vpop.permute.xlu1 %1408 }
 0xca3   :  { %vm1410_vm10 = vcmp.eq.s32.totalorder %v4675_v19, 1 }
 0xca4   :  { %1441 = vrot.lane.b32.xlu0 %v1440_v6, %s4244_s15 }
 0xca6   :  { %v1334_v32 = vpop.permute.xlu1 %1333 }
 0xca7   :  { %v1338_v37 = vmul.f32 %v3891_v0, %v1334_v32 }
 0xca8   :  { %1432 = vrot.lane.b32.xlu0 %v1431_v20, %s4245_s16 }
 0xca9   :  { %v1402_v30 = vsel %vm328_vm4, %v1338_v37, %v1401_v35 }
 0xcaa   :  { %1403 = vrot.lane.b32.xlu1 %v1402_v30, %s4243_s6  ;;  %v1420_v33 = vpop.permute.xlu1 %1419 }
 0xd0e   :  { %v4682_v40 = vpop.permute.xlu0 %1416 }
 0xd0f   :  { %v1422_v41 = vsel %vm1410_vm10, %v4682_v40, %v1420_v33 }
 0xd10   :  { %1424 = vrot.lane.b32.xlu1 %v1422_v41, %s4233_s11 }
 0xd14   :  { %1444 = vrot.lane.b32.xlu1 %v4645_v8, %s4245_s16 }
 0xd1b   :  { %v4690_v42 = vpop.permute.xlu0 %1396 }
 0xd1c   :  { %v1404_v43 = vpop.permute.xlu1 %1403  ;;  %vm1398_vm11 = vcmp.eq.s32.totalorder %v4690_v42, 1 }
 0xd1d   :  { %v1453_v44 = vsel %vm1398_vm11, %v1404_v43, 0.0  ;;  %v1406_v49 = vsel %vm1398_vm11, %v1404_v43, %v4624_v48 }
 0xd1e   :  { %v1461_v45 = vrot.slane %v1453_v44, %v4390_v57 }
 0xd1f   :  { %v1442_v52 = vpop.permute.xlu0 %1441 }
 0xd20   :  { %v1462_v46 = vcombine.high %v1461_v45, %v1461_v45  ;;  %v1469_v0 = vrot.slane %v1461_v45, %v4390_v57 }
 0xd22   :  { %v1476_v47 = vrot.slane %v1462_v46, %v4390_v57  ;;  %1479 = vst.msk [vmem:[#allocation2 + $0x1] sm:$0x1] %vm1156_vm9, %v1469_v0 }
 0xd23   :  { %v1433_v60 = vpop.permute.xlu0 %1432 }
 0xd24   :  { %1480 = vst.msk [vmem:[#allocation2 + $0x9] sm:$0x1] %vm1156_vm9, %v1476_v47  ;;  %v1435_v11 = vsel %vm1398_vm11, %v1433_v60, %v4645_v8 }
 0xd82   :  { %v1425_v50 = vpop.permute.xlu1 %1424 }
 0xd83   :  { %v4704_v51 = vsel %vm158_vm3, %v1406_v49, %v1425_v50 }
 0xd84   :  { %3711 = vmatmul.mubr.msk.f32.vlgmr.msra.gmra.mxu1 %vm125_vm1, %v4704_v51 }
 0xd85   :  { %3725 = vmatpush3.msra.mxu1 %v4520_v59  ;;  %3732 = vmatprep.mubr.msk.f32.mxu1 %vm4236_vm2, %v4235_v13 }
 0xd86   :  { %v1445_v53 = vpop.permute.xlu1 %1444  ;;  %3726 = vmatprep.subr.mxu1 %v4235_v13 }
 0xd87   :  { %v1447_v54 = vsel %vm1410_vm10, %v1442_v52, %v1445_v53  ;;  %3727 = vmatpush3.msra.mxu1 %v4524_v61 }
 0xd88   :  { %1449 = vrot.lane.b32.xlu1 %v1447_v54, %s4233_s11  ;;  %3728 = vmatprep.subr.mxu1 %v4235_v13 }
 0xd89   :  { %3729 = vmatpush3.msra.mxu1 %v4527_v1 }
 0xd8a   :  { %3730 = vmatprep.subr.mxu1 %v4235_v13 }
 0xd8b   :  { %3731 = vmatpush3.msra.mxu1 %v4531_v12 }
 0xd8c   :  { %3746 = vmatprep.subr.mxu1 %v4235_v13 }
 0xdfa   :  { %v1450_v4 = vpop.permute.xlu1 %1449 }
 0xdfb   :  { %v4729_v17 = vsel %vm158_vm3, %v1435_v11, %v1450_v4 }
 0xdfc   :  { %v1678_v22 = vrot.slane %v4729_v17, 3  ;;  %v1679_v7 = vrot.slane %v4729_v17, 4  ;;  %v1622_v50 = vrot.slane %v4729_v17, 6  ;;  %v1623_v52 = vrot.slane %v4729_v17, 7 }
 0xe44   :  { %v1590_v48 = vpop.f32.mrf.mxu1 }
 0xe45   :  { %v1601_v55 = vrot.slane %v1590_v48, 3  ;;  %v1602_v56 = vrot.slane %v1590_v48, 4  ;;  %v1595_v5 = vrot.slane %v1590_v48, 6  ;;  %v1596_v6 = vrot.slane %v1590_v48, 7 }
 0xe46   :  { %v3712_v58 = vpop.f32.mrf.mxu1 }
 0xe47   :  { %v1605_v62 = vadd.f32 %v1601_v55, %v4566_v16  ;;  %v1606_v63 = vadd.f32 %v1602_v56, %v4568_v21  ;;  %v1599_v1 = vadd.f32 %v1595_v5, %v4566_v16  ;;  %v1600_v10 = vadd.f32 %v1596_v6, %v4568_v21 }
 0xe49   :  { %3900 = vtanh.f32 %v1605_v62  ;;  %v1664_v8 = vsub.f32 0.0, %v1605_v62  ;;  %v1665_v25 = vsub.f32 0.0, %v1606_v63  ;;  %v1607_v27 = vsub.f32 0.0, %v1599_v1 }
 0xe4a   :  { %3902 = vtanh.f32 %v1606_v63  ;;  %v1608_v28 = vsub.f32 0.0, %v1600_v10  ;;  %v4248_v62 = vmov 5  }
 0xe4b   :  { %3904 = vtanh.f32 %v1599_v1  ;;  %v1666_v14 = vmul.f32 1.442695, %v1664_v8  ;;  %v1668_v26 = vmul.f32 1.442695, %v1665_v25  ;;  %v1609_v18 = vmul.f32 1.442695, %v1607_v27  ;;  %3813 = vset.pattern.permute.xlu0 %v4248_v62 }
 0xe4c   :  { %3906 = vtanh.f32 %v1600_v10  ;;  %v1611_v29 = vmul.f32 1.442695, %v1608_v28 }
 0xe4d   :  { %3908 = vpow2.f32 %v1666_v14 }
 0xe4e   :  { %3910 = vpow2.f32 %v1668_v26 }
 0xe4f   :  { %3912 = vpow2.f32 %v1609_v18 }
 0xe50   :  { %3914 = vpow2.f32 %v1611_v29 }
 0xe56   :  { %v3901_v15 = vpop.eup %3900 }
 0xe57   :  { %v3903_v20 = vpop.eup %3902  ;;  %1690 = vrot.lane.b32.xlu0 %v3901_v15, %s4241_s13 }
 0xe58   :  { %1692 = vrot.lane.b32.xlu1 %v3903_v20, %s4241_s13  ;;  %v3905_v23 = vpop.eup %3904 }
 0xe59   :  { %v3907_v24 = vpop.eup %3906 }
 0xe5a   :  { %v3909_v3 = vpop.eup %3908 }
 0xe5b   :  { %1680 = vrot.lane.b32.xlu0 %v1678_v22, %s4234_s20  ;;  %v3911_v34 = vpop.eup %3910  ;;  %v1670_v31 = vadd.f32 1.0, %v3909_v3 }
 0xe5c   :  { %1682 = vrot.lane.b32.xlu1 %v1679_v7, %s4234_s20  ;;  %v1671_v32 = vadd.f32 1.0, %v3911_v34  ;;  %v3913_v35 = vpop.eup %3912  ;;  %v4249_v34 = vmov 2  }
 0xe5d   :  { %3916 = vrcp.f32 %v1670_v31  ;;  %v3915_v37 = vpop.eup %3914  ;;  %v1613_v30 = vadd.f32 1.0, %v3913_v35 }
 0xe5e   :  { %3918 = vrcp.f32 %v1671_v32  ;;  %v1614_v33 = vadd.f32 1.0, %v3915_v37 }
 0xe5f   :  { %1634 = vrot.lane.b32.xlu0 %v3905_v23, %s4241_s13  ;;  %3920 = vrcp.f32 %v1613_v30 }
 0xe60   :  { %1636 = vrot.lane.b32.xlu1 %v3907_v24, %s4241_s13  ;;  %3922 = vrcp.f32 %v1614_v33 }
 0xe6a   :  { %v3917_v41 = vpop.eup %3916 }
 0xe6b   :  { %v3919_v44 = vpop.eup %3918 }
 0xe6c   :  { %v3921_v53 = vpop.eup %3920 }
 0xe6d   :  { %v3923_v48 = vpop.eup %3922 }
 0xec9   :  { %v1691_v43 = vpop.permute.xlu0 %1690 }
 0xeca   :  { %v1693_v45 = vpop.permute.xlu1 %1692  ;;  %v1696_v46 = vmul.f32 %v3917_v41, %v1691_v43 }
 0xecb   :  { %v1697_v0 = vmul.f32 %v3919_v44, %v1693_v45 }
 0xecc   :  { %1700 = vrot.lane.b32.xlu0 %v1696_v46, %s4233_s11 }
 0xecd   :  { %1702 = vrot.lane.b32.xlu1 %v1697_v0, %s4233_s11  ;;  %v1681_v47 = vpop.permute.xlu0 %1680 }
 0xece   :  { %v1683_v49 = vpop.permute.xlu1 %1682  ;;  %v1686_v63 = vmul.f32 %v3917_v41, %v1681_v47 }
 0xecf   :  { %v1687_v5 = vmul.f32 %v3919_v44, %v1683_v49 }
 0xed0   :  { %1624 = vrot.lane.b32.xlu0 %v1622_v50, %s4233_s11 }
 0xed1   :  { %1626 = vrot.lane.b32.xlu1 %v1623_v52, %s4233_s11  ;;  %v1635_v54 = vpop.permute.xlu0 %1634 }
 0xed2   :  { %v1637_v55 = vpop.permute.xlu1 %1636  ;;  %v1640_v56 = vmul.f32 %v3921_v53, %v1635_v54 }
 0xed3   :  { %v1641_v58 = vmul.f32 %v3923_v48, %v1637_v55 }
 0xed4   :  { %1644 = vrot.lane.b32.xlu0 %v1640_v56, %s4233_s11 }
 0xed5   :  { %1646 = vrot.lane.b32.xlu1 %v1641_v58, %s4233_s11 }
 0xf3e   :  { %v1701_v6 = vpop.permute.xlu0 %1700 }
 0xf3f   :  { %v1703_v1 = vpop.permute.xlu1 %1702  ;;  %v1706_v10 = vadd.f32 %v1701_v6, %v1686_v63 }
 0xf40   :  { %v1707_v60 = vadd.f32 %v1703_v1, %v1687_v5 }
 0xf41   :  { %3924 = vtanh.f32 %v1706_v10  ;;  %v1765_v4 = vrot.slane %v1706_v10, 5 }
 0xf42   :  { %3926 = vtanh.f32 %v1707_v60  ;;  %v1766_v11 = vrot.slane %v1707_v60, 4  ;;  %v1625_v15 = vpop.permute.xlu0 %1624 }
 0xf43   :  { %v1627_v20 = vpop.permute.xlu1 %1626  ;;  %v1630_v7 = vmul.f32 %v3921_v53, %v1625_v15 }
 0xf44   :  { %v1767_v22 = vsel %vm328_vm4, %v1766_v11, %v1765_v4  ;;  %v1631_v23 = vmul.f32 %v3923_v48, %v1627_v20 }
 0xf46   :  { %v1645_v24 = vpop.permute.xlu0 %1644 }
 0xf47   :  { %v1647_v8 = vpop.permute.xlu1 %1646  ;;  %v1650_v25 = vadd.f32 %v1645_v24, %v1630_v7 }
 0xf48   :  { %v1651_v14 = vadd.f32 %v1647_v8, %v1631_v23 }
 0xf49   :  { %3928 = vtanh.f32 %v1650_v25  ;;  %v1756_v26 = vrot.slane %v1650_v25, 2 }
 0xf4a   :  { %v1757_v27 = vrot.slane %v1651_v14, 1  ;;  %3930 = vtanh.f32 %v1651_v14 }
 0xf4c   :  { %v1758_v28 = vsel %vm328_vm4, %v1757_v27, %v1756_v26 }
 0xf4e   :  { %v3925_v18 = vpop.eup %3924 }
 0xf4f   :  { %v3927_v29 = vpop.eup %3926  ;;  %1712 = vrot.lane.b32.xlu0 %v3925_v18, %s4237_s1 }
 0xf50   :  { %1714 = vrot.lane.b32.xlu1 %v3927_v29, %s4237_s1 }
 0xf53   :  { %1734 = vperm.xlu0 %3813, %v4588_v9  }
 0xf56   :  { %v3929_v3 = vpop.eup %3928 }
 0xf57   :  { %1656 = vrot.lane.b32.xlu1 %v3929_v3, %s4237_s1  ;;  %3814 = vset.pattern.permute.xlu0 %v4249_v34  ;;  %v3931_v31 = vpop.eup %3930 }
 0xf5b   :  { %1658 = vrot.lane.b32.xlu1 %v3931_v31, %s4237_s1 }
 0xf5f   :  { %1745 = vrot.lane.b32.xlu1 %v4704_v51, %s4245_s16 }
 0xfc1   :  { %v1713_v32 = vpop.permute.xlu0 %1712 }
 0xfc2   :  { %v1715_v35 = vpop.permute.xlu1 %1714  ;;  %v1718_v37 = vmul.f32 %v3917_v41, %v1713_v32 }
 0xfc3   :  { %v1719_v30 = vmul.f32 %v3919_v44, %v1715_v35 }
 0xfc4   :  { %v1739_v33 = vrot.slane %v1718_v37, 5 }
 0xfc5   :  { %v1740_v43 = vrot.slane %v1719_v30, 4 }
 0xfc7   :  { %v1741_v45 = vsel %vm328_vm4, %v1740_v43, %v1739_v33 }
 0xfc8   :  { %1742 = vrot.lane.b32.xlu0 %v1741_v45, %s4233_s11 }
 0xfc9   :  { %v1657_v46 = vpop.permute.xlu1 %1656 }
 0xfca   :  { %v1662_v0 = vmul.f32 %v3921_v53, %v1657_v46 }
 0xfcc   :  { %1721 = vperm.xlu0 %3814, %v4588_v9   ;;  %v1726_v50 = vrot.slane %v1662_v0, 2 }
 0xfcd   :  { %v1659_v47 = vpop.permute.xlu1 %1658 }
 0xfce   :  { %v1663_v49 = vmul.f32 %v3923_v48, %v1659_v47  ;;  %v4763_v41 = vpop.permute.xlu0 %1734 }
 0xfcf   :  { %vm1736_vm12 = vcmp.eq.s32.totalorder %v4763_v41, 1 }
 0xfd0   :  { %v1727_v52 = vrot.slane %v1663_v49, 1  ;;  %1768 = vrot.lane.b32.xlu0 %v1767_v22, %s4244_s15 }
 0xfd1   :  { %v1746_v44 = vpop.permute.xlu1 %1745 }
 0xfd2   :  { %v1728_v54 = vsel %vm328_vm4, %v1727_v52, %v1726_v50 }
 0xfd3   :  { %1729 = vrot.lane.b32.xlu1 %v1728_v54, %s4243_s6 }
 0xfd4   :  { %1759 = vrot.lane.b32.xlu0 %v1758_v28, %s4245_s16 }
0x103a   :  { %v4766_v53 = vpop.permute.xlu0 %1742 }
0x103b   :  { %v1748_v48 = vsel %vm1736_vm12, %v4766_v53, %v1746_v44 }
0x103c   :  { %1750 = vrot.lane.b32.xlu1 %v1748_v48, %s4233_s11 }
0x1040   :  { %1771 = vrot.lane.b32.xlu1 %v4729_v17, %s4245_s16 }
0x1045   :  { %v1730_v56 = vpop.permute.xlu1 %1729 }
0x1047   :  { %v4774_v55 = vpop.permute.xlu0 %1721 }
0x1048   :  { %vm1723_vm13 = vcmp.eq.s32.totalorder %v4774_v55, 1 }
0x1049   :  { %v1780_v58 = vsel %vm1723_vm13, %v1730_v56, 0.0  ;;  %v1732_v10 = vsel %vm1723_vm13, %v1730_v56, %v4704_v51  ;;  %v4801_v51 = vld [vmem:[#allocation11 + $0x10] sm:$0xff] }
0x104a   :  { %v1788_v62 = vrot.slane %v1780_v58, %v4390_v57 }
0x104b   :  { %v1769_v4 = vpop.permute.xlu0 %1768 }
0x104c   :  { %v1789_v63 = vcombine.high %v1788_v62, %v1788_v62  ;;  %v1796_v5 = vrot.slane %v1788_v62, %v4390_v57 }
0x104e   :  { %1806 = vst.msk [vmem:[#allocation2 + $0x2] sm:$0x1] %vm1156_vm9, %v1796_v5  ;;  %v1803_v6 = vrot.slane %v1789_v63, %v4390_v57 }
0x104f   :  { %v1760_v14 = vpop.permute.xlu0 %1759 }
0x1050   :  { %1807 = vst.msk [vmem:[#allocation2 + $0xa] sm:$0x1] %vm1156_vm9, %v1803_v6  ;;  %v1762_v26 = vsel %vm1723_vm13, %v1760_v14, %v4729_v17 }
0x10ae   :  { %v1751_v1 = vpop.permute.xlu1 %1750 }
0x10af   :  { %v4788_v60 = vsel %vm158_vm3, %v1732_v10, %v1751_v1 }
0x10b0   :  { %3722 = vmatmul.mubr.msk.f32.vlgmr.msra.gmra.mxu0 %vm125_vm1, %v4788_v60 }
0x10b1   :  { %3736 = vmatpush3.msra.mxu0 %v4520_v59  ;;  %3743 = vmatprep.mubr.msk.f32.mxu0 %vm4236_vm2, %v4235_v13 }
0x10b2   :  { %v1772_v11 = vpop.permute.xlu1 %1771  ;;  %3737 = vmatprep.subr.mxu0 %v4235_v13 }
0x10b3   :  { %v1774_v15 = vsel %vm1736_vm12, %v1769_v4, %v1772_v11  ;;  %3738 = vmatpush3.msra.mxu0 %v4524_v61 }
0x10b4   :  { %1776 = vrot.lane.b32.xlu1 %v1774_v15, %s4233_s11  ;;  %3739 = vmatprep.subr.mxu0 %v4235_v13 }
0x10b5   :  { %3740 = vmatpush3.msra.mxu0 %v4801_v51 }
0x10b6   :  { %3741 = vmatprep.subr.mxu0 %v4235_v13 }
0x10b7   :  { %3742 = vmatpush3.msra.mxu0 %v4531_v12 }
0x10b8   :  { %3757 = vmatprep.subr.mxu0 %v4235_v13 }
0x1126   :  { %v1777_v12 = vpop.permute.xlu1 %1776 }
0x1127   :  { %v4815_v28 = vsel %vm158_vm3, %v1762_v26, %v1777_v12 }
0x1128   :  { %v2003_v29 = vrot.slane %v4815_v28, 4  ;;  %v1947_v3 = vrot.slane %v4815_v28, 5  ;;  %v1948_v10 = vrot.slane %v4815_v28, 6 }
0x1170   :  { %v1917_v59 = vpop.f32.mrf.mxu0 }
0x1171   :  { %v1922_v20 = vrot.slane %v1917_v59, 5  ;;  %v1928_v22 = vrot.slane %v1917_v59, 4  ;;  %v1923_v24 = vrot.slane %v1917_v59, 6 }
0x1172   :  { %v3723_v7 = vpop.f32.mrf.mxu0 }
0x1173   :  { %v1930_v61 = vadd.f32 %v1928_v22, %v4566_v16  ;;  %v1931_v23 = vadd.f32 %v1922_v20, %v4568_v21  ;;  %v1926_v8 = vadd.f32 %v1922_v20, %v4566_v16  ;;  %v1927_v25 = vadd.f32 %v1923_v24, %v4568_v21 }
0x1174   :  { %v4250_v7 = vmov 4  }
0x1175   :  { %3932 = vtanh.f32 %v1930_v61  ;;  %v1989_v17 = vsub.f32 0.0, %v1930_v61  ;;  %v1990_v32 = vsub.f32 0.0, %v1931_v23  ;;  %v1932_v30 = vsub.f32 0.0, %v1926_v8  ;;  %3815 = vset.pattern.permute.xlu0 %v4250_v7 }
0x1176   :  { %3934 = vtanh.f32 %v1931_v23  ;;  %v1933_v33 = vsub.f32 0.0, %v1927_v25 }
0x1177   :  { %3936 = vtanh.f32 %v1926_v8  ;;  %v1991_v35 = vmul.f32 1.442695, %v1989_v17  ;;  %v1993_v37 = vmul.f32 1.442695, %v1990_v32  ;;  %v1934_v43 = vmul.f32 1.442695, %v1932_v30 }
0x1178   :  { %3938 = vtanh.f32 %v1927_v25  ;;  %v1936_v45 = vmul.f32 1.442695, %v1933_v33 }
0x1179   :  { %3940 = vpow2.f32 %v1991_v35 }
0x117a   :  { %3942 = vpow2.f32 %v1993_v37 }
0x117b   :  { %3944 = vpow2.f32 %v1934_v43 }
0x117c   :  { %3946 = vpow2.f32 %v1936_v45 }
0x1182   :  { %v3933_v27 = vpop.eup %3932 }
0x1183   :  { %v3935_v18 = vpop.eup %3934  ;;  %2014 = vrot.lane.b32.xlu0 %v3933_v27, %s4241_s13 }
0x1184   :  { %2016 = vrot.lane.b32.xlu1 %v3935_v18, %s4241_s13  ;;  %v3937_v34 = vpop.eup %3936 }
0x1185   :  { %v3939_v31 = vpop.eup %3938 }
0x1186   :  { %v3941_v46 = vpop.eup %3940 }
0x1187   :  { %2004 = vrot.lane.b32.xlu0 %v2003_v29, %s4234_s20  ;;  %v3943_v0 = vpop.eup %3942  ;;  %v1995_v47 = vadd.f32 1.0, %v3941_v46 }
0x1188   :  { %2006 = vrot.lane.b32.xlu1 %v1947_v3, %s4234_s20  ;;  %v1996_v49 = vadd.f32 1.0, %v3943_v0  ;;  %v3945_v50 = vpop.eup %3944  ;;  %v4251_v0 = vmov 3  }
0x1189   :  { %3948 = vrcp.f32 %v1995_v47  ;;  %v3947_v52 = vpop.eup %3946  ;;  %v1938_v54 = vadd.f32 1.0, %v3945_v50 }
0x118a   :  { %3950 = vrcp.f32 %v1996_v49  ;;  %v1939_v44 = vadd.f32 1.0, %v3947_v52 }
0x118b   :  { %1959 = vrot.lane.b32.xlu0 %v3937_v34, %s4241_s13  ;;  %3952 = vrcp.f32 %v1938_v54 }
0x118c   :  { %1961 = vrot.lane.b32.xlu1 %v3939_v31, %s4241_s13  ;;  %3954 = vrcp.f32 %v1939_v44 }
0x1196   :  { %v3949_v48 = vpop.eup %3948 }
0x1197   :  { %v3951_v58 = vpop.eup %3950 }
0x1198   :  { %v3953_v4 = vpop.eup %3952 }
0x1199   :  { %v3955_v15 = vpop.eup %3954 }
0x11f5   :  { %v2015_v56 = vpop.permute.xlu0 %2014 }
0x11f6   :  { %v2017_v62 = vpop.permute.xlu1 %2016  ;;  %v2020_v63 = vmul.f32 %v3949_v48, %v2015_v56 }
0x11f7   :  { %v2021_v5 = vmul.f32 %v3951_v58, %v2017_v62 }
0x11f8   :  { %2024 = vrot.lane.b32.xlu0 %v2020_v63, %s4233_s11 }
0x11f9   :  { %2026 = vrot.lane.b32.xlu1 %v2021_v5, %s4233_s11  ;;  %v2005_v6 = vpop.permute.xlu0 %2004 }
0x11fa   :  { %v2007_v1 = vpop.permute.xlu1 %2006  ;;  %v2010_v61 = vmul.f32 %v3949_v48, %v2005_v6 }
0x11fb   :  { %v2011_v23 = vmul.f32 %v3951_v58, %v2007_v1 }
0x11fc   :  { %1949 = vrot.lane.b32.xlu0 %v1947_v3, %s4233_s11 }
0x11fd   :  { %1951 = vrot.lane.b32.xlu1 %v1948_v10, %s4233_s11  ;;  %v1960_v11 = vpop.permute.xlu0 %1959 }
0x11fe   :  { %v1962_v59 = vpop.permute.xlu1 %1961  ;;  %v1965_v20 = vmul.f32 %v3953_v4, %v1960_v11 }
0x11ff   :  { %v1966_v22 = vmul.f32 %v3955_v15, %v1962_v59 }
0x1200   :  { %1969 = vrot.lane.b32.xlu0 %v1965_v20, %s4233_s11 }
0x1201   :  { %1971 = vrot.lane.b32.xlu1 %v1966_v22, %s4233_s11 }
0x126a   :  { %v2025_v24 = vpop.permute.xlu0 %2024 }
0x126b   :  { %v2027_v8 = vpop.permute.xlu1 %2026  ;;  %v2030_v25 = vadd.f32 %v2025_v24, %v2010_v61 }
0x126c   :  { %v2031_v14 = vadd.f32 %v2027_v8, %v2011_v23 }
0x126d   :  { %3956 = vtanh.f32 %v2030_v25  ;;  %v2089_v12 = vrot.slane %v2030_v25, 4 }
0x126e   :  { %3958 = vtanh.f32 %v2031_v14  ;;  %v2090_v26 = vrot.slane %v2031_v14, 3  ;;  %v1950_v27 = vpop.permute.xlu0 %1949 }
0x126f   :  { %v1952_v18 = vpop.permute.xlu1 %1951  ;;  %v1955_v3 = vmul.f32 %v3953_v4, %v1950_v27 }
0x1270   :  { %v2091_v29 = vsel %vm328_vm4, %v2090_v26, %v2089_v12  ;;  %v1956_v34 = vmul.f32 %v3955_v15, %v1952_v18  ;;  %v4877_v12 = vld [vmem:[#allocation11 + $0x30] sm:$0xff]  ;;  %v4885_v18 = vld [vmem:[#allocation11 + $0x20] sm:$0xff] }
0x1272   :  { %v1970_v31 = vpop.permute.xlu0 %1969 }
0x1273   :  { %v1972_v17 = vpop.permute.xlu1 %1971  ;;  %v1975_v32 = vadd.f32 %v1970_v31, %v1955_v3 }
0x1274   :  { %v1976_v35 = vadd.f32 %v1972_v17, %v1956_v34 }
0x1275   :  { %3960 = vtanh.f32 %v1975_v32  ;;  %v2080_v37 = vrot.slane %v1975_v32, 3 }
0x1276   :  { %v2081_v30 = vrot.slane %v1976_v35, 2  ;;  %3962 = vtanh.f32 %v1976_v35 }
0x1278   :  { %v2082_v33 = vsel %vm328_vm4, %v2081_v30, %v2080_v37 }
0x127a   :  { %v3957_v43 = vpop.eup %3956 }
0x127b   :  { %v3959_v45 = vpop.eup %3958  ;;  %2036 = vrot.lane.b32.xlu0 %v3957_v43, %s4237_s1 }
0x127c   :  { %2038 = vrot.lane.b32.xlu1 %v3959_v45, %s4237_s1 }
0x127f   :  { %2058 = vperm.xlu0 %3815, %v4588_v9  }
0x1282   :  { %v3961_v46 = vpop.eup %3960 }
0x1283   :  { %1981 = vrot.lane.b32.xlu1 %v3961_v46, %s4237_s1  ;;  %3816 = vset.pattern.permute.xlu0 %v4251_v0  ;;  %v3963_v47 = vpop.eup %3962 }
0x1287   :  { %1983 = vrot.lane.b32.xlu1 %v3963_v47, %s4237_s1 }
0x128b   :  { %2069 = vrot.lane.b32.xlu1 %v4788_v60, %s4245_s16 }
0x12ed   :  { %v2037_v49 = vpop.permute.xlu0 %2036 }
0x12ee   :  { %v2039_v50 = vpop.permute.xlu1 %2038  ;;  %v2042_v52 = vmul.f32 %v3949_v48, %v2037_v49 }
0x12ef   :  { %v2043_v54 = vmul.f32 %v3951_v58, %v2039_v50 }
0x12f0   :  { %v2063_v44 = vrot.slane %v2042_v52, 4 }
0x12f1   :  { %v2064_v56 = vrot.slane %v2043_v54, 3 }
0x12f3   :  { %v2065_v62 = vsel %vm328_vm4, %v2064_v56, %v2063_v44 }
0x12f4   :  { %2066 = vrot.lane.b32.xlu0 %v2065_v62, %s4233_s11 }
0x12f5   :  { %v1982_v63 = vpop.permute.xlu1 %1981 }
0x12f6   :  { %v1987_v5 = vmul.f32 %v3953_v4, %v1982_v63 }
0x12f8   :  { %2045 = vperm.xlu0 %3816, %v4588_v9   ;;  %v2050_v10 = vrot.slane %v1987_v5, 3 }
0x12f9   :  { %v1984_v6 = vpop.permute.xlu1 %1983 }
0x12fa   :  { %v1988_v1 = vmul.f32 %v3955_v15, %v1984_v6  ;;  %v4848_v58 = vpop.permute.xlu0 %2058 }
0x12fb   :  { %vm2060_vm14 = vcmp.eq.s32.totalorder %v4848_v58, 1 }
0x12fc   :  { %v2051_v11 = vrot.slane %v1988_v1, 2  ;;  %2092 = vrot.lane.b32.xlu0 %v2091_v29, %s4244_s15  ;;  %v4892_v29 = vld [vmem:[#allocation11] sm:$0xff] }
0x12fd   :  { %3817 = vset.pattern.permute.xlu0 %v4250_v7  ;;  %v2070_v59 = vpop.permute.xlu1 %2069 }
0x12fe   :  { %v2052_v48 = vsel %vm328_vm4, %v2051_v11, %v2050_v10 }
0x12ff   :  { %2053 = vrot.lane.b32.xlu1 %v2052_v48, %s4243_s6 }
0x1300   :  { %2083 = vrot.lane.b32.xlu0 %v2082_v33, %s4245_s16 }
0x1366   :  { %v4851_v4 = vpop.permute.xlu0 %2066 }
0x1367   :  { %v2072_v9 = vsel %vm2060_vm14, %v4851_v4, %v2070_v59 }
0x1368   :  { %2074 = vrot.lane.b32.xlu1 %v2072_v9, %s4233_s11 }
0x136c   :  { %2095 = vrot.lane.b32.xlu1 %v4815_v28, %s4245_s16 }
0x1371   :  { %v2054_v20 = vpop.permute.xlu1 %2053 }
0x1373   :  { %v4859_v15 = vpop.permute.xlu0 %2045 }
0x1374   :  { %vm2047_vm15 = vcmp.eq.s32.totalorder %v4859_v15, 1 }
0x1375   :  { %v2104_v22 = vsel %vm2047_vm15, %v2054_v20, 0.0  ;;  %v2056_v8 = vsel %vm2047_vm15, %v2054_v20, %v4788_v60 }
0x1376   :  { %v2112_v7 = vrot.slane %v2104_v22, %v4390_v57 }
0x1377   :  { %v2093_v26 = vpop.permute.xlu0 %2092 }
0x1378   :  { %v2113_v61 = vcombine.high %v2112_v7, %v2112_v7  ;;  %v2120_v23 = vrot.slane %v2112_v7, %v4390_v57 }
0x137a   :  { %2130 = vst.msk [vmem:[#allocation2 + $0x3] sm:$0x1] %vm1156_vm9, %v2120_v23  ;;  %v2127_v24 = vrot.slane %v2113_v61, %v4390_v57 }
0x137b   :  { %v2084_v43 = vpop.permute.xlu0 %2083 }
0x137c   :  { %2131 = vst.msk [vmem:[#allocation2 + $0xb] sm:$0x1] %vm1156_vm9, %v2127_v24  ;;  %v2086_v46 = vsel %vm2047_vm15, %v2084_v43, %v4815_v28 }
0x13da   :  { %v2075_v25 = vpop.permute.xlu1 %2074 }
0x13db   :  { %v4873_v14 = vsel %vm158_vm3, %v2056_v8, %v2075_v25 }
0x13dc   :  { %3733 = vmatmul.mubr.msk.f32.vlgmr.msra.gmra.mxu1 %vm125_vm1, %v4873_v14 }
0x13dd   :  { %3747 = vmatpush3.msra.mxu1 %v4877_v12  ;;  %3754 = vmatprep.mubr.msk.f32.mxu1 %vm4236_vm2, %v4235_v13 }
0x13de   :  { %v2096_v27 = vpop.permute.xlu1 %2095  ;;  %3748 = vmatprep.subr.mxu1 %v4235_v13 }
0x13df   :  { %v2098_v60 = vsel %vm2060_vm14, %v2093_v26, %v2096_v27  ;;  %3749 = vmatpush3.msra.mxu1 %v4885_v18 }
0x13e0   :  { %2100 = vrot.lane.b32.xlu1 %v2098_v60, %s4233_s11  ;;  %3750 = vmatprep.subr.mxu1 %v4235_v13 }
0x13e1   :  { %3751 = vmatpush3.msra.mxu1 %v4801_v51 }
0x13e2   :  { %3752 = vmatprep.subr.mxu1 %v4235_v13 }
0x13e3   :  { %3753 = vmatpush3.msra.mxu1 %v4892_v29 }
0x1452   :  { %v2101_v45 = vpop.permute.xlu1 %2100 }
0x1453   :  { %v4903_v47 = vsel %vm158_vm3, %v2086_v46, %v2101_v45 }
0x1454   :  { %v2272_v50 = vrot.slane %v4903_v47, 5  ;;  %v2327_v52 = vrot.slane %v4903_v47, 6 }
0x149c   :  { %v2241_v3 = vpop.f32.mrf.mxu1 }
0x149d   :  { %v2247_v34 = vrot.slane %v2241_v3, 5  ;;  %v2252_v31 = vrot.slane %v2241_v3, 6  ;;  %v2246_v37 = vrot.slane %v2241_v3, 4 }
0x149e   :  { %v3734_v17 = vpop.f32.mrf.mxu1 }
0x149f   :  { %v2254_v32 = vadd.f32 %v2247_v34, %v4566_v16  ;;  %v2255_v35 = vadd.f32 %v2252_v31, %v4568_v21  ;;  %v2250_v30 = vadd.f32 %v2246_v37, %v4566_v16  ;;  %v2251_v33 = vadd.f32 %v2247_v34, %v4568_v21 }
0x14a0   :  { %v2271_v34 = vrot.slane %v4903_v47, 4 }
0x14a1   :  { %3964 = vtanh.f32 %v2254_v32  ;;  %v2313_v28 = vsub.f32 0.0, %v2254_v32  ;;  %v2314_v56 = vsub.f32 0.0, %v2255_v35  ;;  %v2256_v5 = vsub.f32 0.0, %v2250_v30 }
0x14a2   :  { %3966 = vtanh.f32 %v2255_v35  ;;  %v2257_v6 = vsub.f32 0.0, %v2251_v33 }
0x14a3   :  { %3968 = vtanh.f32 %v2250_v30  ;;  %v2315_v62 = vmul.f32 1.442695, %v2313_v28  ;;  %v2317_v63 = vmul.f32 1.442695, %v2314_v56  ;;  %v2258_v1 = vmul.f32 1.442695, %v2256_v5 }
0x14a4   :  { %3970 = vtanh.f32 %v2251_v33  ;;  %v2260_v10 = vmul.f32 1.442695, %v2257_v6 }
0x14a5   :  { %3972 = vpow2.f32 %v2315_v62 }
0x14a6   :  { %3974 = vpow2.f32 %v2317_v63 }
0x14a7   :  { %3976 = vpow2.f32 %v2258_v1 }
0x14a8   :  { %3978 = vpow2.f32 %v2260_v10 }
0x14ae   :  { %v3965_v0 = vpop.eup %3964 }
0x14af   :  { %v3967_v49 = vpop.eup %3966  ;;  %2338 = vrot.lane.b32.xlu0 %v3965_v0, %s4241_s13 }
0x14b0   :  { %2340 = vrot.lane.b32.xlu1 %v3967_v49, %s4241_s13  ;;  %v3969_v54 = vpop.eup %3968 }
0x14b1   :  { %v3971_v44 = vpop.eup %3970 }
0x14b2   :  { %v3973_v11 = vpop.eup %3972 }
0x14b3   :  { %2328 = vrot.lane.b32.xlu0 %v2272_v50, %s4234_s20  ;;  %v3975_v48 = vpop.eup %3974  ;;  %v2319_v59 = vadd.f32 1.0, %v3973_v11 }
0x14b4   :  { %2330 = vrot.lane.b32.xlu1 %v2327_v52, %s4234_s20  ;;  %v2320_v9 = vadd.f32 1.0, %v3975_v48  ;;  %v3977_v20 = vpop.eup %3976 }
0x14b5   :  { %3980 = vrcp.f32 %v2319_v59  ;;  %v3979_v22 = vpop.eup %3978  ;;  %v2262_v7 = vadd.f32 1.0, %v3977_v20 }
0x14b6   :  { %3982 = vrcp.f32 %v2320_v9  ;;  %v2263_v61 = vadd.f32 1.0, %v3979_v22 }
0x14b7   :  { %2283 = vrot.lane.b32.xlu0 %v3969_v54, %s4241_s13  ;;  %3984 = vrcp.f32 %v2262_v7 }
0x14b8   :  { %2285 = vrot.lane.b32.xlu1 %v3971_v44, %s4241_s13  ;;  %3986 = vrcp.f32 %v2263_v61 }
0x14c2   :  { %v3981_v23 = vpop.eup %3980 }
0x14c3   :  { %v3983_v8 = vpop.eup %3982 }
0x14c4   :  { %v3985_v31 = vpop.eup %3984 }
0x14c5   :  { %v3987_v32 = vpop.eup %3986 }
0x1521   :  { %v2339_v24 = vpop.permute.xlu0 %2338 }
0x1522   :  { %v2344_v25 = vmul.f32 %v3981_v23, %v2339_v24  ;;  %v2341_v26 = vpop.permute.xlu1 %2340 }
0x1523   :  { %v2345_v27 = vmul.f32 %v3983_v8, %v2341_v26 }
0x1524   :  { %2348 = vrot.lane.b32.xlu0 %v2344_v25, %s4233_s11 }
0x1525   :  { %2350 = vrot.lane.b32.xlu1 %v2345_v27, %s4233_s11  ;;  %v2329_v60 = vpop.permute.xlu0 %2328 }
0x1526   :  { %v2331_v3 = vpop.permute.xlu1 %2330  ;;  %v2334_v33 = vmul.f32 %v3981_v23, %v2329_v60 }
0x1527   :  { %v2335_v43 = vmul.f32 %v3983_v8, %v2331_v3 }
0x1528   :  { %2273 = vrot.lane.b32.xlu0 %v2271_v34, %s4233_s11 }
0x1529   :  { %2275 = vrot.lane.b32.xlu1 %v2272_v50, %s4233_s11  ;;  %v2284_v17 = vpop.permute.xlu0 %2283 }
0x152a   :  { %v2289_v35 = vmul.f32 %v3985_v31, %v2284_v17  ;;  %v2286_v37 = vpop.permute.xlu1 %2285 }
0x152b   :  { %v2290_v30 = vmul.f32 %v3987_v32, %v2286_v37 }
0x152c   :  { %2293 = vrot.lane.b32.xlu0 %v2289_v35, %s4233_s11 }
0x152d   :  { %2295 = vrot.lane.b32.xlu1 %v2290_v30, %s4233_s11 }
0x1596   :  { %v2349_v45 = vpop.permute.xlu0 %2348 }
0x1597   :  { %v2354_v46 = vadd.f32 %v2349_v45, %v2334_v33  ;;  %v2351_v0 = vpop.permute.xlu1 %2350 }
0x1598   :  { %v2355_v49 = vadd.f32 %v2351_v0, %v2335_v43 }
0x1599   :  { %3988 = vtanh.f32 %v2354_v46  ;;  %v2405_v52 = vrot.slane %v2354_v46, 3 }
0x159a   :  { %3990 = vtanh.f32 %v2355_v49  ;;  %v2406_v54 = vrot.slane %v2355_v49, 2  ;;  %v2274_v50 = vpop.permute.xlu0 %2273 }
0x159b   :  { %v2276_v44 = vpop.permute.xlu1 %2275  ;;  %v2279_v56 = vmul.f32 %v3985_v31, %v2274_v50 }
0x159c   :  { %v2407_v28 = vsel %vm328_vm4, %v2406_v54, %v2405_v52  ;;  %v2280_v62 = vmul.f32 %v3987_v32, %v2276_v44 }
0x159e   :  { %v2294_v63 = vpop.permute.xlu0 %2293 }
0x159f   :  { %v2299_v5 = vadd.f32 %v2294_v63, %v2279_v56  ;;  %v2296_v6 = vpop.permute.xlu1 %2295 }
0x15a0   :  { %v2300_v1 = vadd.f32 %v2296_v6, %v2280_v62 }
0x15a1   :  { %3992 = vtanh.f32 %v2299_v5  ;;  %v2396_v10 = vrot.slane %v2299_v5, 4 }
0x15a2   :  { %3994 = vtanh.f32 %v2300_v1  ;;  %v2397_v11 = vrot.slane %v2300_v1, 3 }
0x15a4   :  { %v2398_v48 = vsel %vm328_vm4, %v2397_v11, %v2396_v10 }
0x15a6   :  { %v3989_v59 = vpop.eup %3988 }
0x15a7   :  { %v3991_v9 = vpop.eup %3990  ;;  %2360 = vrot.lane.b32.xlu0 %v3989_v59, %s4237_s1 }
0x15a8   :  { %2362 = vrot.lane.b32.xlu1 %v3991_v9, %s4237_s1 }
0x15ae   :  { %v3993_v20 = vpop.eup %3992 }
0x15af   :  { %v3995_v22 = vpop.eup %3994  ;;  %2305 = vrot.lane.b32.xlu0 %v3993_v20, %s4237_s1 }
0x15b0   :  { %2307 = vrot.lane.b32.xlu1 %v3995_v22, %s4237_s1 }
0x15b4   :  { %2385 = vrot.lane.b32.xlu1 %v4873_v14, %s4245_s16 }
0x1619   :  { %v2361_v7 = vpop.permute.xlu0 %2360 }
0x161a   :  { %v2366_v61 = vmul.f32 %v3981_v23, %v2361_v7  ;;  %v2363_v24 = vpop.permute.xlu1 %2362 }
0x161b   :  { %v2367_v25 = vmul.f32 %v3983_v8, %v2363_v24 }
0x161c   :  { %v2379_v26 = vrot.slane %v2366_v61, 3 }
0x161d   :  { %v2380_v27 = vrot.slane %v2367_v25, 2 }
0x161f   :  { %v2381_v60 = vsel %vm328_vm4, %v2380_v27, %v2379_v26 }
0x1620   :  { %2382 = vrot.lane.b32.xlu0 %v2381_v60, %s4233_s11 }
0x1621   :  { %v2306_v3 = vpop.permute.xlu0 %2305 }
0x1622   :  { %v2311_v34 = vmul.f32 %v3985_v31, %v2306_v3  ;;  %v2308_v17 = vpop.permute.xlu1 %2307 }
0x1623   :  { %v2312_v35 = vmul.f32 %v3987_v32, %v2308_v17 }
0x1624   :  { %v2370_v37 = vrot.slane %v2311_v34, 4 }
0x1625   :  { %v2371_v30 = vrot.slane %v2312_v35, 3 }
0x1626   :  { %v2386_v23 = vpop.permute.xlu1 %2385 }
0x1627   :  { %v2372_v33 = vsel %vm328_vm4, %v2371_v30, %v2370_v37 }
0x1628   :  { %2373 = vrot.lane.b32.xlu0 %v2372_v33, %s4243_s6 }
0x162c   :  { %2408 = vrot.lane.b32.xlu0 %v2407_v28, %s4244_s15 }
0x1630   :  { %2399 = vrot.lane.b32.xlu0 %v2398_v48, %s4245_s16 }
0x1692   :  { %v4934_v8 = vpop.permute.xlu0 %2382 }
0x1693   :  { %v2388_v43 = vsel %vm2047_vm15, %v4934_v8, %v2386_v23 }
0x1694   :  { %2390 = vrot.lane.b32.xlu1 %v2388_v43, %s4233_s11 }
0x1698   :  { %2411 = vrot.lane.b32.xlu1 %v4903_v47, %s4245_s16 }
0x169a   :  { %v4942_v31 = vpop.permute.xlu0 %2373 }
0x169b   :  { %v2376_v32 = vsel %vm2060_vm14, %v4942_v31, %v4873_v14 }
0x169e   :  { %v2409_v0 = vpop.permute.xlu0 %2408 }
0x1706   :  { %v2391_v45 = vpop.permute.xlu1 %2390 }
0x1707   :  { %v4949_v46 = vsel %vm158_vm3, %v2376_v32, %v2391_v45 }
0x1708   :  { %3744 = vmatmul.mubr.msk.f32.vlgmr.msra.gmra.mxu0 %vm125_vm1, %v4949_v46 }
0x1709   :  { %3758 = vmatpush3.msra.mxu0 %v4877_v12  ;;  %3765 = vmatprep.mubr.msk.f32.mxu0 %vm4236_vm2, %v4235_v13 }
0x170a   :  { %v2412_v49 = vpop.permute.xlu1 %2411  ;;  %3759 = vmatprep.subr.mxu0 %v4235_v13 }
0x170b   :  { %v2414_v52 = vsel %vm2047_vm15, %v2409_v0, %v2412_v49  ;;  %3760 = vmatpush3.msra.mxu0 %v4885_v18 }
0x170c   :  { %2416 = vrot.lane.b32.xlu1 %v2414_v52, %s4233_s11  ;;  %3761 = vmatprep.subr.mxu0 %v4235_v13 }
0x170d   :  { %3762 = vmatpush3.msra.mxu0 %v4801_v51 }
0x170e   :  { %3763 = vmatprep.subr.mxu0 %v4235_v13  ;;  %v2400_v13 = vpop.permute.xlu0 %2399 }
0x170f   :  { %3764 = vmatpush3.msra.mxu0 %v4892_v29  ;;  %v2402_v63 = vsel %vm2060_vm14, %v2400_v13, %v4903_v47 }
0x177e   :  { %v2417_v29 = vpop.permute.xlu1 %2416 }
0x177f   :  { %v4973_v6 = vsel %vm158_vm3, %v2402_v63, %v2417_v29 }
0x1780   :  { %v2645_v10 = vrot.slane %v4973_v6, 6  ;;  %v2646_v11 = vrot.slane %v4973_v6, 7  ;;  %v2589_v52 = vrot.slane %v4973_v6, 3 }
0x17c8   :  { %v2557_v14 = vpop.f32.mrf.mxu0 }
0x17c9   :  { %v2568_v12 = vrot.slane %v2557_v14, 6  ;;  %v2569_v54 = vrot.slane %v2557_v14, 7  ;;  %v2562_v56 = vrot.slane %v2557_v14, 3  ;;  %v2563_v18 = vrot.slane %v2557_v14, 4 }
0x17ca   :  { %v3745_v50 = vpop.f32.mrf.mxu0  ;;  %v2590_v14 = vrot.slane %v4973_v6, 4 }
0x17cb   :  { %v2572_v44 = vadd.f32 %v2568_v12, %v4566_v16  ;;  %v2573_v28 = vadd.f32 %v2569_v54, %v4568_v21  ;;  %v2566_v62 = vadd.f32 %v2562_v56, %v4566_v16  ;;  %v2567_v51 = vadd.f32 %v2563_v18, %v4568_v21 }
0x17cd   :  { %3996 = vtanh.f32 %v2572_v44  ;;  %v2631_v47 = vsub.f32 0.0, %v2572_v44  ;;  %v2632_v9 = vsub.f32 0.0, %v2573_v28  ;;  %v2574_v7 = vsub.f32 0.0, %v2566_v62 }
0x17ce   :  { %3998 = vtanh.f32 %v2573_v28  ;;  %v2575_v61 = vsub.f32 0.0, %v2567_v51 }
0x17cf   :  { %4000 = vtanh.f32 %v2566_v62  ;;  %v2633_v20 = vmul.f32 1.442695, %v2631_v47  ;;  %v2635_v22 = vmul.f32 1.442695, %v2632_v9  ;;  %v2576_v24 = vmul.f32 1.442695, %v2574_v7 }
0x17d0   :  { %4002 = vtanh.f32 %v2567_v51  ;;  %v2578_v25 = vmul.f32 1.442695, %v2575_v61 }
0x17d1   :  { %4004 = vpow2.f32 %v2633_v20 }
0x17d2   :  { %4006 = vpow2.f32 %v2635_v22 }
0x17d3   :  { %4008 = vpow2.f32 %v2576_v24 }
0x17d4   :  { %4010 = vpow2.f32 %v2578_v25 }
0x17da   :  { %v3997_v5 = vpop.eup %3996 }
0x17db   :  { %v3999_v1 = vpop.eup %3998  ;;  %2657 = vrot.lane.b32.xlu0 %v3997_v5, %s4241_s13 }
0x17dc   :  { %2659 = vrot.lane.b32.xlu1 %v3999_v1, %s4241_s13  ;;  %v4001_v48 = vpop.eup %4000 }
0x17dd   :  { %v4003_v59 = vpop.eup %4002 }
0x17de   :  { %v4005_v26 = vpop.eup %4004 }
0x17df   :  { %2647 = vrot.lane.b32.xlu0 %v2645_v10, %s4234_s20  ;;  %v4007_v27 = vpop.eup %4006  ;;  %v2637_v60 = vadd.f32 1.0, %v4005_v26 }
0x17e0   :  { %2649 = vrot.lane.b32.xlu1 %v2646_v11, %s4234_s20  ;;  %v2638_v3 = vadd.f32 1.0, %v4007_v27  ;;  %v4009_v34 = vpop.eup %4008 }
0x17e1   :  { %4012 = vrcp.f32 %v2637_v60  ;;  %v4011_v17 = vpop.eup %4010  ;;  %v2580_v35 = vadd.f32 1.0, %v4009_v34 }
0x17e2   :  { %4014 = vrcp.f32 %v2638_v3  ;;  %v2581_v37 = vadd.f32 1.0, %v4011_v17 }
0x17e3   :  { %2601 = vrot.lane.b32.xlu0 %v4001_v48, %s4241_s13  ;;  %4016 = vrcp.f32 %v2580_v35 }
0x17e4   :  { %2603 = vrot.lane.b32.xlu1 %v4003_v59, %s4241_s13  ;;  %4018 = vrcp.f32 %v2581_v37 }
0x17ee   :  { %v4013_v30 = vpop.eup %4012 }
0x17ef   :  { %v4015_v23 = vpop.eup %4014 }
0x17f0   :  { %v4017_v12 = vpop.eup %4016 }
0x17f1   :  { %v4019_v50 = vpop.eup %4018 }
0x184d   :  { %v2658_v33 = vpop.permute.xlu0 %2657 }
0x184e   :  { %v2660_v43 = vpop.permute.xlu1 %2659  ;;  %v2663_v32 = vmul.f32 %v4013_v30, %v2658_v33 }
0x184f   :  { %v2664_v45 = vmul.f32 %v4015_v23, %v2660_v43 }
0x1850   :  { %2667 = vrot.lane.b32.xlu0 %v2663_v32, %s4233_s11 }
0x1851   :  { %2669 = vrot.lane.b32.xlu1 %v2664_v45, %s4233_s11  ;;  %v2648_v0 = vpop.permute.xlu0 %2647 }
0x1852   :  { %v2650_v49 = vpop.permute.xlu1 %2649  ;;  %v2653_v18 = vmul.f32 %v4013_v30, %v2648_v0 }
0x1853   :  { %v2654_v62 = vmul.f32 %v4015_v23, %v2650_v49 }
0x1854   :  { %2591 = vrot.lane.b32.xlu0 %v2589_v52, %s4233_s11 }
0x1855   :  { %2593 = vrot.lane.b32.xlu1 %v2590_v14, %s4233_s11  ;;  %v2602_v54 = vpop.permute.xlu0 %2601 }
0x1856   :  { %v2604_v44 = vpop.permute.xlu1 %2603  ;;  %v2607_v28 = vmul.f32 %v4017_v12, %v2602_v54 }
0x1857   :  { %v2608_v56 = vmul.f32 %v4019_v50, %v2604_v44 }
0x1858   :  { %2611 = vrot.lane.b32.xlu0 %v2607_v28, %s4233_s11 }
0x1859   :  { %2613 = vrot.lane.b32.xlu1 %v2608_v56, %s4233_s11 }
0x18c2   :  { %v2668_v51 = vpop.permute.xlu0 %2667 }
0x18c3   :  { %v2670_v13 = vpop.permute.xlu1 %2669  ;;  %v2673_v29 = vadd.f32 %v2668_v51, %v2653_v18 }
0x18c4   :  { %v2674_v63 = vadd.f32 %v2670_v13, %v2654_v62 }
0x18c5   :  { %4020 = vtanh.f32 %v2673_v29  ;;  %v2724_v5 = vrot.slane %v2673_v29, 2 }
0x18c6   :  { %4022 = vtanh.f32 %v2674_v63  ;;  %v2725_v1 = vrot.slane %v2674_v63, 1  ;;  %v2592_v10 = vpop.permute.xlu0 %2591 }
0x18c7   :  { %v2594_v11 = vpop.permute.xlu1 %2593  ;;  %v2597_v59 = vmul.f32 %v4017_v12, %v2592_v10 }
0x18c8   :  { %v2726_v48 = vsel %vm328_vm4, %v2725_v1, %v2724_v5  ;;  %v2598_v47 = vmul.f32 %v4019_v50, %v2594_v11 }
0x18ca   :  { %v2612_v9 = vpop.permute.xlu0 %2611 }
0x18cb   :  { %v2614_v20 = vpop.permute.xlu1 %2613  ;;  %v2617_v22 = vadd.f32 %v2612_v9, %v2597_v59 }
0x18cc   :  { %v2618_v7 = vadd.f32 %v2614_v20, %v2598_v47 }
0x18cd   :  { %4024 = vtanh.f32 %v2617_v22  ;;  %v2715_v61 = vrot.slane %v2617_v22, 5 }
0x18ce   :  { %4026 = vtanh.f32 %v2618_v7  ;;  %v2716_v24 = vrot.slane %v2618_v7, 4 }
0x18d0   :  { %v2717_v25 = vsel %vm328_vm4, %v2716_v24, %v2715_v61 }
0x18d2   :  { %v4021_v26 = vpop.eup %4020 }
0x18d3   :  { %v4023_v27 = vpop.eup %4022  ;;  %2679 = vrot.lane.b32.xlu0 %v4021_v26, %s4237_s1 }
0x18d4   :  { %2681 = vrot.lane.b32.xlu1 %v4023_v27, %s4237_s1 }
0x18da   :  { %v4025_v60 = vpop.eup %4024 }
0x18db   :  { %v4027_v3 = vpop.eup %4026  ;;  %2623 = vrot.lane.b32.xlu0 %v4025_v60, %s4237_s1 }
0x18dc   :  { %2625 = vrot.lane.b32.xlu1 %v4027_v3, %s4237_s1 }
0x18e0   :  { %2704 = vrot.lane.b32.xlu1 %v4949_v46, %s4245_s16 }
0x1945   :  { %v2680_v34 = vpop.permute.xlu0 %2679 }
0x1946   :  { %v2682_v17 = vpop.permute.xlu1 %2681  ;;  %v2685_v35 = vmul.f32 %v4013_v30, %v2680_v34 }
0x1947   :  { %v2686_v37 = vmul.f32 %v4015_v23, %v2682_v17 }
0x1948   :  { %v2698_v33 = vrot.slane %v2685_v35, 2 }
0x1949   :  { %v2699_v43 = vrot.slane %v2686_v37, 1 }
0x194b   :  { %v2700_v32 = vsel %vm328_vm4, %v2699_v43, %v2698_v33 }
0x194c   :  { %2701 = vrot.lane.b32.xlu0 %v2700_v32, %s4233_s11 }
0x194d   :  { %v2624_v45 = vpop.permute.xlu0 %2623 }
0x194e   :  { %v2626_v0 = vpop.permute.xlu1 %2625  ;;  %v2629_v49 = vmul.f32 %v4017_v12, %v2624_v45 }
0x194f   :  { %v2630_v52 = vmul.f32 %v4019_v50, %v2626_v0 }
0x1950   :  { %v2689_v14 = vrot.slane %v2629_v49, 5 }
0x1951   :  { %v2690_v54 = vrot.slane %v2630_v52, 4 }
0x1952   :  { %v2705_v30 = vpop.permute.xlu1 %2704 }
0x1953   :  { %v2691_v44 = vsel %vm328_vm4, %v2690_v54, %v2689_v14 }
0x1954   :  { %2692 = vrot.lane.b32.xlu0 %v2691_v44, %s4243_s6 }
0x1958   :  { %2727 = vrot.lane.b32.xlu0 %v2726_v48, %s4244_s15 }
0x195c   :  { %2718 = vrot.lane.b32.xlu0 %v2717_v25, %s4245_s16 }
0x19be   :  { %v5005_v23 = vpop.permute.xlu0 %2701 }
0x19bf   :  { %v2707_v28 = vsel %vm1723_vm13, %v5005_v23, %v2705_v30 }
0x19c0   :  { %2709 = vrot.lane.b32.xlu1 %v2707_v28, %s4233_s11 }
0x19c4   :  { %2730 = vrot.lane.b32.xlu1 %v4973_v6, %s4245_s16 }
0x19c6   :  { %v5013_v12 = vpop.permute.xlu0 %2692 }
0x19c7   :  { %v2695_v50 = vsel %vm1736_vm12, %v5013_v12, %v4949_v46 }
0x19ca   :  { %v2728_v62 = vpop.permute.xlu0 %2727 }
0x19ce   :  { %v2719_v47 = vpop.permute.xlu0 %2718 }
0x19cf   :  { %v2721_v22 = vsel %vm1736_vm12, %v2719_v47, %v4973_v6 }
0x1a32   :  { %v2710_v56 = vpop.permute.xlu1 %2709 }
0x1a33   :  { %v5020_v18 = vsel %vm158_vm3, %v2695_v50, %v2710_v56 }
0x1a34   :  { %3755 = vmatmul.mubr.msk.f32.vlgmr.msra.gmra.mxu1 %vm125_vm1, %v5020_v18 }
0x1a36   :  { %v2731_v51 = vpop.permute.xlu1 %2730 }
0x1a37   :  { %v2733_v13 = vsel %vm1723_vm13, %v2728_v62, %v2731_v51 }
0x1a38   :  { %2735 = vrot.lane.b32.xlu1 %v2733_v13, %s4233_s11 }
0x1aaa   :  { %v2736_v20 = vpop.permute.xlu1 %2735 }
0x1aab   :  { %v5036_v61 = vsel %vm158_vm3, %v2721_v22, %v2736_v20 }
0x1aac   :  { %v2963_v24 = vrot.slane %v5036_v61, 7  ;;  %v2908_v51 = vrot.slane %v5036_v61, 3 }
0x1af4   :  { %v2876_v29 = vpop.f32.mrf.mxu1 }
0x1af5   :  { %v2887_v63 = vrot.slane %v2876_v29, 7  ;;  %v2891_v5 = vadd.f32 %v2876_v29, %v4568_v21  ;;  %v2882_v10 = vrot.slane %v2876_v29, 3  ;;  %v2881_v11 = vrot.slane %v2876_v29, 2 }
0x1af6   :  { %v3756_v1 = vpop.f32.mrf.mxu1 }
0x1af7   :  { %v2890_v46 = vadd.f32 %v2887_v63, %v4566_v16  ;;  %4028 = vtanh.f32 %v2891_v5  ;;  %v2886_v48 = vadd.f32 %v2882_v10, %v4568_v21  ;;  %v2885_v59 = vadd.f32 %v2881_v11, %v4566_v16 }
0x1af8   :  { %v2950_v6 = vsub.f32 0.0, %v2891_v5  ;;  %v2907_v5 = vrot.slane %v5036_v61, 2 }
0x1af9   :  { %4030 = vtanh.f32 %v2890_v46  ;;  %v2949_v27 = vsub.f32 0.0, %v2890_v46  ;;  %v2893_v34 = vsub.f32 0.0, %v2886_v48  ;;  %v2892_v17 = vsub.f32 0.0, %v2885_v59 }
0x1afa   :  { %4032 = vtanh.f32 %v2886_v48  ;;  %v2953_v60 = vmul.f32 1.442695, %v2950_v6 }
0x1afb   :  { %4034 = vtanh.f32 %v2885_v59  ;;  %v2951_v3 = vmul.f32 1.442695, %v2949_v27  ;;  %v2896_v35 = vmul.f32 1.442695, %v2893_v34  ;;  %v2894_v37 = vmul.f32 1.442695, %v2892_v17 }
0x1afc   :  { %4036 = vpow2.f32 %v2953_v60 }
0x1afd   :  { %4038 = vpow2.f32 %v2951_v3 }
0x1afe   :  { %4040 = vpow2.f32 %v2896_v35 }
0x1aff   :  { %4042 = vpow2.f32 %v2894_v37 }
0x1b04   :  { %v4029_v9 = vpop.eup %4028 }
0x1b05   :  { %2976 = vrot.lane.b32.xlu1 %v4029_v9, %s4241_s13 }
0x1b06   :  { %v4031_v7 = vpop.eup %4030 }
0x1b07   :  { %2974 = vrot.lane.b32.xlu0 %v4031_v7, %s4241_s13  ;;  %v4033_v25 = vpop.eup %4032 }
0x1b08   :  { %v4035_v26 = vpop.eup %4034 }
0x1b09   :  { %2966 = vrot.lane.b32.xlu1 %v5036_v61, %s4234_s20  ;;  %v4037_v33 = vpop.eup %4036 }
0x1b0a   :  { %v4039_v43 = vpop.eup %4038  ;;  %v2956_v32 = vadd.f32 1.0, %v4037_v33 }
0x1b0b   :  { %2964 = vrot.lane.b32.xlu0 %v2963_v24, %s4234_s20  ;;  %v2955_v45 = vadd.f32 1.0, %v4039_v43  ;;  %v4041_v0 = vpop.eup %4040 }
0x1b0c   :  { %4044 = vrcp.f32 %v2956_v32  ;;  %v4043_v49 = vpop.eup %4042  ;;  %v2899_v52 = vadd.f32 1.0, %v4041_v0 }
0x1b0d   :  { %2921 = vrot.lane.b32.xlu1 %v4033_v25, %s4241_s13  ;;  %4046 = vrcp.f32 %v2955_v45  ;;  %v2898_v14 = vadd.f32 1.0, %v4043_v49 }
0x1b0e   :  { %4048 = vrcp.f32 %v2899_v52 }
0x1b0f   :  { %2919 = vrot.lane.b32.xlu0 %v4035_v26, %s4241_s13  ;;  %4050 = vrcp.f32 %v2898_v14 }
0x1b19   :  { %v4045_v54 = vpop.eup %4044 }
0x1b1a   :  { %v4047_v28 = vpop.eup %4046 }
0x1b1b   :  { %v4049_v29 = vpop.eup %4048 }
0x1b1c   :  { %v4051_v46 = vpop.eup %4050 }
0x1b77   :  { %v2977_v44 = vpop.permute.xlu1 %2976 }
0x1b78   :  { %v2981_v30 = vmul.f32 %v4045_v54, %v2977_v44 }
0x1b79   :  { %v2975_v50 = vpop.permute.xlu0 %2974 }
0x1b7a   :  { %2986 = vrot.lane.b32.xlu1 %v2981_v30, %s4233_s11  ;;  %v2980_v56 = vmul.f32 %v4047_v28, %v2975_v50 }
0x1b7b   :  { %v2967_v62 = vpop.permute.xlu1 %2966 }
0x1b7c   :  { %2984 = vrot.lane.b32.xlu0 %v2980_v56, %s4233_s11  ;;  %v2971_v48 = vmul.f32 %v4045_v54, %v2967_v62 }
0x1b7d   :  { %v2965_v13 = vpop.permute.xlu0 %2964 }
0x1b7e   :  { %2911 = vrot.lane.b32.xlu1 %v2908_v51, %s4233_s11  ;;  %v2970_v9 = vmul.f32 %v4047_v28, %v2965_v13 }
0x1b7f   :  { %v2922_v63 = vpop.permute.xlu1 %2921 }
0x1b80   :  { %v2926_v1 = vmul.f32 %v4049_v29, %v2922_v63  ;;  %2909 = vrot.lane.b32.xlu0 %v2907_v5, %s4233_s11 }
0x1b81   :  { %v2920_v10 = vpop.permute.xlu0 %2919 }
0x1b82   :  { %2931 = vrot.lane.b32.xlu1 %v2926_v1, %s4233_s11  ;;  %v2925_v11 = vmul.f32 %v4051_v46, %v2920_v10 }
0x1b84   :  { %2929 = vrot.lane.b32.xlu0 %v2925_v11, %s4233_s11 }
0x1bec   :  { %v2987_v59 = vpop.permute.xlu1 %2986 }
0x1bed   :  { %v2991_v47 = vadd.f32 %v2987_v59, %v2971_v48 }
0x1bee   :  { %v2985_v20 = vpop.permute.xlu0 %2984 }
0x1bef   :  { %4052 = vtanh.f32 %v2991_v47  ;;  %v2990_v22 = vadd.f32 %v2985_v20, %v2970_v9 }
0x1bf0   :  { %v2912_v7 = vpop.permute.xlu1 %2911 }
0x1bf1   :  { %4054 = vtanh.f32 %v2990_v22  ;;  %v3040_v24 = vrot.slane %v2990_v22, 1  ;;  %v2916_v25 = vmul.f32 %v4049_v29, %v2912_v7 }
0x1bf2   :  { %v2910_v26 = vpop.permute.xlu0 %2909 }
0x1bf3   :  { %v3041_v27 = vsel %vm328_vm4, %v2991_v47, %v3040_v24  ;;  %v2915_v3 = vmul.f32 %v4051_v46, %v2910_v26 }
0x1bf4   :  { %v2932_v6 = vpop.permute.xlu1 %2931 }
0x1bf5   :  { %v2936_v60 = vadd.f32 %v2932_v6, %v2916_v25 }
0x1bf6   :  { %v2930_v34 = vpop.permute.xlu0 %2929 }
0x1bf7   :  { %4056 = vtanh.f32 %v2936_v60  ;;  %v2935_v17 = vadd.f32 %v2930_v34, %v2915_v3  ;;  %v3032_v35 = vrot.slane %v2936_v60, 5 }
0x1bf9   :  { %4058 = vtanh.f32 %v2935_v17  ;;  %v3031_v37 = vrot.slane %v2935_v17, 6 }
0x1bfb   :  { %v3033_v43 = vsel %vm328_vm4, %v3032_v35, %v3031_v37 }
0x1bfc   :  { %v4053_v33 = vpop.eup %4052 }
0x1bfd   :  { %2998 = vrot.lane.b32.xlu1 %v4053_v33, %s4237_s1 }
0x1bfe   :  { %v4055_v32 = vpop.eup %4054 }
0x1bff   :  { %2996 = vrot.lane.b32.xlu0 %v4055_v32, %s4237_s1 }
0x1c04   :  { %v4057_v45 = vpop.eup %4056 }
0x1c05   :  { %2943 = vrot.lane.b32.xlu1 %v4057_v45, %s4237_s1 }
0x1c06   :  { %v4059_v0 = vpop.eup %4058 }
0x1c07   :  { %2941 = vrot.lane.b32.xlu0 %v4059_v0, %s4237_s1 }
0x1c09   :  { %3020 = vrot.lane.b32.xlu1 %v5020_v18, %s4245_s16 }
0x1c6f   :  { %v2999_v49 = vpop.permute.xlu1 %2998 }
0x1c70   :  { %v3003_v44 = vmul.f32 %v4045_v54, %v2999_v49 }
0x1c71   :  { %v2997_v52 = vpop.permute.xlu0 %2996 }
0x1c72   :  { %v3002_v14 = vmul.f32 %v4047_v28, %v2997_v52 }
0x1c74   :  { %v3015_v30 = vrot.slane %v3002_v14, 1 }
0x1c76   :  { %v3016_v56 = vsel %vm328_vm4, %v3003_v44, %v3015_v30 }
0x1c77   :  { %v2944_v50 = vpop.permute.xlu1 %2943  ;;  %3017 = vrot.lane.b32.xlu0 %v3016_v56, %s4233_s11 }
0x1c78   :  { %v2948_v62 = vmul.f32 %v4049_v29, %v2944_v50 }
0x1c79   :  { %v2942_v51 = vpop.permute.xlu0 %2941 }
0x1c7a   :  { %v2947_v13 = vmul.f32 %v4051_v46, %v2942_v51  ;;  %v3007_v63 = vrot.slane %v2948_v62, 5 }
0x1c7b   :  { %v3021_v54 = vpop.permute.xlu1 %3020 }
0x1c7c   :  { %v3006_v5 = vrot.slane %v2947_v13, 6 }
0x1c7e   :  { %v3008_v1 = vsel %vm328_vm4, %v3007_v63, %v3006_v5 }
0x1c7f   :  { %3009 = vrot.lane.b32.xlu0 %v3008_v1, %s4243_s6 }
0x1c83   :  { %3042 = vrot.lane.b32.xlu0 %v3041_v27, %s4244_s15 }
0x1c87   :  { %3034 = vrot.lane.b32.xlu0 %v3033_v43, %s4245_s16 }
0x1ce9   :  { %v5067_v28 = vpop.permute.xlu0 %3017 }
0x1cea   :  { %v3023_v10 = vsel %vm1398_vm11, %v5067_v28, %v3021_v54 }
0x1ceb   :  { %3025 = vrot.lane.b32.xlu1 %v3023_v10, %s4233_s11 }
0x1cef   :  { %3045 = vrot.lane.b32.xlu1 %v5036_v61, %s4245_s16 }
0x1cf1   :  { %v5075_v29 = vpop.permute.xlu0 %3009 }
0x1cf2   :  { %v3012_v46 = vsel %vm1410_vm10, %v5075_v29, %v5020_v18 }
0x1cf5   :  { %v3043_v59 = vpop.permute.xlu0 %3042 }
0x1cf9   :  { %v3035_v27 = vpop.permute.xlu0 %3034 }
0x1cfa   :  { %v3037_v34 = vsel %vm1410_vm10, %v3035_v27, %v5036_v61 }
0x1d5d   :  { %v3026_v11 = vpop.permute.xlu1 %3025 }
0x1d5e   :  { %v3028_v48 = vsel %vm158_vm3, %v3012_v46, %v3026_v11 }
0x1d5f   :  { %3766 = vmatmul.mubr.msk.f32.vlgmr.msra.gmra.mxu0 %vm125_vm1, %v3028_v48 }
0x1d61   :  { %v3046_v47 = vpop.permute.xlu1 %3045 }
0x1d62   :  { %v3048_v9 = vsel %vm1398_vm11, %v3043_v59, %v3046_v47 }
0x1d63   :  { %3050 = vrot.lane.b32.xlu1 %v3048_v9, %s4233_s11 }
0x1dd5   :  { %v3051_v3 = vpop.permute.xlu1 %3050 }
0x1dd6   :  { %v3053_v35 = vsel %vm158_vm3, %v3037_v34, %v3051_v3 }
0x1dd7   :  { %v3221_v48 = vrot.slane %v3053_v35, 2 }
0x1e1f   :  { %v3191_v20 = vpop.f32.mrf.mxu0 }
0x1e20   :  { %v3196_v22 = vrot.slane %v3191_v20, 1  ;;  %v3203_v7 = vadd.f32 %v3191_v20, %v4566_v16  ;;  %v3197_v18 = vrot.slane %v3191_v20, 2 }
0x1e21   :  { %v3767_v24 = vpop.f32.mrf.mxu0 }
0x1e22   :  { %v3204_v25 = vadd.f32 %v3196_v22, %v4568_v21  ;;  %4060 = vtanh.f32 %v3203_v7  ;;  %v3200_v26 = vadd.f32 %v3196_v22, %v4566_v16  ;;  %v3201_v6 = vadd.f32 %v3197_v18, %v4568_v21 }
0x1e23   :  { %v3220_v16 = vrot.slane %v3053_v35, 1  ;;  %v3262_v33 = vsub.f32 0.0, %v3203_v7 }
0x1e24   :  { %4062 = vtanh.f32 %v3204_v25  ;;  %v3263_v43 = vsub.f32 0.0, %v3204_v25  ;;  %v3205_v45 = vsub.f32 0.0, %v3200_v26  ;;  %v3206_v0 = vsub.f32 0.0, %v3201_v6 }
0x1e25   :  { %4064 = vtanh.f32 %v3200_v26  ;;  %v3264_v32 = vmul.f32 1.442695, %v3262_v33 }
0x1e26   :  { %4066 = vtanh.f32 %v3201_v6  ;;  %v3266_v61 = vmul.f32 1.442695, %v3263_v43  ;;  %v3207_v49 = vmul.f32 1.442695, %v3205_v45  ;;  %v3209_v52 = vmul.f32 1.442695, %v3206_v0 }
0x1e27   :  { %4068 = vpow2.f32 %v3264_v32  ;;  %v2132_v0 = vsel %vm2060_vm14, %v4851_v4, 0.0 }
0x1e28   :  { %4070 = vpow2.f32 %v3266_v61  ;;  %v1481_v61 = vsel %vm1410_vm10, %v4682_v40, 0.0 }
0x1e29   :  { %4072 = vpow2.f32 %v3207_v49  ;;  %v1489_v45 = vrot.slane %v1481_v61, %v4390_v57  ;;  %v2140_v49 = vrot.slane %v2132_v0, %v4390_v57 }
0x1e2a   :  { %4074 = vpow2.f32 %v3209_v52 }
0x1e2b   :  { %v1497_v52 = vrot.slane %v1489_v45, %v4390_v57 }
0x1e2d   :  { %v1508_v40 = vrot.slane %v1497_v52, %v4324_v2 }
0x1e2f   :  { %v4061_v60 = vpop.eup %4060 }
0x1e30   :  { %3286 = vrot.lane.b32.xlu1 %v4061_v60, %s4241_s13 }
0x1e31   :  { %v4063_v17 = vpop.eup %4062 }
0x1e32   :  { %3288 = vrot.lane.b32.xlu0 %v4063_v17, %s4241_s13  ;;  %v4065_v21 = vpop.eup %4064 }
0x1e33   :  { %v4067_v37 = vpop.eup %4066 }
0x1e34   :  { %3276 = vrot.lane.b32.xlu1 %v3053_v35, %s4234_s20  ;;  %v4069_v14 = vpop.eup %4068 }
0x1e35   :  { %v4071_v44 = vpop.eup %4070  ;;  %v3268_v30 = vadd.f32 1.0, %v4069_v14 }
0x1e36   :  { %3278 = vrot.lane.b32.xlu0 %v3220_v16, %s4234_s20  ;;  %v3269_v50 = vadd.f32 1.0, %v4071_v44  ;;  %v4073_v56 = vpop.eup %4072 }
0x1e37   :  { %4076 = vrcp.f32 %v3268_v30  ;;  %v4075_v62 = vpop.eup %4074  ;;  %v3211_v51 = vadd.f32 1.0, %v4073_v56  ;;  %v1490_v30 = vcombine.high %v1489_v45, %v1489_v45  ;;  %v2141_v56 = vcombine.high %v2140_v49, %v2140_v49 }
0x1e38   :  { %3232 = vrot.lane.b32.xlu1 %v4065_v21, %s4241_s13  ;;  %4078 = vrcp.f32 %v3269_v50  ;;  %v3212_v13 = vadd.f32 1.0, %v4075_v62  ;;  %v2148_v50 = vrot.slane %v2140_v49, %v4390_v57 }
0x1e39   :  { %4080 = vrcp.f32 %v3211_v51  ;;  %v1504_v62 = vrot.slane %v1490_v30, %v4390_v57  ;;  %v2767_v51 = vsel %vm1723_vm13, %v5005_v23, 0.0 }
0x1e3a   :  { %3234 = vrot.lane.b32.xlu0 %v4067_v37, %s4241_s13  ;;  %4082 = vrcp.f32 %v3212_v13  ;;  %v2159_v4 = vrot.slane %v2148_v50, %v4324_v2  ;;  %v2775_v13 = vrot.slane %v2767_v51, %v4390_v57  ;;  %s4252_s13 = smov 95  }
0x1e44   :  { %v5100_v63 = vpop.eup %4076 }
0x1e45   :  { %v5103_v54 = vpop.eup %4078 }
0x1e46   :  { %v5109_v9 = vpop.eup %4080 }
0x1e47   :  { %v5112_v20 = vpop.eup %4082 }
0x1ea2   :  { %v3287_v5 = vpop.permute.xlu1 %3286 }
0x1ea3   :  { %v3292_v1 = vmul.f32 %v5100_v63, %v3287_v5  ;;  %v1512_v5 = vrot.slane %v1504_v62, %v4324_v2 }
0x1ea4   :  { %v3289_v10 = vpop.permute.xlu0 %3288 }
0x1ea5   :  { %3296 = vrot.lane.b32.xlu1 %v3292_v1, %s4233_s11  ;;  %v3293_v46 = vmul.f32 %v5103_v54, %v3289_v10  ;;  %v2155_v1 = vrot.slane %v2141_v56, %v4390_v57  ;;  %v2776_v10 = vcombine.high %v2775_v13, %v2775_v13 }
0x1ea6   :  { %v3277_v11 = vpop.permute.xlu1 %3276 }
0x1ea7   :  { %3298 = vrot.lane.b32.xlu0 %v3293_v46, %s4233_s11  ;;  %v3282_v25 = vmul.f32 %v5100_v63, %v3277_v11  ;;  %v2783_v46 = vrot.slane %v2775_v13, %v4390_v57  ;;  %v2163_v11 = vrot.slane %v2155_v1, %v4324_v2  ;;  %v2790_v23 = vrot.slane %v2776_v10, %v4390_v57 }
0x1ea8   :  { %v3279_v59 = vpop.permute.xlu0 %3278 }
0x1ea9   :  { %3224 = vrot.lane.b32.xlu1 %v3221_v48, %s4233_s11  ;;  %v3283_v6 = vmul.f32 %v5103_v54, %v3279_v59  ;;  %v2794_v55 = vrot.slane %v2783_v46, %v4324_v2  ;;  %v2798_v48 = vrot.slane %v2790_v23, %v4324_v2  ;;  %v1165_v59 = vrot.slane %v4605_v38, %v4390_v57  ;;  %v898_v23 = vld [vmem:[#allocation11 + $0x38] sm:$0xff] }
0x1eaa   :  { %v3233_v47 = vpop.permute.xlu1 %3232  ;;  %3768 = vmatprep.subr.mxu1 %v898_v23 }
0x1eab   :  { %3222 = vrot.lane.b32.xlu0 %v3220_v16, %s4233_s11  ;;  %v3238_v7 = vmul.f32 %v5109_v9, %v3233_v47  ;;  %3769 = vmatpush3.msra.mxu1 %v898_v23 }
0x1eac   :  { %v3235_v22 = vpop.permute.xlu0 %3234 }
0x1ead   :  { %v3239_v24 = vmul.f32 %v5112_v20, %v3235_v22 }
0x1eaf   :  { %3244 = vrot.lane.b32.xlu1 %v3239_v24, %s4233_s11  ;;  %3242 = vrot.lane.b32.xlu0 %v3238_v7, %s4233_s11  ;;  %v1808_v7 = vsel %vm1736_vm12, %v4766_v53, 0.0 }
0x1f17   :  { %v3297_v18 = vpop.permute.xlu1 %3296 }
0x1f18   :  { %v3302_v26 = vadd.f32 %v3297_v18, %v3282_v25 }
0x1f19   :  { %v3299_v27 = vpop.permute.xlu0 %3298 }
0x1f1a   :  { %4084 = vtanh.f32 %v3302_v26  ;;  %v3303_v60 = vadd.f32 %v3299_v27, %v3283_v6  ;;  %v1173_v26 = vrot.slane %v1165_v59, %v4390_v57  ;;  %v1816_v6 = vrot.slane %v1808_v7, %v4390_v57  ;;  %v896_v7 = vld [vmem:[#allocation11 + $0x18] sm:$0xff] }
0x1f1b   :  { %v3225_v3 = vpop.permute.xlu1 %3224  ;;  %v3054_v27 = vsel %vm1410_vm10, %v5075_v29, 0.0 }
0x1f1c   :  { %4086 = vtanh.f32 %v3303_v60  ;;  %v3229_v17 = vmul.f32 %v5112_v20, %v3225_v3  ;;  %v1166_v60 = vcombine.high %v1165_v59, %v1165_v59  ;;  %v3062_v53 = vrot.slane %v3054_v27, %v4390_v57 }
0x1f1d   :  { %v3223_v34 = vpop.permute.xlu0 %3222 }
0x1f1e   :  { %v3228_v35 = vmul.f32 %v5109_v9, %v3223_v34  ;;  %v2420_v34 = vsel %vm2060_vm14, %v4942_v31, 0.0  ;;  %v2448_v31 = vsel %vm2047_vm15, %v4934_v8, 0.0  ;;  %v3063_v0 = vcombine.high %v3062_v53, %v3062_v53 }
0x1f1f   :  { %v2456_v61 = vrot.slane %v2448_v31, %v4390_v57  ;;  %v3082_v8 = vsel %vm1398_vm11, %v5067_v28, 0.0 }
0x1f20   :  { %v3090_v30 = vrot.slane %v3082_v8, %v4390_v57 }
0x1f21   :  { %v3245_v16 = vpop.permute.xlu1 %3244  ;;  %v3243_v21 = vpop.permute.xlu0 %3242  ;;  %v2457_v42 = vcombine.high %v2456_v61, %v2456_v61 }
0x1f22   :  { %v3249_v37 = vadd.f32 %v3245_v16, %v3229_v17  ;;  %v3248_v33 = vadd.f32 %v3243_v21, %v3228_v35  ;;  %v1180_v35 = vrot.slane %v1166_v60, %v4390_v57  ;;  %v1817_v16 = vcombine.high %v1816_v6, %v1816_v6  ;;  %v4096_v60 = vld [vmem:[%s5279_s7 + $0x3] ss:$0 sm:$0xff]  ;;  %s4253_s7 = smov [#allocation12]  }
0x1f23   :  { %v3098_v56 = vrot.slane %v3090_v30, %v4390_v57  ;;  %v3091_v51 = vcombine.high %v3090_v30, %v3090_v30  ;;  %v2471_v1 = vrot.slane %v2457_v42, %v4390_v57 }
0x1f24   :  { %4088 = vtanh.f32 %v3249_v37  ;;  %v2428_v37 = vrot.slane %v2420_v34, %v4390_v57  ;;  %v1188_v15 = vrot.slane %v1180_v35, %v4324_v2 }
0x1f25   :  { %4090 = vtanh.f32 %v3248_v33  ;;  %v3070_v33 = vrot.slane %v3062_v53, %v4390_v57  ;;  %v2479_v46 = vrot.slane %v2471_v1, %v4324_v2 }
0x1f26   :  { %v2436_v45 = vrot.slane %v2428_v37, %v4390_v57 }
0x1f27   :  { %v4085_v43 = vpop.eup %4084 }
0x1f28   :  { %3308 = vrot.lane.b32.xlu1 %v4085_v43, %s4237_s1 }
0x1f29   :  { %v4087_v32 = vpop.eup %4086 }
0x1f2a   :  { %3310 = vrot.lane.b32.xlu0 %v4087_v32, %s4237_s1 }
0x1f31   :  { %v4089_v14 = vpop.eup %4088 }
0x1f32   :  { %v4091_v44 = vpop.eup %4090  ;;  %3256 = vrot.lane.b32.xlu1 %v4089_v14, %s4237_s1  ;;  %v2464_v14 = vrot.slane %v2456_v61, %v4390_v57 }
0x1f33   :  { %3254 = vrot.lane.b32.xlu0 %v4091_v44, %s4237_s1  ;;  %v2429_v44 = vcombine.high %v2428_v37, %v2428_v37 }
0x1f34   :  { %v2475_v62 = vrot.slane %v2464_v14, %v4324_v2 }
0x1f35   :  { %v2443_v28 = vrot.slane %v2429_v44, %v4390_v57 }
0x1f36   :  { %1513 = vrot.lane.b32.xlu1 %v1508_v40, %s4233_s11  ;;  %v3077_v40 = vrot.slane %v3063_v0, %v4390_v57 }
0x1f3a   :  { %2164 = vrot.lane.b32.xlu1 %v2159_v4, %s4233_s11 }
0x1f3e   :  { %1515 = vrot.lane.b32.xlu1 %v1512_v5, %s4233_s11  ;;  %v3109_v5 = vrot.slane %v3098_v56, %v4324_v2 }
0x1f42   :  { %2166 = vrot.lane.b32.xlu1 %v2163_v11, %s4233_s11  ;;  %v3105_v11 = vrot.slane %v3091_v51, %v4390_v57 }
0x1f46   :  { %2799 = vrot.lane.b32.xlu1 %v2794_v55, %s4233_s11  ;;  %v3113_v55 = vrot.slane %v3105_v11, %v4324_v2 }
0x1f4a   :  { %2801 = vrot.lane.b32.xlu1 %v2798_v48, %s4233_s11  ;;  %v897_v48 = vld [vmem:[#allocation11 + $0x28] sm:$0xff] }
0x1f4b   :  { %3770 = vmatprep.subr.mxu1 %v897_v48 }
0x1f4c   :  { %3771 = vmatpush3.msra.mxu1 %v897_v48 }
0x1f4d   :  { %3772 = vmatprep.subr.mxu1 %v896_v7 }
0x1f4e   :  { %3773 = vmatpush3.msra.mxu1 %v896_v7 }
0x1f9a   :  { %v3309_v47 = vpop.permute.xlu1 %3308 }
0x1f9b   :  { %v3314_v25 = vmul.f32 %v5100_v63, %v3309_v47  ;;  %v1824_v63 = vrot.slane %v1816_v6, %v4390_v57  ;;  %v2739_v47 = vsel %vm1736_vm12, %v5013_v12, 0.0 }
0x1f9c   :  { %v3311_v22 = vpop.permute.xlu0 %3310 }
0x1f9d   :  { %v3315_v24 = vmul.f32 %v5103_v54, %v3311_v22  ;;  %v1184_v54 = vrot.slane %v1173_v26, %v4324_v2  ;;  %v1835_v58 = vrot.slane %v1824_v63, %v4324_v2 }
0x1f9f   :  { %v3354_v18 = vrot.slane %v3315_v24, 7 }
0x1fa1   :  { %v3355_v38 = vsel %vm328_vm4, %v3354_v18, %v3314_v25  ;;  %v895_v25 = vld [vmem:[#allocation11 + $0x8] sm:$0xff]  ;;  %v2747_v18 = vrot.slane %v2739_v47, %v4390_v57 }
0x1fa2   :  { %3356 = vrot.lane.b32.xlu0 %v3355_v38, %s4233_s11  ;;  %3774 = vmatprep.subr.mxu1 %v895_v25 }
0x1fa3   :  { %3775 = vmatpush3.msra.mxu1 %v895_v25  ;;  %v2755_v12 = vrot.slane %v2747_v18, %v4390_v57  ;;  %v2748_v34 = vcombine.high %v2747_v18, %v2747_v18 }
0x1fa4   :  { %v3257_v3 = vpop.permute.xlu1 %3256 }
0x1fa5   :  { %v3261_v17 = vmul.f32 %v5112_v20, %v3257_v3  ;;  %v3255_v19 = vpop.permute.xlu0 %3254  ;;  %v1831_v20 = vrot.slane %v1817_v16, %v4390_v57  ;;  %v2762_v36 = vrot.slane %v2748_v34, %v4390_v57 }
0x1fa6   :  { %v3260_v29 = vmul.f32 %v5109_v9, %v3255_v19  ;;  %1189 = vrot.lane.b32.xlu0 %v1184_v54, %s4233_s11 }
0x1fa7   :  { %v3319_v21 = vrot.slane %v3261_v17, 6  ;;  %v1839_v52 = vrot.slane %v1831_v20, %v4324_v2 }
0x1fa8   :  { %v3318_v43 = vrot.slane %v3260_v29, 7  ;;  %v1514_v32 = vpop.permute.xlu1 %1513 }
0x1fa9   :  { %1519 = vst.msk [vmem:[#allocation2 + $0x6] sm:$0x1] %vm1195_vm0, %v1514_v32 }
0x1faa   :  { %3080 = vst.msk [vmem:[#allocation2 + $0x6] sm:$0x1] %vm1156_vm9, %v3070_v33  ;;  %1840 = vrot.lane.b32.xlu0 %v1835_v58, %s4233_s11  ;;  %v3320_v9 = vsel %vm328_vm4, %v3319_v21, %v3318_v43 }
0x1fab   :  { %3321 = vrot.lane.b32.xlu1 %v3320_v9, %s4243_s6 }
0x1fac   :  { %v2165_v49 = vpop.permute.xlu1 %2164 }
0x1fad   :  { %2170 = vst.msk [vmem:[#allocation2 + $0x4] sm:$0x1] %vm1195_vm0, %v2165_v49 }
0x1fae   :  { %2446 = vst.msk [vmem:[#allocation2 + $0x4] sm:$0x1] %vm1156_vm9, %v2436_v45  ;;  %1191 = vrot.lane.b32.xlu0 %v1188_v15, %s4233_s11 }
0x1fb0   :  { %v1516_v50 = vpop.permute.xlu1 %1515 }
0x1fb1   :  { %1520 = vst.msk [vmem:[#allocation2 + $0xe] sm:$0x1] %vm1195_vm0, %v1516_v50 }
0x1fb2   :  { %3081 = vst.msk [vmem:[#allocation2 + $0xe] sm:$0x1] %vm1156_vm9, %v3077_v40  ;;  %1842 = vrot.lane.b32.xlu0 %v1839_v52, %s4233_s11 }
0x1fb4   :  { %v2167_v4 = vpop.permute.xlu1 %2166 }
0x1fb5   :  { %2171 = vst.msk [vmem:[#allocation2 + $0xc] sm:$0x1] %vm1195_vm0, %v2167_v4 }
0x1fb6   :  { %2447 = vst.msk [vmem:[#allocation2 + $0xc] sm:$0x1] %vm1156_vm9, %v2443_v28  ;;  %2480 = vrot.lane.b32.xlu0 %v2475_v62, %s4233_s11 }
0x1fb8   :  { %v2800_v13 = vpop.permute.xlu1 %2799 }
0x1fb9   :  { %2805 = vst.msk [vmem:[#allocation2 + $0x2] sm:$0x1] %vm1195_vm0, %v2800_v13 }
0x1fba   :  { %3114 = vrot.lane.b32.xlu0 %v3109_v5, %s4233_s11 }
0x1fbc   :  { %v2802_v10 = vpop.permute.xlu1 %2801 }
0x1fbd   :  { %2806 = vst.msk [vmem:[#allocation2 + $0xa] sm:$0x1] %vm1195_vm0, %v2802_v10 }
0x1fbe   :  { %2482 = vrot.lane.b32.xlu0 %v2479_v46, %s4233_s11 }
0x1fc2   :  { %3116 = vrot.lane.b32.xlu0 %v3113_v55, %s4233_s11 }
0x1fc6   :  { %3401 = vrot.lane.b32.xlu0 %v4096_v60, %s4252_s13 }
0x2014   :  { %v3357_v59 = vpop.permute.xlu0 %3356 }
0x2015   :  { %v3359_v22 = vsel %vm1082_vm8, %v3357_v59, 0.0 }
0x2016   :  { %v3367_v24 = vrot.slane %v3359_v22, %v4390_v57 }
0x2018   :  { %v3368_v26 = vcombine.high %v3367_v24, %v3367_v24  ;;  %v3375_v6 = vrot.slane %v3367_v24, %v4390_v57  ;;  %v1190_v27 = vpop.permute.xlu0 %1189 }
0x2019   :  { %1196 = vst.msk [vmem:[#allocation2 + $0x7] sm:$0x1] %vm1195_vm0, %v1190_v27 }
0x201a   :  { %v3382_v39 = vrot.slane %v3368_v26, %v4390_v57  ;;  %v3386_v41 = vrot.slane %v3375_v6, %v4324_v2 }
0x201c   :  { %3391 = vrot.lane.b32.xlu1 %v3386_v41, %s4233_s11  ;;  %v1841_v38 = vpop.permute.xlu0 %1840  ;;  %v3390_v54 = vrot.slane %v3382_v39, %v4324_v2 }
0x201d   :  { %v3322_v53 = vpop.permute.xlu1 %3321  ;;  %1846 = vst.msk [vmem:[#allocation2 + $0x5] sm:$0x1] %vm1195_vm0, %v1841_v38 }
0x201e   :  { %v3324_v3 = vsel %vm1094_vm7, %v3322_v53, 0.0  ;;  %2765 = vst.msk [vmem:[#allocation2 + $0x5] sm:$0x1] %vm1156_vm9, %v2755_v12 }
0x201f   :  { %v3332_v63 = vrot.slane %v3324_v3, %v4390_v57 }
0x2020   :  { %3393 = vrot.lane.b32.xlu1 %v3390_v54, %s4233_s11  ;;  %v1192_v17 = vpop.permute.xlu0 %1191  ;;  %s3496_s11 = sshll.u32 %s4253_s7, 4  ;;  %s3497_s11 = int_to_ptr.vmem [resolvable:$true] %s3496_s11 }
0x2021   :  { %v3333_v19 = vcombine.high %v3332_v63, %v3332_v63  ;;  %v3340_v29 = vrot.slane %v3332_v63, %v4390_v57  ;;  %1197 = vst.msk [vmem:[#allocation2 + $0xf] sm:$0x1] %vm1195_vm0, %v1192_v17  ;;  %s4197_s17 = scalar_lea.vmem %s3497_s11, 32  ;;  %p4202_p12 = scmp.lt.s32.totalorder %s3497_s11, %s3497_s11 }
0x2022   :  { %p4198_p11 = scmp.ne.s32.totalorder %s3497_s11, %s4197_s17  ;;  %p4203_p13 = scmp.lt.s32.totalorder %s4197_s17, %s4197_s17 }
0x2023   :  { %v3347_v35 = vrot.slane %v3333_v19, %v4390_v57  ;;  %3350 = vst.msk [vmem:[#allocation2 + $0x7] sm:$0x1] %vm1156_vm9, %v3340_v29 }
0x2024   :  { %v1843_v16 = vpop.permute.xlu0 %1842  ;;  %p4204_p0 = por %p4203_p13, %p4202_p12 }
0x2025   :  { %3351 = vst.msk [vmem:[#allocation2 + $0xf] sm:$0x1] %vm1156_vm9, %v3347_v35 }
0x2026   :  { %1847 = vst.msk [vmem:[#allocation2 + $0xd] sm:$0x1] %vm1195_vm0, %v1843_v16  ;;  %p4205_p1 = pnand %p4204_p0, %p4198_p11 }
0x2027   :  { %2766 = vst.msk [vmem:[#allocation2 + $0xd] sm:$0x1] %vm1156_vm9, %v2762_v36 }
0x2028   :  { %v2481_v2 = vpop.permute.xlu0 %2480 }
0x2029   :  { %2486 = vst.msk [vmem:[#allocation2 + $0x3] sm:$0x1] %vm1195_vm0, %v2481_v2 }
0x202c   :  { %v3115_v21 = vpop.permute.xlu0 %3114 }
0x202d   :  { %3120 = vst.msk [vmem:[#allocation2 + $0x1] sm:$0x1] %vm1195_vm0, %v3115_v21 }
0x2030   :  { %v2483_v37 = vpop.permute.xlu0 %2482 }
0x2031   :  { %2487 = vst.msk [vmem:[#allocation2 + $0xb] sm:$0x1] %vm1195_vm0, %v2483_v37 }
0x2034   :  { %v3117_v33 = vpop.permute.xlu0 %3116 }
0x2035   :  { %3121 = vst.msk [vmem:[#allocation2 + $0x9] sm:$0x1] %vm1195_vm0, %v3117_v33 }
0x208e   :  { %v3392_v57 = vpop.permute.xlu1 %3391 }
0x208f   :  { %3397 = vst.msk [vmem:[#allocation2] sm:$0x1] %vm1195_vm0, %v3392_v57 }
0x2092   :  { %v3394_v43 = vpop.permute.xlu1 %3393 }
0x2093   :  { %3398 = vst.msk [vmem:[#allocation2 + $0x8] sm:$0x1] %vm1195_vm0, %v3394_v43 }
0x2096   :  { %v3399_v32 = vld [vmem:[#allocation2] sm:$0xff] }
0x2097   :  { %3776 = vmatprep.mubr.msk.f32.mxu1 %vm125_vm1, %v3399_v32 }
0x209a   :  { %v3400_v58 = vld [vmem:[#allocation2 + $0x8] sm:$0xff] }
0x209b   :  { %3777 = vmatmul.mubr.msk.f32.vlgmr.msra.gmra.mxu1 %vm125_vm1, %v3400_v58 }
0x209c   :  { %4208 = shalt.err (!%p4205_p1)
}
0x209d   :  { %3499 = dma.vmem_to_hbm [thread:$0]  %s3497_s11, 32, %s5281_s9, [#allocation5]   ;;  %v3402_v31 = vpop.permute.xlu0 %3401  ;;  %vm3485_vm2 = vcmask 39936  }
0x215b   :  { %v3778_v9 = vpop.f32.mrf.mxu1 }
0x215c   :  { %v3482_v20 = vadd.f32 %v3778_v9, %v3402_v31 }
0x215d   :  { %v3476_v61 = vpop.f32.mrf.mxu1 }
0x215e   :  { %3487 = vst.msk [vmem:[%s5280_s8 + $0x8] sm:$0xff] %vm3485_vm2, %v3482_v20  ;;  %v3477_v45 = vadd.f32 %v3476_v61, %v3402_v31 }
0x2160   :  { %3486 = vst.msk [vmem:[%s5280_s8] sm:$0xff] %vm3485_vm2, %v3477_v45 }
0x2161   :  { %4223 = dma.done.wait [#allocation5], 32  }
0x2162   :  { %4224 = vsyncadd [#allocation5], 4294967264 }
0x2163   :  { %3505 = vsyncpa [#allocation4], 1 }
0x2164   :  { %3506 = vsyncpa [#allocation7], 1 }
0x2165   :  { %3507 = vsyncpa [#allocation10], 1 }
0x2166   :  { %3508 = vsyncpa [#allocation5], 1 }

</bundles_post_ra>
